<compile_context>
chip_gen: v7x
topology: tpu7x:2x2x1
jax: 0.10.0
libtpu: 0.0.40
codegen_flags: <defaults>
</compile_context>

<pallas_src>
import jax
import jax.numpy as jnp
from jax import lax
from jax.experimental import pallas as pl
from jax.experimental.pallas import tpu as pltpu

# ---------------- problem sizes (small, consistent with the module) ----------
D_FEAT = 6      # d_feat
D_PAD = 8       # d_feat padded to a sublane multiple (zero columns)
HIDDEN = 32     # hidden_size (3H = 96 <= 128 lanes -> fused gates fit one vreg row)
SEQ_LEN = 8     # T  (so x has d_feat * T = 48 columns)
N_STOCK = 16    # number of stocks (rows of x)
N_CONCEPT = 12  # num_feature / concepts (columns of concept_matrix)
CMMV_W = 16     # packed [concept_matrix | market_value | pad] lane width

NEG_SLOPE = 0.01   # nn.LeakyReLU default
NEG_BIG = -1e30    # "-inf" for masked softmax columns


# ------------------------------- helpers (in-kernel) -------------------------
def _rowsum_as_row(mat):
    """sum over last axis of (R, C) returned as a (1, R) row (no transpose)."""
    ones = jnp.ones((1, mat.shape[1]), jnp.float32)
    return lax.dot_general(ones, mat, (((1,), (1,)), ((), ())),
                           preferred_element_type=jnp.float32)


def _cos_sim(x, y):
    """cal_cos_similarity: rows of x vs rows of y, NaN -> 0 (matches torch)."""
    xy = lax.dot_general(x, y, (((1,), (1,)), ((), ())),
                         preferred_element_type=jnp.float32)        # (Nx, Ny)
    x_norm = jnp.sqrt(jnp.sum(x * x, axis=1, keepdims=True))        # (Nx, 1)
    y_norm_row = jnp.sqrt(_rowsum_as_row(y * y))                    # (1, Ny)
    cos = xy / (x_norm * y_norm_row)                                # exact div keeps 0/0->NaN
    return jnp.where(jnp.isnan(cos), 0.0, cos)


def _softmax(x, axis):
    m = jnp.max(x, axis=axis, keepdims=True)
    e = jnp.exp(x - m)
    # denominator is a strictly positive sum of exps -> EUP approx reciprocal is safe
    return e * pl.reciprocal(jnp.sum(e, axis=axis, keepdims=True), approx=True)


def _leaky_relu(x):
    return jnp.where(x >= 0.0, x, NEG_SLOPE * x)


# =============================== fused HIST kernel ===========================
def hist_kernel(x_ref, gru_ref, head_ref, cmmv_ref, out_ref):
    H = HIDDEN
    N = cmmv_ref.shape[0]
    T = x_ref.shape[0] // N

    # ---------------- GRU weight slab (gate-fused [r|z|n], 3H = 96) ----------
    wih1 = gru_ref[0:D_PAD, :]                             # (8, 96) rows 6,7 zero
    whh1 = gru_ref[D_PAD:D_PAD + H, :]                     # (32, 96)
    wih2 = gru_ref[D_PAD + H:D_PAD + 2 * H, :]             # (32, 96)
    whh2 = gru_ref[D_PAD + 2 * H:D_PAD + 3 * H, :]         # (32, 96)
    bias_blk = gru_ref[D_PAD + 3 * H:D_PAD + 3 * H + 8, :]  # (8, 96)

    b_gi1 = bias_blk[0:1, :]                                       # bih1 + [bhh1_r, bhh1_z, 0]
    # pre-broadcast remaining biases ONCE (avoids re-broadcast per unrolled step)
    b_hn1 = jnp.broadcast_to(bias_blk[1:2, 2 * H:3 * H], (N, H))   # bhh1_n
    b_gi2 = jnp.broadcast_to(bias_blk[2:3, :], (N, 3 * H))         # bih2 + [bhh2_r, bhh2_z, 0]
    b_hn2 = jnp.broadcast_to(bias_blk[3:4, 2 * H:3 * H], (N, H))   # bhh2_n

    # Layer-1 input projection hoisted out of the recurrence: one
    # (T*N, 8) @ (8, 96) matmul covers all timesteps and all 3 gates.
    gi1 = jnp.dot(x_ref[...], wih1, preferred_element_type=jnp.float32) + b_gi1

    h1 = jnp.zeros((N, H), jnp.float32)
    h2 = jnp.zeros((N, H), jnp.float32)
    for t in range(T):                      # short static trip-count: keep unrolled
        lo = t * N                          # sublane-aligned static row slice
        gi1_t = gi1[lo:lo + N, :]           # (N, 96)
        # ----- layer 1: one fused (N,32)@(32,96) matmul -----
        gh1 = jnp.dot(h1, whh1, preferred_element_type=jnp.float32)
        rz1 = jax.nn.sigmoid(gi1_t[:, 0:2 * H] + gh1[:, 0:2 * H])
        r1 = rz1[:, 0:H]
        z1 = rz1[:, H:2 * H]
        n1 = jnp.tanh(gi1_t[:, 2 * H:3 * H] + r1 * (gh1[:, 2 * H:3 * H] + b_hn1))
        h1 = (1.0 - z1) * n1 + z1 * h1
        # ----- layer 2: two fused (N,32)@(32,96) matmuls -----
        gi2 = jnp.dot(h1, wih2, preferred_element_type=jnp.float32) + b_gi2
        gh2 = jnp.dot(h2, whh2, preferred_element_type=jnp.float32)
        rz2 = jax.nn.sigmoid(gi2[:, 0:2 * H] + gh2[:, 0:2 * H])
        r2 = rz2[:, 0:H]
        z2 = rz2[:, H:2 * H]
        n2 = jnp.tanh(gi2[:, 2 * H:3 * H] + r2 * (gh2[:, 2 * H:3 * H] + b_hn2))
        h2 = (1.0 - z2) * n2 + z2 * h2

    xh = h2                                                          # (N, H) last-step hidden

    # ---------------- head weight slab (pre-composed pairs) ------------------
    w_es_pair = head_ref[0:H, :]               # (32, 64) = fc_es∘[fc_es_back | fc_es_fore]
    w_is_pair = head_ref[H:2 * H, :]           # (32, 64) = fc_is∘[fc_is_back | fc_is_fore]
    w_indi = head_ref[2 * H:3 * H, :]          # (32, 64), cols 32:64 zero-padded
    hbias = head_ref[3 * H:3 * H + 8, :]       # (8, 64)
    b_es_pair = hbias[0:1, :]                  # (1, 64)
    b_is_pair = hbias[1:2, :]                  # (1, 64)
    b_indi = hbias[2:3, :]                     # (1, 64), cols 32:64 zero
    w_out = hbias[3:4, 0:H]                    # (1, 32)  fc_out weight row
    b_out = hbias[4:5, 0:1]                    # (1, 1)   fc_out bias

    cm = cmmv_ref[:, 0:N_CONCEPT]              # (N, F)  concept_matrix
    mv = cmmv_ref[:, N_CONCEPT:N_CONCEPT + 1]  # (N, 1)  market_value

    # ------------------ predefined concept module ------------------
    s2c = cm * mv                                                    # (N, F)
    s2c_sum = jnp.sum(s2c, axis=0, keepdims=True) * cm + 1.0         # (N, F)
    s2c = s2c / s2c_sum
    hidden = lax.dot_general(s2c, xh, (((0,), (0,)), ((), ())),
                             preferred_element_type=jnp.float32)     # (F, H)
    # rows with sum==0 are dropped in torch -> kept as a column mask here
    mask1 = _rowsum_as_row(hidden) != 0.0                            # (1, F)
    s2c2 = lax.dot_general(xh, hidden, (((1,), (1,)), ((), ())),
                           preferred_element_type=jnp.float32)       # (N, F)
    s2c2 = _softmax(s2c2, axis=0)                                    # softmax_s2t
    hidden = lax.dot_general(s2c2, xh, (((0,), (0,)), ((), ())),
                             preferred_element_type=jnp.float32)     # (F, H)
    c2s = _cos_sim(xh, hidden)                                       # (N, F)
    c2s = _softmax(jnp.where(mask1, c2s, NEG_BIG), axis=1)           # softmax_t2s
    e_pre = jnp.dot(c2s, hidden, preferred_element_type=jnp.float32)  # (N, H)
    eb_ef = jnp.dot(e_pre, w_es_pair,
                    preferred_element_type=jnp.float32) + b_es_pair  # (N, 2H)
    e_back = eb_ef[:, 0:H]                                           # fc_es_back(fc_es(.))
    out_es = _leaky_relu(eb_ef[:, H:2 * H])                          # fc_es_fore(fc_es(.))

    # ------------------ hidden (implicit) concept module ------------------
    i_shared = xh - e_back                                           # (N, H)
    sim = _cos_sim(i_shared, i_shared)                               # (N, N)
    ri = lax.broadcasted_iota(jnp.int32, (N, N), 0)
    ci = lax.broadcasted_iota(jnp.int32, (N, N), 1)
    eye = (ri == ci).astype(jnp.float32)
    diag_row = jnp.sum(sim * eye, axis=0, keepdims=True)             # (1, N) original diag
    sim_nd = sim * (1.0 - eye)                                       # zero diagonal
    maxv = jnp.max(sim_nd, axis=1, keepdims=True)                    # (N, 1)
    first_idx = jnp.min(jnp.where(sim_nd == maxv, ci, N),
                        axis=1, keepdims=True)                       # argmax (first index)
    sparse = (ci == first_idx).astype(jnp.float32) * maxv            # keep per-row max only
    keep = (jnp.sum(sparse, axis=0, keepdims=True) != 0.0).astype(jnp.float32)
    sim_final = sparse + eye * (keep * diag_row)                     # + diag_embed(...)
    hidden_i = lax.dot_general(sim_final, i_shared, (((0,), (0,)), ((), ())),
                               preferred_element_type=jnp.float32)   # (N, H)
    mask2 = _rowsum_as_row(hidden_i) != 0.0                          # (1, N)
    ic2s = _cos_sim(i_shared, hidden_i)                              # (N, N)
    ic2s = _softmax(jnp.where(mask2, ic2s, NEG_BIG), axis=1)
    i_pre = jnp.dot(ic2s, hidden_i, preferred_element_type=jnp.float32)
    ib_if = jnp.dot(i_pre, w_is_pair,
                    preferred_element_type=jnp.float32) + b_is_pair  # (N, 2H)
    i_back = ib_if[:, 0:H]                                           # fc_is_back(fc_is(.))
    out_is = _leaky_relu(ib_if[:, H:2 * H])                          # fc_is_fore(fc_is(.))

    # ------------------ individual module + fused output head ------------------
    indiv = xh - e_back - i_back
    out_indi = _leaky_relu(jnp.dot(indiv, w_indi,
                                   preferred_element_type=jnp.float32)
                           + b_indi)[:, 0:H]                         # fc_indi

    all_info = out_es + out_is + out_indi                            # (N, H)
    # lane-dense (1, N) prediction: contract H of w_out with H of all_info,
    # stocks land on the lane axis (no (N,1) masked partial stores).
    out_ref[...] = lax.dot_general(w_out, all_info,
                                   (((1,), (1,)), ((), ())),
                                   preferred_element_type=jnp.float32) + b_out


# ================================ wrapper ====================================
def hist_forward(x, concept_matrix, market_value, gru_slab, head_slab):
    N = x.shape[0]
    # torch: x.reshape(N, d_feat, T).permute(0, 2, 1) -> (N, T, D)
    # kernel wants time-major flattened (T*N, D_pad) so the layer-1 projection
    # is one matmul over all timesteps.
    x_seq = jnp.transpose(jnp.reshape(x, (N, D_FEAT, SEQ_LEN)), (2, 0, 1))   # (T, N, D)
    x_flat = jnp.reshape(x_seq, (SEQ_LEN * N, D_FEAT)).astype(jnp.float32)
    x_flat = jnp.pad(x_flat, ((0, 0), (0, D_PAD - D_FEAT)))                  # (T*N, 8)
    # pack concept_matrix + market_value into one (N, 16) slab (one DMA).
    cmmv = jnp.zeros((N, CMMV_W), jnp.float32)
    cmmv = cmmv.at[:, :N_CONCEPT].set(concept_matrix.astype(jnp.float32))
    cmmv = cmmv.at[:, N_CONCEPT].set(market_value.astype(jnp.float32))

    vmem = pl.BlockSpec(memory_space=pltpu.MemorySpace.VMEM)
    pred = pl.pallas_call(
        hist_kernel,
        out_shape=jax.ShapeDtypeStruct((1, N), jnp.float32),
        in_specs=[vmem, vmem, vmem, vmem],
        out_specs=vmem,
    )(x_flat, gru_slab, head_slab, cmmv)
    return pred[0, :]   # .squeeze()
    # TODO(synk): batching multiple samples onto a parallel grid axis (per-sample
    # BlockSpecs + constant weight index_map) would amortize launch/DMA overhead
    # and use both v7x TensorCores; kept single-sample to match the module call.


# ============================ deterministic params ===========================
def init_torch_params(key):
    """Random parameters in the PyTorch layouts (Linear: (out,in); GRU: (3H,in))."""
    H, D = HIDDEN, D_FEAT
    ks = jax.random.split(key, 24)

    def w(k, shape, fan_in):
        return jax.random.normal(k, shape, jnp.float32) / jnp.sqrt(jnp.float32(fan_in))

    return {
        # GRU, gate order [r | z | n]
        "w_ih_l0": w(ks[0], (3 * H, D), D), "w_hh_l0": w(ks[1], (3 * H, H), H),
        "b_ih_l0": w(ks[2], (3 * H,), H),   "b_hh_l0": w(ks[3], (3 * H,), H),
        "w_ih_l1": w(ks[4], (3 * H, H), H), "w_hh_l1": w(ks[5], (3 * H, H), H),
        "b_ih_l1": w(ks[6], (3 * H,), H),   "b_hh_l1": w(ks[7], (3 * H,), H),
        # head linears
        "fc_es_w": w(ks[8], (H, H), H),       "fc_es_b": w(ks[9], (H,), H),
        "fc_es_back_w": w(ks[10], (H, H), H), "fc_es_back_b": w(ks[11], (H,), H),
        "fc_es_fore_w": w(ks[12], (H, H), H), "fc_es_fore_b": w(ks[13], (H,), H),
        "fc_is_w": w(ks[14], (H, H), H),      "fc_is_b": w(ks[15], (H,), H),
        "fc_is_back_w": w(ks[16], (H, H), H), "fc_is_back_b": w(ks[17], (H,), H),
        "fc_is_fore_w": w(ks[18], (H, H), H), "fc_is_fore_b": w(ks[19], (H,), H),
        "fc_indi_w": w(ks[20], (H, H), H),    "fc_indi_b": w(ks[21], (H,), H),
        "fc_out_w": w(ks[22], (1, H), H),     "fc_out_b": w(ks[23], (1,), H),
    }


def pack_params(p):
    """Pack torch-layout params into the two kernel slabs (bias folding +
    fc_es/fc_is composition done offline, at zero numerical cost)."""
    H = HIDDEN
    f32 = jnp.float32

    def compose(w1, b1, w2, b2):
        # y = L2(L1(x)) with torch Linear layout -> y = x @ Wc + bc
        wc = w1.T @ w2.T                 # (in1, out2)
        bc = b1 @ w2.T + b2              # (out2,)
        return wc, bc

    # ---- GRU slab (112, 96): [Wih1_pad | Whh1 | Wih2 | Whh2 | bias block] ----
    wih1 = jnp.zeros((D_PAD, 3 * H), f32).at[:D_FEAT, :].set(p["w_ih_l0"].T)
    whh1 = p["w_hh_l0"].T
    wih2 = p["w_ih_l1"].T
    whh2 = p["w_hh_l1"].T
    zH = jnp.zeros((H,), f32)
    z2H = jnp.zeros((2 * H,), f32)
    b_gi1 = p["b_ih_l0"] + jnp.concatenate([p["b_hh_l0"][:2 * H], zH])
    b_hh1 = jnp.concatenate([z2H, p["b_hh_l0"][2 * H:]])
    b_gi2 = p["b_ih_l1"] + jnp.concatenate([p["b_hh_l1"][:2 * H], zH])
    b_hh2 = jnp.concatenate([z2H, p["b_hh_l1"][2 * H:]])
    bias_blk = (jnp.zeros((8, 3 * H), f32)
                .at[0].set(b_gi1).at[1].set(b_hh1)
                .at[2].set(b_gi2).at[3].set(b_hh2))
    gru_slab = jnp.concatenate([wih1, whh1, wih2, whh2, bias_blk], axis=0)   # (112, 96)

    # ---- head slab (104, 64): composed pairs + fc_indi + bias block ----
    w_esb, b_esb = compose(p["fc_es_w"], p["fc_es_b"], p["fc_es_back_w"], p["fc_es_back_b"])
    w_esf, b_esf = compose(p["fc_es_w"], p["fc_es_b"], p["fc_es_fore_w"], p["fc_es_fore_b"])
    w_isb, b_isb = compose(p["fc_is_w"], p["fc_is_b"], p["fc_is_back_w"], p["fc_is_back_b"])
    w_isf, b_isf = compose(p["fc_is_w"], p["fc_is_b"], p["fc_is_fore_w"], p["fc_is_fore_b"])
    w_es_pair = jnp.concatenate([w_esb, w_esf], axis=1)                      # (H, 2H)
    w_is_pair = jnp.concatenate([w_isb, w_isf], axis=1)                      # (H, 2H)
    w_indi = jnp.concatenate([p["fc_indi_w"].T, jnp.zeros((H, H), f32)], axis=1)
    hbias = (jnp.zeros((8, 2 * H), f32)
             .at[0].set(jnp.concatenate([b_esb, b_esf]))
             .at[1].set(jnp.concatenate([b_isb, b_isf]))
             .at[2, :H].set(p["fc_indi_b"])
             .at[3, :H].set(p["fc_out_w"][0])
             .at[4, 0].set(p["fc_out_b"][0]))
    head_slab = jnp.concatenate([w_es_pair, w_is_pair, w_indi, hbias], axis=0)  # (104, 64)

    return gru_slab, head_slab


# =================================== main ====================================
if __name__ == "__main__":
    key = jax.random.PRNGKey(0)
    k_par, k_x, k_cm, k_mv = jax.random.split(key, 4)

    params = init_torch_params(k_par)
    gru_slab, head_slab = pack_params(params)

    x = jax.random.normal(k_x, (N_STOCK, D_FEAT * SEQ_LEN), jnp.float32)
    concept_matrix = jax.random.bernoulli(k_cm, 0.4,
                                          (N_STOCK, N_CONCEPT)).astype(jnp.float32)
    market_value = jax.random.uniform(k_mv, (N_STOCK,), jnp.float32,
                                      minval=0.5, maxval=2.0)

    pred_all = hist_forward(x, concept_matrix, market_value, gru_slab, head_slab)
    jax.block_until_ready(pred_all)
    print("KERNEL_OK")
</pallas_src>

<mosaic_0001>
module attributes {stable_mosaic.version = 11 : i64} {
  func.func @hist_kernel(%arg0: memref<128x8xf32, #tpu.memory_space<vmem>>, %arg1: memref<112x96xf32, #tpu.memory_space<vmem>>, %arg2: memref<104x64xf32, #tpu.memory_space<vmem>>, %arg3: memref<16x16xf32, #tpu.memory_space<vmem>>, %arg4: memref<1x16xf32, #tpu.memory_space<vmem>>) attributes {dimension_semantics = [], scalar_prefetch = 0 : i64, scratch_operands = 0 : i64, tpu.core_type = #tpu.core_type<tc>} {
    %c0 = arith.constant 0 : index
    %c0_0 = arith.constant 0 : index
    %0 = vector.load %arg1[%c0, %c0_0] : memref<112x96xf32, #tpu.memory_space<vmem>>, vector<8x96xf32>
    %c8 = arith.constant 8 : index
    %c0_1 = arith.constant 0 : index
    %1 = vector.load %arg1[%c8, %c0_1] : memref<112x96xf32, #tpu.memory_space<vmem>>, vector<32x96xf32>
    %c40 = arith.constant 40 : index
    %c0_2 = arith.constant 0 : index
    %2 = vector.load %arg1[%c40, %c0_2] : memref<112x96xf32, #tpu.memory_space<vmem>>, vector<32x96xf32>
    %c72 = arith.constant 72 : index
    %c0_3 = arith.constant 0 : index
    %3 = vector.load %arg1[%c72, %c0_3] : memref<112x96xf32, #tpu.memory_space<vmem>>, vector<32x96xf32>
    %c104 = arith.constant 104 : index
    %c0_4 = arith.constant 0 : index
    %4 = vector.load %arg1[%c104, %c0_4] : memref<112x96xf32, #tpu.memory_space<vmem>>, vector<8x96xf32>
    %5 = vector.extract_strided_slice %4 {offsets = [0, 0], sizes = [1, 96], strides = [1, 1]} : vector<8x96xf32> to vector<1x96xf32>
    %6 = vector.extract_strided_slice %4 {offsets = [1, 64], sizes = [1, 32], strides = [1, 1]} : vector<8x96xf32> to vector<1x32xf32>
    %7 = vector.shape_cast %6 : vector<1x32xf32> to vector<1x32xf32>
    %8 = vector.broadcast %7 : vector<1x32xf32> to vector<16x32xf32>
    %9 = vector.extract_strided_slice %4 {offsets = [2, 0], sizes = [1, 96], strides = [1, 1]} : vector<8x96xf32> to vector<1x96xf32>
    %10 = vector.shape_cast %9 : vector<1x96xf32> to vector<1x96xf32>
    %11 = vector.broadcast %10 : vector<1x96xf32> to vector<16x96xf32>
    %12 = vector.extract_strided_slice %4 {offsets = [3, 64], sizes = [1, 32], strides = [1, 1]} : vector<8x96xf32> to vector<1x32xf32>
    %13 = vector.shape_cast %12 : vector<1x32xf32> to vector<1x32xf32>
    %14 = vector.broadcast %13 : vector<1x32xf32> to vector<16x32xf32>
    %c0_5 = arith.constant 0 : index
    %c0_6 = arith.constant 0 : index
    %15 = vector.load %arg0[%c0_5, %c0_6] : memref<128x8xf32, #tpu.memory_space<vmem>>, vector<128x8xf32>
    %cst = arith.constant dense<0.000000e+00> : vector<128x96xf32>
    %16 = tpu.matmul %15, %0, %cst {dimension_numbers = #tpu.dot_dimension_numbers<[1], [0], [0], [1], [0, 0, 1, 1], [], []>} : vector<128x8xf32>, vector<8x96xf32>, vector<128x96xf32> -> vector<128x96xf32>
    %17 = vector.broadcast %5 : vector<1x96xf32> to vector<128x96xf32>
    %18 = arith.addf %16, %17 : vector<128x96xf32>
    %cst_7 = arith.constant 0.000000e+00 : f32
    %19 = vector.broadcast %cst_7 : f32 to vector<16x32xf32>
    %cst_8 = arith.constant 0.000000e+00 : f32
    %20 = vector.broadcast %cst_8 : f32 to vector<16x32xf32>
    %21 = vector.extract_strided_slice %18 {offsets = [0, 0], sizes = [16, 96], strides = [1, 1]} : vector<128x96xf32> to vector<16x96xf32>
    %cst_9 = arith.constant dense<0.000000e+00> : vector<16x96xf32>
    %22 = tpu.matmul %19, %1, %cst_9 {dimension_numbers = #tpu.dot_dimension_numbers<[1], [0], [0], [1], [0, 0, 1, 1], [], []>} : vector<16x32xf32>, vector<32x96xf32>, vector<16x96xf32> -> vector<16x96xf32>
    %23 = vector.extract_strided_slice %21 {offsets = [0, 0], sizes = [16, 64], strides = [1, 1]} : vector<16x96xf32> to vector<16x64xf32>
    %24 = vector.extract_strided_slice %22 {offsets = [0, 0], sizes = [16, 64], strides = [1, 1]} : vector<16x96xf32> to vector<16x64xf32>
    %25 = arith.addf %23, %24 : vector<16x64xf32>
    %26 = arith.negf %25 : vector<16x64xf32>
    %27 = math.exp %26 : vector<16x64xf32>
    %cst_10 = arith.constant 1.000000e+00 : f32
    %28 = vector.broadcast %cst_10 : f32 to vector<16x64xf32>
    %29 = arith.addf %28, %27 : vector<16x64xf32>
    %30 = arith.divf %28, %29 : vector<16x64xf32>
    %31 = vector.extract_strided_slice %30 {offsets = [0, 0], sizes = [16, 32], strides = [1, 1]} : vector<16x64xf32> to vector<16x32xf32>
    %32 = vector.extract_strided_slice %30 {offsets = [0, 32], sizes = [16, 32], strides = [1, 1]} : vector<16x64xf32> to vector<16x32xf32>
    %33 = vector.extract_strided_slice %21 {offsets = [0, 64], sizes = [16, 32], strides = [1, 1]} : vector<16x96xf32> to vector<16x32xf32>
    %34 = vector.extract_strided_slice %22 {offsets = [0, 64], sizes = [16, 32], strides = [1, 1]} : vector<16x96xf32> to vector<16x32xf32>
    %35 = arith.addf %34, %8 : vector<16x32xf32>
    %36 = arith.mulf %31, %35 : vector<16x32xf32>
    %37 = arith.addf %33, %36 : vector<16x32xf32>
    %38 = math.tanh %37 : vector<16x32xf32>
    %cst_11 = arith.constant 1.000000e+00 : f32
    %39 = vector.broadcast %cst_11 : f32 to vector<16x32xf32>
    %40 = arith.subf %39, %32 : vector<16x32xf32>
    %41 = arith.mulf %40, %38 : vector<16x32xf32>
    %42 = arith.mulf %32, %19 : vector<16x32xf32>
    %43 = arith.addf %41, %42 : vector<16x32xf32>
    %cst_12 = arith.constant dense<0.000000e+00> : vector<16x96xf32>
    %44 = tpu.matmul %43, %2, %cst_12 {dimension_numbers = #tpu.dot_dimension_numbers<[1], [0], [0], [1], [0, 0, 1, 1], [], []>} : vector<16x32xf32>, vector<32x96xf32>, vector<16x96xf32> -> vector<16x96xf32>
    %45 = arith.addf %44, %11 : vector<16x96xf32>
    %cst_13 = arith.constant dense<0.000000e+00> : vector<16x96xf32>
    %46 = tpu.matmul %20, %3, %cst_13 {dimension_numbers = #tpu.dot_dimension_numbers<[1], [0], [0], [1], [0, 0, 1, 1], [], []>} : vector<16x32xf32>, vector<32x96xf32>, vector<16x96xf32> -> vector<16x96xf32>
    %47 = vector.extract_strided_slice %45 {offsets = [0, 0], sizes = [16, 64], strides = [1, 1]} : vector<16x96xf32> to vector<16x64xf32>
    %48 = vector.extract_strided_slice %46 {offsets = [0, 0], sizes = [16, 64], strides = [1, 1]} : vector<16x96xf32> to vector<16x64xf32>
    %49 = arith.addf %47, %48 : vector<16x64xf32>
    %50 = arith.negf %49 : vector<16x64xf32>
    %51 = math.exp %50 : vector<16x64xf32>
    %cst_14 = arith.constant 1.000000e+00 : f32
    %52 = vector.broadcast %cst_14 : f32 to vector<16x64xf32>
    %53 = arith.addf %52, %51 : vector<16x64xf32>
    %54 = arith.divf %52, %53 : vector<16x64xf32>
    %55 = vector.extract_strided_slice %54 {offsets = [0, 0], sizes = [16, 32], strides = [1, 1]} : vector<16x64xf32> to vector<16x32xf32>
    %56 = vector.extract_strided_slice %54 {offsets = [0, 32], sizes = [16, 32], strides = [1, 1]} : vector<16x64xf32> to vector<16x32xf32>
    %57 = vector.extract_strided_slice %45 {offsets = [0, 64], sizes = [16, 32], strides = [1, 1]} : vector<16x96xf32> to vector<16x32xf32>
    %58 = vector.extract_strided_slice %46 {offsets = [0, 64], sizes = [16, 32], strides = [1, 1]} : vector<16x96xf32> to vector<16x32xf32>
    %59 = arith.addf %58, %14 : vector<16x32xf32>
    %60 = arith.mulf %55, %59 : vector<16x32xf32>
    %61 = arith.addf %57, %60 : vector<16x32xf32>
    %62 = math.tanh %61 : vector<16x32xf32>
    %cst_15 = arith.constant 1.000000e+00 : f32
    %63 = vector.broadcast %cst_15 : f32 to vector<16x32xf32>
    %64 = arith.subf %63, %56 : vector<16x32xf32>
    %65 = arith.mulf %64, %62 : vector<16x32xf32>
    %66 = arith.mulf %56, %20 : vector<16x32xf32>
    %67 = arith.addf %65, %66 : vector<16x32xf32>
    %68 = vector.extract_strided_slice %18 {offsets = [16, 0], sizes = [16, 96], strides = [1, 1]} : vector<128x96xf32> to vector<16x96xf32>
    %cst_16 = arith.constant dense<0.000000e+00> : vector<16x96xf32>
    %69 = tpu.matmul %43, %1, %cst_16 {dimension_numbers = #tpu.dot_dimension_numbers<[1], [0], [0], [1], [0, 0, 1, 1], [], []>} : vector<16x32xf32>, vector<32x96xf32>, vector<16x96xf32> -> vector<16x96xf32>
    %70 = vector.extract_strided_slice %68 {offsets = [0, 0], sizes = [16, 64], strides = [1, 1]} : vector<16x96xf32> to vector<16x64xf32>
    %71 = vector.extract_strided_slice %69 {offsets = [0, 0], sizes = [16, 64], strides = [1, 1]} : vector<16x96xf32> to vector<16x64xf32>
    %72 = arith.addf %70, %71 : vector<16x64xf32>
    %73 = arith.negf %72 : vector<16x64xf32>
    %74 = math.exp %73 : vector<16x64xf32>
    %cst_17 = arith.constant 1.000000e+00 : f32
    %75 = vector.broadcast %cst_17 : f32 to vector<16x64xf32>
    %76 = arith.addf %75, %74 : vector<16x64xf32>
    %77 = arith.divf %75, %76 : vector<16x64xf32>
    %78 = vector.extract_strided_slice %77 {offsets = [0, 0], sizes = [16, 32], strides = [1, 1]} : vector<16x64xf32> to vector<16x32xf32>
    %79 = vector.extract_strided_slice %77 {offsets = [0, 32], sizes = [16, 32], strides = [1, 1]} : vector<16x64xf32> to vector<16x32xf32>
    %80 = vector.extract_strided_slice %68 {offsets = [0, 64], sizes = [16, 32], strides = [1, 1]} : vector<16x96xf32> to vector<16x32xf32>
    %81 = vector.extract_strided_slice %69 {offsets = [0, 64], sizes = [16, 32], strides = [1, 1]} : vector<16x96xf32> to vector<16x32xf32>
    %82 = arith.addf %81, %8 : vector<16x32xf32>
    %83 = arith.mulf %78, %82 : vector<16x32xf32>
    %84 = arith.addf %80, %83 : vector<16x32xf32>
    %85 = math.tanh %84 : vector<16x32xf32>
    %cst_18 = arith.constant 1.000000e+00 : f32
    %86 = vector.broadcast %cst_18 : f32 to vector<16x32xf32>
    %87 = arith.subf %86, %79 : vector<16x32xf32>
    %88 = arith.mulf %87, %85 : vector<16x32xf32>
    %89 = arith.mulf %79, %43 : vector<16x32xf32>
    %90 = arith.addf %88, %89 : vector<16x32xf32>
    %cst_19 = arith.constant dense<0.000000e+00> : vector<16x96xf32>
    %91 = tpu.matmul %90, %2, %cst_19 {dimension_numbers = #tpu.dot_dimension_numbers<[1], [0], [0], [1], [0, 0, 1, 1], [], []>} : vector<16x32xf32>, vector<32x96xf32>, vector<16x96xf32> -> vector<16x96xf32>
    %92 = arith.addf %91, %11 : vector<16x96xf32>
    %cst_20 = arith.constant dense<0.000000e+00> : vector<16x96xf32>
    %93 = tpu.matmul %67, %3, %cst_20 {dimension_numbers = #tpu.dot_dimension_numbers<[1], [0], [0], [1], [0, 0, 1, 1], [], []>} : vector<16x32xf32>, vector<32x96xf32>, vector<16x96xf32> -> vector<16x96xf32>
    %94 = vector.extract_strided_slice %92 {offsets = [0, 0], sizes = [16, 64], strides = [1, 1]} : vector<16x96xf32> to vector<16x64xf32>
    %95 = vector.extract_strided_slice %93 {offsets = [0, 0], sizes = [16, 64], strides = [1, 1]} : vector<16x96xf32> to vector<16x64xf32>
    %96 = arith.addf %94, %95 : vector<16x64xf32>
    %97 = arith.negf %96 : vector<16x64xf32>
    %98 = math.exp %97 : vector<16x64xf32>
    %cst_21 = arith.constant 1.000000e+00 : f32
    %99 = vector.broadcast %cst_21 : f32 to vector<16x64xf32>
    %100 = arith.addf %99, %98 : vector<16x64xf32>
    %101 = arith.divf %99, %100 : vector<16x64xf32>
    %102 = vector.extract_strided_slice %101 {offsets = [0, 0], sizes = [16, 32], strides = [1, 1]} : vector<16x64xf32> to vector<16x32xf32>
    %103 = vector.extract_strided_slice %101 {offsets = [0, 32], sizes = [16, 32], strides = [1, 1]} : vector<16x64xf32> to vector<16x32xf32>
    %104 = vector.extract_strided_slice %92 {offsets = [0, 64], sizes = [16, 32], strides = [1, 1]} : vector<16x96xf32> to vector<16x32xf32>
    %105 = vector.extract_strided_slice %93 {offsets = [0, 64], sizes = [16, 32], strides = [1, 1]} : vector<16x96xf32> to vector<16x32xf32>
    %106 = arith.addf %105, %14 : vector<16x32xf32>
    %107 = arith.mulf %102, %106 : vector<16x32xf32>
    %108 = arith.addf %104, %107 : vector<16x32xf32>
    %109 = math.tanh %108 : vector<16x32xf32>
    %cst_22 = arith.constant 1.000000e+00 : f32
    %110 = vector.broadcast %cst_22 : f32 to vector<16x32xf32>
    %111 = arith.subf %110, %103 : vector<16x32xf32>
    %112 = arith.mulf %111, %109 : vector<16x32xf32>
    %113 = arith.mulf %103, %67 : vector<16x32xf32>
    %114 = arith.addf %112, %113 : vector<16x32xf32>
    %115 = vector.extract_strided_slice %18 {offsets = [32, 0], sizes = [16, 96], strides = [1, 1]} : vector<128x96xf32> to vector<16x96xf32>
    %cst_23 = arith.constant dense<0.000000e+00> : vector<16x96xf32>
    %116 = tpu.matmul %90, %1, %cst_23 {dimension_numbers = #tpu.dot_dimension_numbers<[1], [0], [0], [1], [0, 0, 1, 1], [], []>} : vector<16x32xf32>, vector<32x96xf32>, vector<16x96xf32> -> vector<16x96xf32>
    %117 = vector.extract_strided_slice %115 {offsets = [0, 0], sizes = [16, 64], strides = [1, 1]} : vector<16x96xf32> to vector<16x64xf32>
    %118 = vector.extract_strided_slice %116 {offsets = [0, 0], sizes = [16, 64], strides = [1, 1]} : vector<16x96xf32> to vector<16x64xf32>
    %119 = arith.addf %117, %118 : vector<16x64xf32>
    %120 = arith.negf %119 : vector<16x64xf32>
    %121 = math.exp %120 : vector<16x64xf32>
    %cst_24 = arith.constant 1.000000e+00 : f32
    %122 = vector.broadcast %cst_24 : f32 to vector<16x64xf32>
    %123 = arith.addf %122, %121 : vector<16x64xf32>
    %124 = arith.divf %122, %123 : vector<16x64xf32>
    %125 = vector.extract_strided_slice %124 {offsets = [0, 0], sizes = [16, 32], strides = [1, 1]} : vector<16x64xf32> to vector<16x32xf32>
    %126 = vector.extract_strided_slice %124 {offsets = [0, 32], sizes = [16, 32], strides = [1, 1]} : vector<16x64xf32> to vector<16x32xf32>
    %127 = vector.extract_strided_slice %115 {offsets = [0, 64], sizes = [16, 32], strides = [1, 1]} : vector<16x96xf32> to vector<16x32xf32>
    %128 = vector.extract_strided_slice %116 {offsets = [0, 64], sizes = [16, 32], strides = [1, 1]} : vector<16x96xf32> to vector<16x32xf32>
    %129 = arith.addf %128, %8 : vector<16x32xf32>
    %130 = arith.mulf %125, %129 : vector<16x32xf32>
    %131 = arith.addf %127, %130 : vector<16x32xf32>
    %132 = math.tanh %131 : vector<16x32xf32>
    %cst_25 = arith.constant 1.000000e+00 : f32
    %133 = vector.broadcast %cst_25 : f32 to vector<16x32xf32>
    %134 = arith.subf %133, %126 : vector<16x32xf32>
    %135 = arith.mulf %134, %132 : vector<16x32xf32>
    %136 = arith.mulf %126, %90 : vector<16x32xf32>
    %137 = arith.addf %135, %136 : vector<16x32xf32>
    %cst_26 = arith.constant dense<0.000000e+00> : vector<16x96xf32>
    %138 = tpu.matmul %137, %2, %cst_26 {dimension_numbers = #tpu.dot_dimension_numbers<[1], [0], [0], [1], [0, 0, 1, 1], [], []>} : vector<16x32xf32>, vector<32x96xf32>, vector<16x96xf32> -> vector<16x96xf32>
    %139 = arith.addf %138, %11 : vector<16x96xf32>
    %cst_27 = arith.constant dense<0.000000e+00> : vector<16x96xf32>
    %140 = tpu.matmul %114, %3, %cst_27 {dimension_numbers = #tpu.dot_dimension_numbers<[1], [0], [0], [1], [0, 0, 1, 1], [], []>} : vector<16x32xf32>, vector<32x96xf32>, vector<16x96xf32> -> vector<16x96xf32>
    %141 = vector.extract_strided_slice %139 {offsets = [0, 0], sizes = [16, 64], strides = [1, 1]} : vector<16x96xf32> to vector<16x64xf32>
    %142 = vector.extract_strided_slice %140 {offsets = [0, 0], sizes = [16, 64], strides = [1, 1]} : vector<16x96xf32> to vector<16x64xf32>
    %143 = arith.addf %141, %142 : vector<16x64xf32>
    %144 = arith.negf %143 : vector<16x64xf32>
    %145 = math.exp %144 : vector<16x64xf32>
    %cst_28 = arith.constant 1.000000e+00 : f32
    %146 = vector.broadcast %cst_28 : f32 to vector<16x64xf32>
    %147 = arith.addf %146, %145 : vector<16x64xf32>
    %148 = arith.divf %146, %147 : vector<16x64xf32>
    %149 = vector.extract_strided_slice %148 {offsets = [0, 0], sizes = [16, 32], strides = [1, 1]} : vector<16x64xf32> to vector<16x32xf32>
    %150 = vector.extract_strided_slice %148 {offsets = [0, 32], sizes = [16, 32], strides = [1, 1]} : vector<16x64xf32> to vector<16x32xf32>
    %151 = vector.extract_strided_slice %139 {offsets = [0, 64], sizes = [16, 32], strides = [1, 1]} : vector<16x96xf32> to vector<16x32xf32>
    %152 = vector.extract_strided_slice %140 {offsets = [0, 64], sizes = [16, 32], strides = [1, 1]} : vector<16x96xf32> to vector<16x32xf32>
    %153 = arith.addf %152, %14 : vector<16x32xf32>
    %154 = arith.mulf %149, %153 : vector<16x32xf32>
    %155 = arith.addf %151, %154 : vector<16x32xf32>
    %156 = math.tanh %155 : vector<16x32xf32>
    %cst_29 = arith.constant 1.000000e+00 : f32
    %157 = vector.broadcast %cst_29 : f32 to vector<16x32xf32>
    %158 = arith.subf %157, %150 : vector<16x32xf32>
    %159 = arith.mulf %158, %156 : vector<16x32xf32>
    %160 = arith.mulf %150, %114 : vector<16x32xf32>
    %161 = arith.addf %159, %160 : vector<16x32xf32>
    %162 = vector.extract_strided_slice %18 {offsets = [48, 0], sizes = [16, 96], strides = [1, 1]} : vector<128x96xf32> to vector<16x96xf32>
    %cst_30 = arith.constant dense<0.000000e+00> : vector<16x96xf32>
    %163 = tpu.matmul %137, %1, %cst_30 {dimension_numbers = #tpu.dot_dimension_numbers<[1], [0], [0], [1], [0, 0, 1, 1], [], []>} : vector<16x32xf32>, vector<32x96xf32>, vector<16x96xf32> -> vector<16x96xf32>
    %164 = vector.extract_strided_slice %162 {offsets = [0, 0], sizes = [16, 64], strides = [1, 1]} : vector<16x96xf32> to vector<16x64xf32>
    %165 = vector.extract_strided_slice %163 {offsets = [0, 0], sizes = [16, 64], strides = [1, 1]} : vector<16x96xf32> to vector<16x64xf32>
    %166 = arith.addf %164, %165 : vector<16x64xf32>
    %167 = arith.negf %166 : vector<16x64xf32>
    %168 = math.exp %167 : vector<16x64xf32>
    %cst_31 = arith.constant 1.000000e+00 : f32
    %169 = vector.broadcast %cst_31 : f32 to vector<16x64xf32>
    %170 = arith.addf %169, %168 : vector<16x64xf32>
    %171 = arith.divf %169, %170 : vector<16x64xf32>
    %172 = vector.extract_strided_slice %171 {offsets = [0, 0], sizes = [16, 32], strides = [1, 1]} : vector<16x64xf32> to vector<16x32xf32>
    %173 = vector.extract_strided_slice %171 {offsets = [0, 32], sizes = [16, 32], strides = [1, 1]} : vector<16x64xf32> to vector<16x32xf32>
    %174 = vector.extract_strided_slice %162 {offsets = [0, 64], sizes = [16, 32], strides = [1, 1]} : vector<16x96xf32> to vector<16x32xf32>
    %175 = vector.extract_strided_slice %163 {offsets = [0, 64], sizes = [16, 32], strides = [1, 1]} : vector<16x96xf32> to vector<16x32xf32>
    %176 = arith.addf %175, %8 : vector<16x32xf32>
    %177 = arith.mulf %172, %176 : vector<16x32xf32>
    %178 = arith.addf %174, %177 : vector<16x32xf32>
    %179 = math.tanh %178 : vector<16x32xf32>
    %cst_32 = arith.constant 1.000000e+00 : f32
    %180 = vector.broadcast %cst_32 : f32 to vector<16x32xf32>
    %181 = arith.subf %180, %173 : vector<16x32xf32>
    %182 = arith.mulf %181, %179 : vector<16x32xf32>
    %183 = arith.mulf %173, %137 : vector<16x32xf32>
    %184 = arith.addf %182, %183 : vector<16x32xf32>
    %cst_33 = arith.constant dense<0.000000e+00> : vector<16x96xf32>
    %185 = tpu.matmul %184, %2, %cst_33 {dimension_numbers = #tpu.dot_dimension_numbers<[1], [0], [0], [1], [0, 0, 1, 1], [], []>} : vector<16x32xf32>, vector<32x96xf32>, vector<16x96xf32> -> vector<16x96xf32>
    %186 = arith.addf %185, %11 : vector<16x96xf32>
    %cst_34 = arith.constant dense<0.000000e+00> : vector<16x96xf32>
    %187 = tpu.matmul %161, %3, %cst_34 {dimension_numbers = #tpu.dot_dimension_numbers<[1], [0], [0], [1], [0, 0, 1, 1], [], []>} : vector<16x32xf32>, vector<32x96xf32>, vector<16x96xf32> -> vector<16x96xf32>
    %188 = vector.extract_strided_slice %186 {offsets = [0, 0], sizes = [16, 64], strides = [1, 1]} : vector<16x96xf32> to vector<16x64xf32>
    %189 = vector.extract_strided_slice %187 {offsets = [0, 0], sizes = [16, 64], strides = [1, 1]} : vector<16x96xf32> to vector<16x64xf32>
    %190 = arith.addf %188, %189 : vector<16x64xf32>
    %191 = arith.negf %190 : vector<16x64xf32>
    %192 = math.exp %191 : vector<16x64xf32>
    %cst_35 = arith.constant 1.000000e+00 : f32
    %193 = vector.broadcast %cst_35 : f32 to vector<16x64xf32>
    %194 = arith.addf %193, %192 : vector<16x64xf32>
    %195 = arith.divf %193, %194 : vector<16x64xf32>
    %196 = vector.extract_strided_slice %195 {offsets = [0, 0], sizes = [16, 32], strides = [1, 1]} : vector<16x64xf32> to vector<16x32xf32>
    %197 = vector.extract_strided_slice %195 {offsets = [0, 32], sizes = [16, 32], strides = [1, 1]} : vector<16x64xf32> to vector<16x32xf32>
    %198 = vector.extract_strided_slice %186 {offsets = [0, 64], sizes = [16, 32], strides = [1, 1]} : vector<16x96xf32> to vector<16x32xf32>
    %199 = vector.extract_strided_slice %187 {offsets = [0, 64], sizes = [16, 32], strides = [1, 1]} : vector<16x96xf32> to vector<16x32xf32>
    %200 = arith.addf %199, %14 : vector<16x32xf32>
    %201 = arith.mulf %196, %200 : vector<16x32xf32>
    %202 = arith.addf %198, %201 : vector<16x32xf32>
    %203 = math.tanh %202 : vector<16x32xf32>
    %cst_36 = arith.constant 1.000000e+00 : f32
    %204 = vector.broadcast %cst_36 : f32 to vector<16x32xf32>
    %205 = arith.subf %204, %197 : vector<16x32xf32>
    %206 = arith.mulf %205, %203 : vector<16x32xf32>
    %207 = arith.mulf %197, %161 : vector<16x32xf32>
    %208 = arith.addf %206, %207 : vector<16x32xf32>
    %209 = vector.extract_strided_slice %18 {offsets = [64, 0], sizes = [16, 96], strides = [1, 1]} : vector<128x96xf32> to vector<16x96xf32>
    %cst_37 = arith.constant dense<0.000000e+00> : vector<16x96xf32>
    %210 = tpu.matmul %184, %1, %cst_37 {dimension_numbers = #tpu.dot_dimension_numbers<[1], [0], [0], [1], [0, 0, 1, 1], [], []>} : vector<16x32xf32>, vector<32x96xf32>, vector<16x96xf32> -> vector<16x96xf32>
    %211 = vector.extract_strided_slice %209 {offsets = [0, 0], sizes = [16, 64], strides = [1, 1]} : vector<16x96xf32> to vector<16x64xf32>
    %212 = vector.extract_strided_slice %210 {offsets = [0, 0], sizes = [16, 64], strides = [1, 1]} : vector<16x96xf32> to vector<16x64xf32>
    %213 = arith.addf %211, %212 : vector<16x64xf32>
    %214 = arith.negf %213 : vector<16x64xf32>
    %215 = math.exp %214 : vector<16x64xf32>
    %cst_38 = arith.constant 1.000000e+00 : f32
    %216 = vector.broadcast %cst_38 : f32 to vector<16x64xf32>
    %217 = arith.addf %216, %215 : vector<16x64xf32>
    %218 = arith.divf %216, %217 : vector<16x64xf32>
    %219 = vector.extract_strided_slice %218 {offsets = [0, 0], sizes = [16, 32], strides = [1, 1]} : vector<16x64xf32> to vector<16x32xf32>
    %220 = vector.extract_strided_slice %218 {offsets = [0, 32], sizes = [16, 32], strides = [1, 1]} : vector<16x64xf32> to vector<16x32xf32>
    %221 = vector.extract_strided_slice %209 {offsets = [0, 64], sizes = [16, 32], strides = [1, 1]} : vector<16x96xf32> to vector<16x32xf32>
    %222 = vector.extract_strided_slice %210 {offsets = [0, 64], sizes = [16, 32], strides = [1, 1]} : vector<16x96xf32> to vector<16x32xf32>
    %223 = arith.addf %222, %8 : vector<16x32xf32>
    %224 = arith.mulf %219, %223 : vector<16x32xf32>
    %225 = arith.addf %221, %224 : vector<16x32xf32>
    %226 = math.tanh %225 : vector<16x32xf32>
    %cst_39 = arith.constant 1.000000e+00 : f32
    %227 = vector.broadcast %cst_39 : f32 to vector<16x32xf32>
    %228 = arith.subf %227, %220 : vector<16x32xf32>
    %229 = arith.mulf %228, %226 : vector<16x32xf32>
    %230 = arith.mulf %220, %184 : vector<16x32xf32>
    %231 = arith.addf %229, %230 : vector<16x32xf32>
    %cst_40 = arith.constant dense<0.000000e+00> : vector<16x96xf32>
    %232 = tpu.matmul %231, %2, %cst_40 {dimension_numbers = #tpu.dot_dimension_numbers<[1], [0], [0], [1], [0, 0, 1, 1], [], []>} : vector<16x32xf32>, vector<32x96xf32>, vector<16x96xf32> -> vector<16x96xf32>
    %233 = arith.addf %232, %11 : vector<16x96xf32>
    %cst_41 = arith.constant dense<0.000000e+00> : vector<16x96xf32>
    %234 = tpu.matmul %208, %3, %cst_41 {dimension_numbers = #tpu.dot_dimension_numbers<[1], [0], [0], [1], [0, 0, 1, 1], [], []>} : vector<16x32xf32>, vector<32x96xf32>, vector<16x96xf32> -> vector<16x96xf32>
    %235 = vector.extract_strided_slice %233 {offsets = [0, 0], sizes = [16, 64], strides = [1, 1]} : vector<16x96xf32> to vector<16x64xf32>
    %236 = vector.extract_strided_slice %234 {offsets = [0, 0], sizes = [16, 64], strides = [1, 1]} : vector<16x96xf32> to vector<16x64xf32>
    %237 = arith.addf %235, %236 : vector<16x64xf32>
    %238 = arith.negf %237 : vector<16x64xf32>
    %239 = math.exp %238 : vector<16x64xf32>
    %cst_42 = arith.constant 1.000000e+00 : f32
    %240 = vector.broadcast %cst_42 : f32 to vector<16x64xf32>
    %241 = arith.addf %240, %239 : vector<16x64xf32>
    %242 = arith.divf %240, %241 : vector<16x64xf32>
    %243 = vector.extract_strided_slice %242 {offsets = [0, 0], sizes = [16, 32], strides = [1, 1]} : vector<16x64xf32> to vector<16x32xf32>
    %244 = vector.extract_strided_slice %242 {offsets = [0, 32], sizes = [16, 32], strides = [1, 1]} : vector<16x64xf32> to vector<16x32xf32>
    %245 = vector.extract_strided_slice %233 {offsets = [0, 64], sizes = [16, 32], strides = [1, 1]} : vector<16x96xf32> to vector<16x32xf32>
    %246 = vector.extract_strided_slice %234 {offsets = [0, 64], sizes = [16, 32], strides = [1, 1]} : vector<16x96xf32> to vector<16x32xf32>
    %247 = arith.addf %246, %14 : vector<16x32xf32>
    %248 = arith.mulf %243, %247 : vector<16x32xf32>
    %249 = arith.addf %245, %248 : vector<16x32xf32>
    %250 = math.tanh %249 : vector<16x32xf32>
    %cst_43 = arith.constant 1.000000e+00 : f32
    %251 = vector.broadcast %cst_43 : f32 to vector<16x32xf32>
    %252 = arith.subf %251, %244 : vector<16x32xf32>
    %253 = arith.mulf %252, %250 : vector<16x32xf32>
    %254 = arith.mulf %244, %208 : vector<16x32xf32>
    %255 = arith.addf %253, %254 : vector<16x32xf32>
    %256 = vector.extract_strided_slice %18 {offsets = [80, 0], sizes = [16, 96], strides = [1, 1]} : vector<128x96xf32> to vector<16x96xf32>
    %cst_44 = arith.constant dense<0.000000e+00> : vector<16x96xf32>
    %257 = tpu.matmul %231, %1, %cst_44 {dimension_numbers = #tpu.dot_dimension_numbers<[1], [0], [0], [1], [0, 0, 1, 1], [], []>} : vector<16x32xf32>, vector<32x96xf32>, vector<16x96xf32> -> vector<16x96xf32>
    %258 = vector.extract_strided_slice %256 {offsets = [0, 0], sizes = [16, 64], strides = [1, 1]} : vector<16x96xf32> to vector<16x64xf32>
    %259 = vector.extract_strided_slice %257 {offsets = [0, 0], sizes = [16, 64], strides = [1, 1]} : vector<16x96xf32> to vector<16x64xf32>
    %260 = arith.addf %258, %259 : vector<16x64xf32>
    %261 = arith.negf %260 : vector<16x64xf32>
    %262 = math.exp %261 : vector<16x64xf32>
    %cst_45 = arith.constant 1.000000e+00 : f32
    %263 = vector.broadcast %cst_45 : f32 to vector<16x64xf32>
    %264 = arith.addf %263, %262 : vector<16x64xf32>
    %265 = arith.divf %263, %264 : vector<16x64xf32>
    %266 = vector.extract_strided_slice %265 {offsets = [0, 0], sizes = [16, 32], strides = [1, 1]} : vector<16x64xf32> to vector<16x32xf32>
    %267 = vector.extract_strided_slice %265 {offsets = [0, 32], sizes = [16, 32], strides = [1, 1]} : vector<16x64xf32> to vector<16x32xf32>
    %268 = vector.extract_strided_slice %256 {offsets = [0, 64], sizes = [16, 32], strides = [1, 1]} : vector<16x96xf32> to vector<16x32xf32>
    %269 = vector.extract_strided_slice %257 {offsets = [0, 64], sizes = [16, 32], strides = [1, 1]} : vector<16x96xf32> to vector<16x32xf32>
    %270 = arith.addf %269, %8 : vector<16x32xf32>
    %271 = arith.mulf %266, %270 : vector<16x32xf32>
    %272 = arith.addf %268, %271 : vector<16x32xf32>
    %273 = math.tanh %272 : vector<16x32xf32>
    %cst_46 = arith.constant 1.000000e+00 : f32
    %274 = vector.broadcast %cst_46 : f32 to vector<16x32xf32>
    %275 = arith.subf %274, %267 : vector<16x32xf32>
    %276 = arith.mulf %275, %273 : vector<16x32xf32>
    %277 = arith.mulf %267, %231 : vector<16x32xf32>
    %278 = arith.addf %276, %277 : vector<16x32xf32>
    %cst_47 = arith.constant dense<0.000000e+00> : vector<16x96xf32>
    %279 = tpu.matmul %278, %2, %cst_47 {dimension_numbers = #tpu.dot_dimension_numbers<[1], [0], [0], [1], [0, 0, 1, 1], [], []>} : vector<16x32xf32>, vector<32x96xf32>, vector<16x96xf32> -> vector<16x96xf32>
    %280 = arith.addf %279, %11 : vector<16x96xf32>
    %cst_48 = arith.constant dense<0.000000e+00> : vector<16x96xf32>
    %281 = tpu.matmul %255, %3, %cst_48 {dimension_numbers = #tpu.dot_dimension_numbers<[1], [0], [0], [1], [0, 0, 1, 1], [], []>} : vector<16x32xf32>, vector<32x96xf32>, vector<16x96xf32> -> vector<16x96xf32>
    %282 = vector.extract_strided_slice %280 {offsets = [0, 0], sizes = [16, 64], strides = [1, 1]} : vector<16x96xf32> to vector<16x64xf32>
    %283 = vector.extract_strided_slice %281 {offsets = [0, 0], sizes = [16, 64], strides = [1, 1]} : vector<16x96xf32> to vector<16x64xf32>
    %284 = arith.addf %282, %283 : vector<16x64xf32>
    %285 = arith.negf %284 : vector<16x64xf32>
    %286 = math.exp %285 : vector<16x64xf32>
    %cst_49 = arith.constant 1.000000e+00 : f32
    %287 = vector.broadcast %cst_49 : f32 to vector<16x64xf32>
    %288 = arith.addf %287, %286 : vector<16x64xf32>
    %289 = arith.divf %287, %288 : vector<16x64xf32>
    %290 = vector.extract_strided_slice %289 {offsets = [0, 0], sizes = [16, 32], strides = [1, 1]} : vector<16x64xf32> to vector<16x32xf32>
    %291 = vector.extract_strided_slice %289 {offsets = [0, 32], sizes = [16, 32], strides = [1, 1]} : vector<16x64xf32> to vector<16x32xf32>
    %292 = vector.extract_strided_slice %280 {offsets = [0, 64], sizes = [16, 32], strides = [1, 1]} : vector<16x96xf32> to vector<16x32xf32>
    %293 = vector.extract_strided_slice %281 {offsets = [0, 64], sizes = [16, 32], strides = [1, 1]} : vector<16x96xf32> to vector<16x32xf32>
    %294 = arith.addf %293, %14 : vector<16x32xf32>
    %295 = arith.mulf %290, %294 : vector<16x32xf32>
    %296 = arith.addf %292, %295 : vector<16x32xf32>
    %297 = math.tanh %296 : vector<16x32xf32>
    %cst_50 = arith.constant 1.000000e+00 : f32
    %298 = vector.broadcast %cst_50 : f32 to vector<16x32xf32>
    %299 = arith.subf %298, %291 : vector<16x32xf32>
    %300 = arith.mulf %299, %297 : vector<16x32xf32>
    %301 = arith.mulf %291, %255 : vector<16x32xf32>
    %302 = arith.addf %300, %301 : vector<16x32xf32>
    %303 = vector.extract_strided_slice %18 {offsets = [96, 0], sizes = [16, 96], strides = [1, 1]} : vector<128x96xf32> to vector<16x96xf32>
    %cst_51 = arith.constant dense<0.000000e+00> : vector<16x96xf32>
    %304 = tpu.matmul %278, %1, %cst_51 {dimension_numbers = #tpu.dot_dimension_numbers<[1], [0], [0], [1], [0, 0, 1, 1], [], []>} : vector<16x32xf32>, vector<32x96xf32>, vector<16x96xf32> -> vector<16x96xf32>
    %305 = vector.extract_strided_slice %303 {offsets = [0, 0], sizes = [16, 64], strides = [1, 1]} : vector<16x96xf32> to vector<16x64xf32>
    %306 = vector.extract_strided_slice %304 {offsets = [0, 0], sizes = [16, 64], strides = [1, 1]} : vector<16x96xf32> to vector<16x64xf32>
    %307 = arith.addf %305, %306 : vector<16x64xf32>
    %308 = arith.negf %307 : vector<16x64xf32>
    %309 = math.exp %308 : vector<16x64xf32>
    %cst_52 = arith.constant 1.000000e+00 : f32
    %310 = vector.broadcast %cst_52 : f32 to vector<16x64xf32>
    %311 = arith.addf %310, %309 : vector<16x64xf32>
    %312 = arith.divf %310, %311 : vector<16x64xf32>
    %313 = vector.extract_strided_slice %312 {offsets = [0, 0], sizes = [16, 32], strides = [1, 1]} : vector<16x64xf32> to vector<16x32xf32>
    %314 = vector.extract_strided_slice %312 {offsets = [0, 32], sizes = [16, 32], strides = [1, 1]} : vector<16x64xf32> to vector<16x32xf32>
    %315 = vector.extract_strided_slice %303 {offsets = [0, 64], sizes = [16, 32], strides = [1, 1]} : vector<16x96xf32> to vector<16x32xf32>
    %316 = vector.extract_strided_slice %304 {offsets = [0, 64], sizes = [16, 32], strides = [1, 1]} : vector<16x96xf32> to vector<16x32xf32>
    %317 = arith.addf %316, %8 : vector<16x32xf32>
    %318 = arith.mulf %313, %317 : vector<16x32xf32>
    %319 = arith.addf %315, %318 : vector<16x32xf32>
    %320 = math.tanh %319 : vector<16x32xf32>
    %cst_53 = arith.constant 1.000000e+00 : f32
    %321 = vector.broadcast %cst_53 : f32 to vector<16x32xf32>
    %322 = arith.subf %321, %314 : vector<16x32xf32>
    %323 = arith.mulf %322, %320 : vector<16x32xf32>
    %324 = arith.mulf %314, %278 : vector<16x32xf32>
    %325 = arith.addf %323, %324 : vector<16x32xf32>
    %cst_54 = arith.constant dense<0.000000e+00> : vector<16x96xf32>
    %326 = tpu.matmul %325, %2, %cst_54 {dimension_numbers = #tpu.dot_dimension_numbers<[1], [0], [0], [1], [0, 0, 1, 1], [], []>} : vector<16x32xf32>, vector<32x96xf32>, vector<16x96xf32> -> vector<16x96xf32>
    %327 = arith.addf %326, %11 : vector<16x96xf32>
    %cst_55 = arith.constant dense<0.000000e+00> : vector<16x96xf32>
    %328 = tpu.matmul %302, %3, %cst_55 {dimension_numbers = #tpu.dot_dimension_numbers<[1], [0], [0], [1], [0, 0, 1, 1], [], []>} : vector<16x32xf32>, vector<32x96xf32>, vector<16x96xf32> -> vector<16x96xf32>
    %329 = vector.extract_strided_slice %327 {offsets = [0, 0], sizes = [16, 64], strides = [1, 1]} : vector<16x96xf32> to vector<16x64xf32>
    %330 = vector.extract_strided_slice %328 {offsets = [0, 0], sizes = [16, 64], strides = [1, 1]} : vector<16x96xf32> to vector<16x64xf32>
    %331 = arith.addf %329, %330 : vector<16x64xf32>
    %332 = arith.negf %331 : vector<16x64xf32>
    %333 = math.exp %332 : vector<16x64xf32>
    %cst_56 = arith.constant 1.000000e+00 : f32
    %334 = vector.broadcast %cst_56 : f32 to vector<16x64xf32>
    %335 = arith.addf %334, %333 : vector<16x64xf32>
    %336 = arith.divf %334, %335 : vector<16x64xf32>
    %337 = vector.extract_strided_slice %336 {offsets = [0, 0], sizes = [16, 32], strides = [1, 1]} : vector<16x64xf32> to vector<16x32xf32>
    %338 = vector.extract_strided_slice %336 {offsets = [0, 32], sizes = [16, 32], strides = [1, 1]} : vector<16x64xf32> to vector<16x32xf32>
    %339 = vector.extract_strided_slice %327 {offsets = [0, 64], sizes = [16, 32], strides = [1, 1]} : vector<16x96xf32> to vector<16x32xf32>
    %340 = vector.extract_strided_slice %328 {offsets = [0, 64], sizes = [16, 32], strides = [1, 1]} : vector<16x96xf32> to vector<16x32xf32>
    %341 = arith.addf %340, %14 : vector<16x32xf32>
    %342 = arith.mulf %337, %341 : vector<16x32xf32>
    %343 = arith.addf %339, %342 : vector<16x32xf32>
    %344 = math.tanh %343 : vector<16x32xf32>
    %cst_57 = arith.constant 1.000000e+00 : f32
    %345 = vector.broadcast %cst_57 : f32 to vector<16x32xf32>
    %346 = arith.subf %345, %338 : vector<16x32xf32>
    %347 = arith.mulf %346, %344 : vector<16x32xf32>
    %348 = arith.mulf %338, %302 : vector<16x32xf32>
    %349 = arith.addf %347, %348 : vector<16x32xf32>
    %350 = vector.extract_strided_slice %18 {offsets = [112, 0], sizes = [16, 96], strides = [1, 1]} : vector<128x96xf32> to vector<16x96xf32>
    %cst_58 = arith.constant dense<0.000000e+00> : vector<16x96xf32>
    %351 = tpu.matmul %325, %1, %cst_58 {dimension_numbers = #tpu.dot_dimension_numbers<[1], [0], [0], [1], [0, 0, 1, 1], [], []>} : vector<16x32xf32>, vector<32x96xf32>, vector<16x96xf32> -> vector<16x96xf32>
    %352 = vector.extract_strided_slice %350 {offsets = [0, 0], sizes = [16, 64], strides = [1, 1]} : vector<16x96xf32> to vector<16x64xf32>
    %353 = vector.extract_strided_slice %351 {offsets = [0, 0], sizes = [16, 64], strides = [1, 1]} : vector<16x96xf32> to vector<16x64xf32>
    %354 = arith.addf %352, %353 : vector<16x64xf32>
    %355 = arith.negf %354 : vector<16x64xf32>
    %356 = math.exp %355 : vector<16x64xf32>
    %cst_59 = arith.constant 1.000000e+00 : f32
    %357 = vector.broadcast %cst_59 : f32 to vector<16x64xf32>
    %358 = arith.addf %357, %356 : vector<16x64xf32>
    %359 = arith.divf %357, %358 : vector<16x64xf32>
    %360 = vector.extract_strided_slice %359 {offsets = [0, 0], sizes = [16, 32], strides = [1, 1]} : vector<16x64xf32> to vector<16x32xf32>
    %361 = vector.extract_strided_slice %359 {offsets = [0, 32], sizes = [16, 32], strides = [1, 1]} : vector<16x64xf32> to vector<16x32xf32>
    %362 = vector.extract_strided_slice %350 {offsets = [0, 64], sizes = [16, 32], strides = [1, 1]} : vector<16x96xf32> to vector<16x32xf32>
    %363 = vector.extract_strided_slice %351 {offsets = [0, 64], sizes = [16, 32], strides = [1, 1]} : vector<16x96xf32> to vector<16x32xf32>
    %364 = arith.addf %363, %8 : vector<16x32xf32>
    %365 = arith.mulf %360, %364 : vector<16x32xf32>
    %366 = arith.addf %362, %365 : vector<16x32xf32>
    %367 = math.tanh %366 : vector<16x32xf32>
    %cst_60 = arith.constant 1.000000e+00 : f32
    %368 = vector.broadcast %cst_60 : f32 to vector<16x32xf32>
    %369 = arith.subf %368, %361 : vector<16x32xf32>
    %370 = arith.mulf %369, %367 : vector<16x32xf32>
    %371 = arith.mulf %361, %325 : vector<16x32xf32>
    %372 = arith.addf %370, %371 : vector<16x32xf32>
    %cst_61 = arith.constant dense<0.000000e+00> : vector<16x96xf32>
    %373 = tpu.matmul %372, %2, %cst_61 {dimension_numbers = #tpu.dot_dimension_numbers<[1], [0], [0], [1], [0, 0, 1, 1], [], []>} : vector<16x32xf32>, vector<32x96xf32>, vector<16x96xf32> -> vector<16x96xf32>
    %374 = arith.addf %373, %11 : vector<16x96xf32>
    %cst_62 = arith.constant dense<0.000000e+00> : vector<16x96xf32>
    %375 = tpu.matmul %349, %3, %cst_62 {dimension_numbers = #tpu.dot_dimension_numbers<[1], [0], [0], [1], [0, 0, 1, 1], [], []>} : vector<16x32xf32>, vector<32x96xf32>, vector<16x96xf32> -> vector<16x96xf32>
    %376 = vector.extract_strided_slice %374 {offsets = [0, 0], sizes = [16, 64], strides = [1, 1]} : vector<16x96xf32> to vector<16x64xf32>
    %377 = vector.extract_strided_slice %375 {offsets = [0, 0], sizes = [16, 64], strides = [1, 1]} : vector<16x96xf32> to vector<16x64xf32>
    %378 = arith.addf %376, %377 : vector<16x64xf32>
    %379 = arith.negf %378 : vector<16x64xf32>
    %380 = math.exp %379 : vector<16x64xf32>
    %cst_63 = arith.constant 1.000000e+00 : f32
    %381 = vector.broadcast %cst_63 : f32 to vector<16x64xf32>
    %382 = arith.addf %381, %380 : vector<16x64xf32>
    %383 = arith.divf %381, %382 : vector<16x64xf32>
    %384 = vector.extract_strided_slice %383 {offsets = [0, 0], sizes = [16, 32], strides = [1, 1]} : vector<16x64xf32> to vector<16x32xf32>
    %385 = vector.extract_strided_slice %383 {offsets = [0, 32], sizes = [16, 32], strides = [1, 1]} : vector<16x64xf32> to vector<16x32xf32>
    %386 = vector.extract_strided_slice %374 {offsets = [0, 64], sizes = [16, 32], strides = [1, 1]} : vector<16x96xf32> to vector<16x32xf32>
    %387 = vector.extract_strided_slice %375 {offsets = [0, 64], sizes = [16, 32], strides = [1, 1]} : vector<16x96xf32> to vector<16x32xf32>
    %388 = arith.addf %387, %14 : vector<16x32xf32>
    %389 = arith.mulf %384, %388 : vector<16x32xf32>
    %390 = arith.addf %386, %389 : vector<16x32xf32>
    %391 = math.tanh %390 : vector<16x32xf32>
    %cst_64 = arith.constant 1.000000e+00 : f32
    %392 = vector.broadcast %cst_64 : f32 to vector<16x32xf32>
    %393 = arith.subf %392, %385 : vector<16x32xf32>
    %394 = arith.mulf %393, %391 : vector<16x32xf32>
    %395 = arith.mulf %385, %349 : vector<16x32xf32>
    %396 = arith.addf %394, %395 : vector<16x32xf32>
    %c0_65 = arith.constant 0 : index
    %c0_66 = arith.constant 0 : index
    %397 = vector.load %arg2[%c0_65, %c0_66] : memref<104x64xf32, #tpu.memory_space<vmem>>, vector<32x64xf32>
    %c32 = arith.constant 32 : index
    %c0_67 = arith.constant 0 : index
    %398 = vector.load %arg2[%c32, %c0_67] : memref<104x64xf32, #tpu.memory_space<vmem>>, vector<32x64xf32>
    %c64 = arith.constant 64 : index
    %c0_68 = arith.constant 0 : index
    %399 = vector.load %arg2[%c64, %c0_68] : memref<104x64xf32, #tpu.memory_space<vmem>>, vector<32x64xf32>
    %c96 = arith.constant 96 : index
    %c0_69 = arith.constant 0 : index
    %400 = vector.load %arg2[%c96, %c0_69] : memref<104x64xf32, #tpu.memory_space<vmem>>, vector<8x64xf32>
    %401 = vector.extract_strided_slice %400 {offsets = [0, 0], sizes = [1, 64], strides = [1, 1]} : vector<8x64xf32> to vector<1x64xf32>
    %402 = vector.extract_strided_slice %400 {offsets = [1, 0], sizes = [1, 64], strides = [1, 1]} : vector<8x64xf32> to vector<1x64xf32>
    %403 = vector.extract_strided_slice %400 {offsets = [2, 0], sizes = [1, 64], strides = [1, 1]} : vector<8x64xf32> to vector<1x64xf32>
    %404 = vector.extract_strided_slice %400 {offsets = [3, 0], sizes = [1, 32], strides = [1, 1]} : vector<8x64xf32> to vector<1x32xf32>
    %405 = vector.extract_strided_slice %400 {offsets = [4, 0], sizes = [1, 1], strides = [1, 1]} : vector<8x64xf32> to vector<1x1xf32>
    %c0_70 = arith.constant 0 : index
    %c0_71 = arith.constant 0 : index
    %406 = vector.load %arg3[%c0_70, %c0_71] : memref<16x16xf32, #tpu.memory_space<vmem>>, vector<16x12xf32>
    %c0_72 = arith.constant 0 : index
    %c12 = arith.constant 12 : index
    %407 = vector.load %arg3[%c0_72, %c12] : memref<16x16xf32, #tpu.memory_space<vmem>>, vector<16x1xf32>
    %408 = vector.broadcast %407 : vector<16x1xf32> to vector<16x12xf32>
    %409 = arith.mulf %406, %408 : vector<16x12xf32>
    %cst_73 = arith.constant dense<0.000000e+00> : vector<12xf32>
    %410 = vector.multi_reduction <add>, %409, %cst_73 [0] : vector<16x12xf32> to vector<12xf32>
    %411 = vector.shape_cast %410 : vector<12xf32> to vector<1x12xf32>
    %412 = vector.broadcast %411 : vector<1x12xf32> to vector<16x12xf32>
    %413 = arith.mulf %412, %406 : vector<16x12xf32>
    %cst_74 = arith.constant 1.000000e+00 : f32
    %414 = vector.broadcast %cst_74 : f32 to vector<16x12xf32>
    %415 = arith.addf %413, %414 : vector<16x12xf32>
    %416 = arith.divf %409, %415 : vector<16x12xf32>
    %cst_75 = arith.constant dense<0.000000e+00> : vector<12x32xf32>
    %417 = tpu.matmul %416, %396, %cst_75 {dimension_numbers = #tpu.dot_dimension_numbers<[0], [0], [1], [1], [0, 1, 1, 1], [], []>} : vector<16x12xf32>, vector<16x32xf32>, vector<12x32xf32> -> vector<12x32xf32>
    %cst_76 = arith.constant 1.000000e+00 : f32
    %418 = vector.broadcast %cst_76 : f32 to vector<1x32xf32>
    %cst_77 = arith.constant dense<0.000000e+00> : vector<1x12xf32>
    %419 = tpu.matmul %418, %417, %cst_77 {dimension_numbers = #tpu.dot_dimension_numbers<[1], [1], [0], [0], [0, 0, 1, 0], [], []>} : vector<1x32xf32>, vector<12x32xf32>, vector<1x12xf32> -> vector<1x12xf32>
    %cst_78 = arith.constant 0.000000e+00 : f32
    %420 = vector.broadcast %cst_78 : f32 to vector<1x12xf32>
    %421 = arith.cmpf one, %419, %420 : vector<1x12xf32>
    %cst_79 = arith.constant dense<0.000000e+00> : vector<16x12xf32>
    %422 = tpu.matmul %396, %417, %cst_79 {dimension_numbers = #tpu.dot_dimension_numbers<[1], [1], [0], [0], [0, 0, 1, 0], [], []>} : vector<16x32xf32>, vector<12x32xf32>, vector<16x12xf32> -> vector<16x12xf32>
    %cst_80 = arith.constant dense<0xFF800000> : vector<12xf32>
    %423 = vector.multi_reduction <maximumf>, %422, %cst_80 [0] : vector<16x12xf32> to vector<12xf32>
    %424 = vector.shape_cast %423 : vector<12xf32> to vector<1x12xf32>
    %425 = vector.broadcast %424 : vector<1x12xf32> to vector<16x12xf32>
    %426 = arith.subf %422, %425 : vector<16x12xf32>
    %427 = math.exp %426 : vector<16x12xf32>
    %cst_81 = arith.constant dense<0.000000e+00> : vector<12xf32>
    %428 = vector.multi_reduction <add>, %427, %cst_81 [0] : vector<16x12xf32> to vector<12xf32>
    %429 = vector.shape_cast %428 : vector<12xf32> to vector<1x12xf32>
    %430 = tpu.reciprocal %429 {approx = true} : vector<1x12xf32> -> vector<1x12xf32>
    %431 = vector.broadcast %430 : vector<1x12xf32> to vector<16x12xf32>
    %432 = arith.mulf %427, %431 : vector<16x12xf32>
    %cst_82 = arith.constant dense<0.000000e+00> : vector<12x32xf32>
    %433 = tpu.matmul %432, %396, %cst_82 {dimension_numbers = #tpu.dot_dimension_numbers<[0], [0], [1], [1], [0, 1, 1, 1], [], []>} : vector<16x12xf32>, vector<16x32xf32>, vector<12x32xf32> -> vector<12x32xf32>
    %cst_83 = arith.constant dense<0.000000e+00> : vector<16x12xf32>
    %434 = tpu.matmul %396, %433, %cst_83 {dimension_numbers = #tpu.dot_dimension_numbers<[1], [1], [0], [0], [0, 0, 1, 0], [], []>} : vector<16x32xf32>, vector<12x32xf32>, vector<16x12xf32> -> vector<16x12xf32>
    %435 = arith.mulf %396, %396 : vector<16x32xf32>
    %cst_84 = arith.constant dense<0.000000e+00> : vector<16xf32>
    %436 = vector.multi_reduction <add>, %435, %cst_84 [1] : vector<16x32xf32> to vector<16xf32>
    %437 = vector.shape_cast %436 : vector<16xf32> to vector<16x1xf32>
    %438 = math.sqrt %437 : vector<16x1xf32>
    %439 = arith.mulf %433, %433 : vector<12x32xf32>
    %cst_85 = arith.constant 1.000000e+00 : f32
    %440 = vector.broadcast %cst_85 : f32 to vector<1x32xf32>
    %cst_86 = arith.constant dense<0.000000e+00> : vector<1x12xf32>
    %441 = tpu.matmul %440, %439, %cst_86 {dimension_numbers = #tpu.dot_dimension_numbers<[1], [1], [0], [0], [0, 0, 1, 0], [], []>} : vector<1x32xf32>, vector<12x32xf32>, vector<1x12xf32> -> vector<1x12xf32>
    %442 = math.sqrt %441 : vector<1x12xf32>
    %443 = vector.broadcast %438 : vector<16x1xf32> to vector<16x12xf32>
    %444 = vector.broadcast %442 : vector<1x12xf32> to vector<16x12xf32>
    %445 = arith.mulf %443, %444 : vector<16x12xf32>
    %446 = arith.divf %434, %445 : vector<16x12xf32>
    %447 = arith.cmpf one, %446, %446 : vector<16x12xf32>
    %cst_87 = arith.constant 0.000000e+00 : f32
    %448 = vector.broadcast %cst_87 : f32 to vector<16x12xf32>
    %449 = arith.select %447, %448, %446 : vector<16x12xi1>, vector<16x12xf32>
    %cst_88 = arith.constant -1.000000e+30 : f32
    %450 = vector.shape_cast %421 : vector<1x12xi1> to vector<1x12xi1>
    %451 = vector.broadcast %450 : vector<1x12xi1> to vector<16x12xi1>
    %452 = vector.broadcast %cst_88 : f32 to vector<16x12xf32>
    %453 = arith.select %451, %449, %452 : vector<16x12xi1>, vector<16x12xf32>
    %cst_89 = arith.constant dense<0xFF800000> : vector<16xf32>
    %454 = vector.multi_reduction <maximumf>, %453, %cst_89 [1] : vector<16x12xf32> to vector<16xf32>
    %455 = vector.shape_cast %454 : vector<16xf32> to vector<16x1xf32>
    %456 = vector.broadcast %455 : vector<16x1xf32> to vector<16x12xf32>
    %457 = arith.subf %453, %456 : vector<16x12xf32>
    %458 = math.exp %457 : vector<16x12xf32>
    %cst_90 = arith.constant dense<0.000000e+00> : vector<16xf32>
    %459 = vector.multi_reduction <add>, %458, %cst_90 [1] : vector<16x12xf32> to vector<16xf32>
    %460 = vector.shape_cast %459 : vector<16xf32> to vector<16x1xf32>
    %461 = tpu.reciprocal %460 {approx = true} : vector<16x1xf32> -> vector<16x1xf32>
    %462 = vector.broadcast %461 : vector<16x1xf32> to vector<16x12xf32>
    %463 = arith.mulf %458, %462 : vector<16x12xf32>
    %cst_91 = arith.constant dense<0.000000e+00> : vector<16x32xf32>
    %464 = tpu.matmul %463, %433, %cst_91 {dimension_numbers = #tpu.dot_dimension_numbers<[1], [0], [0], [1], [0, 0, 1, 1], [], []>} : vector<16x12xf32>, vector<12x32xf32>, vector<16x32xf32> -> vector<16x32xf32>
    %cst_92 = arith.constant dense<0.000000e+00> : vector<16x64xf32>
    %465 = tpu.matmul %464, %397, %cst_92 {dimension_numbers = #tpu.dot_dimension_numbers<[1], [0], [0], [1], [0, 0, 1, 1], [], []>} : vector<16x32xf32>, vector<32x64xf32>, vector<16x64xf32> -> vector<16x64xf32>
    %466 = vector.broadcast %401 : vector<1x64xf32> to vector<16x64xf32>
    %467 = arith.addf %465, %466 : vector<16x64xf32>
    %468 = vector.extract_strided_slice %467 {offsets = [0, 0], sizes = [16, 32], strides = [1, 1]} : vector<16x64xf32> to vector<16x32xf32>
    %469 = vector.extract_strided_slice %467 {offsets = [0, 32], sizes = [16, 32], strides = [1, 1]} : vector<16x64xf32> to vector<16x32xf32>
    %cst_93 = arith.constant 0.000000e+00 : f32
    %470 = vector.broadcast %cst_93 : f32 to vector<16x32xf32>
    %471 = arith.cmpf oge, %469, %470 : vector<16x32xf32>
    %cst_94 = arith.constant 0.00999999977 : f32
    %472 = vector.broadcast %cst_94 : f32 to vector<16x32xf32>
    %473 = arith.mulf %472, %469 : vector<16x32xf32>
    %474 = arith.select %471, %469, %473 : vector<16x32xi1>, vector<16x32xf32>
    %475 = arith.subf %396, %468 : vector<16x32xf32>
    %cst_95 = arith.constant dense<0.000000e+00> : vector<16x16xf32>
    %476 = tpu.matmul %475, %475, %cst_95 {dimension_numbers = #tpu.dot_dimension_numbers<[1], [1], [0], [0], [0, 0, 1, 0], [], []>} : vector<16x32xf32>, vector<16x32xf32>, vector<16x16xf32> -> vector<16x16xf32>
    %477 = arith.mulf %475, %475 : vector<16x32xf32>
    %cst_96 = arith.constant dense<0.000000e+00> : vector<16xf32>
    %478 = vector.multi_reduction <add>, %477, %cst_96 [1] : vector<16x32xf32> to vector<16xf32>
    %479 = vector.shape_cast %478 : vector<16xf32> to vector<16x1xf32>
    %480 = math.sqrt %479 : vector<16x1xf32>
    %481 = arith.mulf %475, %475 : vector<16x32xf32>
    %cst_97 = arith.constant 1.000000e+00 : f32
    %482 = vector.broadcast %cst_97 : f32 to vector<1x32xf32>
    %cst_98 = arith.constant dense<0.000000e+00> : vector<1x16xf32>
    %483 = tpu.matmul %482, %481, %cst_98 {dimension_numbers = #tpu.dot_dimension_numbers<[1], [1], [0], [0], [0, 0, 1, 0], [], []>} : vector<1x32xf32>, vector<16x32xf32>, vector<1x16xf32> -> vector<1x16xf32>
    %484 = math.sqrt %483 : vector<1x16xf32>
    %485 = vector.broadcast %480 : vector<16x1xf32> to vector<16x16xf32>
    %486 = vector.broadcast %484 : vector<1x16xf32> to vector<16x16xf32>
    %487 = arith.mulf %485, %486 : vector<16x16xf32>
    %488 = arith.divf %476, %487 : vector<16x16xf32>
    %489 = arith.cmpf one, %488, %488 : vector<16x16xf32>
    %cst_99 = arith.constant 0.000000e+00 : f32
    %490 = vector.broadcast %cst_99 : f32 to vector<16x16xf32>
    %491 = arith.select %489, %490, %488 : vector<16x16xi1>, vector<16x16xf32>
    %492 = tpu.iota {dimensions = array<i32: 0>} : vector<16x16xi32>
    %493 = tpu.iota {dimensions = array<i32: 1>} : vector<16x16xi32>
    %494 = arith.cmpi eq, %492, %493 : vector<16x16xi32>
    %495 = arith.extui %494 : vector<16x16xi1> to vector<16x16xi32>
    %496 = arith.sitofp %495 : vector<16x16xi32> to vector<16x16xf32>
    %497 = arith.mulf %491, %496 : vector<16x16xf32>
    %cst_100 = arith.constant dense<0.000000e+00> : vector<16xf32>
    %498 = vector.multi_reduction <add>, %497, %cst_100 [0] : vector<16x16xf32> to vector<16xf32>
    %499 = vector.shape_cast %498 : vector<16xf32> to vector<1x16xf32>
    %cst_101 = arith.constant 1.000000e+00 : f32
    %500 = vector.broadcast %cst_101 : f32 to vector<16x16xf32>
    %501 = arith.subf %500, %496 : vector<16x16xf32>
    %502 = arith.mulf %491, %501 : vector<16x16xf32>
    %cst_102 = arith.constant dense<0xFF800000> : vector<16xf32>
    %503 = vector.multi_reduction <maximumf>, %502, %cst_102 [1] : vector<16x16xf32> to vector<16xf32>
    %504 = vector.shape_cast %503 : vector<16xf32> to vector<16x1xf32>
    %505 = vector.broadcast %504 : vector<16x1xf32> to vector<16x16xf32>
    %506 = arith.cmpf oeq, %502, %505 : vector<16x16xf32>
    %c16_i32 = arith.constant 16 : i32
    %507 = vector.broadcast %c16_i32 : i32 to vector<16x16xi32>
    %508 = arith.select %506, %493, %507 : vector<16x16xi1>, vector<16x16xi32>
    %cst_103 = arith.constant dense<2147483647> : vector<16xi32>
    %509 = vector.multi_reduction <minsi>, %508, %cst_103 [1] : vector<16x16xi32> to vector<16xi32>
    %510 = vector.shape_cast %509 : vector<16xi32> to vector<16x1xi32>
    %511 = vector.broadcast %510 : vector<16x1xi32> to vector<16x16xi32>
    %512 = arith.cmpi eq, %493, %511 : vector<16x16xi32>
    %513 = arith.extui %512 : vector<16x16xi1> to vector<16x16xi32>
    %514 = arith.sitofp %513 : vector<16x16xi32> to vector<16x16xf32>
    %515 = vector.broadcast %504 : vector<16x1xf32> to vector<16x16xf32>
    %516 = arith.mulf %514, %515 : vector<16x16xf32>
    %cst_104 = arith.constant dense<0.000000e+00> : vector<16xf32>
    %517 = vector.multi_reduction <add>, %516, %cst_104 [0] : vector<16x16xf32> to vector<16xf32>
    %518 = vector.shape_cast %517 : vector<16xf32> to vector<1x16xf32>
    %cst_105 = arith.constant 0.000000e+00 : f32
    %519 = vector.broadcast %cst_105 : f32 to vector<1x16xf32>
    %520 = arith.cmpf one, %518, %519 : vector<1x16xf32>
    %521 = arith.extui %520 : vector<1x16xi1> to vector<1x16xi32>
    %522 = arith.sitofp %521 : vector<1x16xi32> to vector<1x16xf32>
    %523 = arith.mulf %522, %499 : vector<1x16xf32>
    %524 = vector.broadcast %523 : vector<1x16xf32> to vector<16x16xf32>
    %525 = arith.mulf %496, %524 : vector<16x16xf32>
    %526 = arith.addf %516, %525 : vector<16x16xf32>
    %cst_106 = arith.constant dense<0.000000e+00> : vector<16x32xf32>
    %527 = tpu.matmul %526, %475, %cst_106 {dimension_numbers = #tpu.dot_dimension_numbers<[0], [0], [1], [1], [0, 1, 1, 1], [], []>} : vector<16x16xf32>, vector<16x32xf32>, vector<16x32xf32> -> vector<16x32xf32>
    %cst_107 = arith.constant 1.000000e+00 : f32
    %528 = vector.broadcast %cst_107 : f32 to vector<1x32xf32>
    %cst_108 = arith.constant dense<0.000000e+00> : vector<1x16xf32>
    %529 = tpu.matmul %528, %527, %cst_108 {dimension_numbers = #tpu.dot_dimension_numbers<[1], [1], [0], [0], [0, 0, 1, 0], [], []>} : vector<1x32xf32>, vector<16x32xf32>, vector<1x16xf32> -> vector<1x16xf32>
    %cst_109 = arith.constant 0.000000e+00 : f32
    %530 = vector.broadcast %cst_109 : f32 to vector<1x16xf32>
    %531 = arith.cmpf one, %529, %530 : vector<1x16xf32>
    %cst_110 = arith.constant dense<0.000000e+00> : vector<16x16xf32>
    %532 = tpu.matmul %475, %527, %cst_110 {dimension_numbers = #tpu.dot_dimension_numbers<[1], [1], [0], [0], [0, 0, 1, 0], [], []>} : vector<16x32xf32>, vector<16x32xf32>, vector<16x16xf32> -> vector<16x16xf32>
    %533 = arith.mulf %475, %475 : vector<16x32xf32>
    %cst_111 = arith.constant dense<0.000000e+00> : vector<16xf32>
    %534 = vector.multi_reduction <add>, %533, %cst_111 [1] : vector<16x32xf32> to vector<16xf32>
    %535 = vector.shape_cast %534 : vector<16xf32> to vector<16x1xf32>
    %536 = math.sqrt %535 : vector<16x1xf32>
    %537 = arith.mulf %527, %527 : vector<16x32xf32>
    %cst_112 = arith.constant 1.000000e+00 : f32
    %538 = vector.broadcast %cst_112 : f32 to vector<1x32xf32>
    %cst_113 = arith.constant dense<0.000000e+00> : vector<1x16xf32>
    %539 = tpu.matmul %538, %537, %cst_113 {dimension_numbers = #tpu.dot_dimension_numbers<[1], [1], [0], [0], [0, 0, 1, 0], [], []>} : vector<1x32xf32>, vector<16x32xf32>, vector<1x16xf32> -> vector<1x16xf32>
    %540 = math.sqrt %539 : vector<1x16xf32>
    %541 = vector.broadcast %536 : vector<16x1xf32> to vector<16x16xf32>
    %542 = vector.broadcast %540 : vector<1x16xf32> to vector<16x16xf32>
    %543 = arith.mulf %541, %542 : vector<16x16xf32>
    %544 = arith.divf %532, %543 : vector<16x16xf32>
    %545 = arith.cmpf one, %544, %544 : vector<16x16xf32>
    %cst_114 = arith.constant 0.000000e+00 : f32
    %546 = vector.broadcast %cst_114 : f32 to vector<16x16xf32>
    %547 = arith.select %545, %546, %544 : vector<16x16xi1>, vector<16x16xf32>
    %cst_115 = arith.constant -1.000000e+30 : f32
    %548 = vector.shape_cast %531 : vector<1x16xi1> to vector<1x16xi1>
    %549 = vector.broadcast %548 : vector<1x16xi1> to vector<16x16xi1>
    %550 = vector.broadcast %cst_115 : f32 to vector<16x16xf32>
    %551 = arith.select %549, %547, %550 : vector<16x16xi1>, vector<16x16xf32>
    %cst_116 = arith.constant dense<0xFF800000> : vector<16xf32>
    %552 = vector.multi_reduction <maximumf>, %551, %cst_116 [1] : vector<16x16xf32> to vector<16xf32>
    %553 = vector.shape_cast %552 : vector<16xf32> to vector<16x1xf32>
    %554 = vector.broadcast %553 : vector<16x1xf32> to vector<16x16xf32>
    %555 = arith.subf %551, %554 : vector<16x16xf32>
    %556 = math.exp %555 : vector<16x16xf32>
    %cst_117 = arith.constant dense<0.000000e+00> : vector<16xf32>
    %557 = vector.multi_reduction <add>, %556, %cst_117 [1] : vector<16x16xf32> to vector<16xf32>
    %558 = vector.shape_cast %557 : vector<16xf32> to vector<16x1xf32>
    %559 = tpu.reciprocal %558 {approx = true} : vector<16x1xf32> -> vector<16x1xf32>
    %560 = vector.broadcast %559 : vector<16x1xf32> to vector<16x16xf32>
    %561 = arith.mulf %556, %560 : vector<16x16xf32>
    %cst_118 = arith.constant dense<0.000000e+00> : vector<16x32xf32>
    %562 = tpu.matmul %561, %527, %cst_118 {dimension_numbers = #tpu.dot_dimension_numbers<[1], [0], [0], [1], [0, 0, 1, 1], [], []>} : vector<16x16xf32>, vector<16x32xf32>, vector<16x32xf32> -> vector<16x32xf32>
    %cst_119 = arith.constant dense<0.000000e+00> : vector<16x64xf32>
    %563 = tpu.matmul %562, %398, %cst_119 {dimension_numbers = #tpu.dot_dimension_numbers<[1], [0], [0], [1], [0, 0, 1, 1], [], []>} : vector<16x32xf32>, vector<32x64xf32>, vector<16x64xf32> -> vector<16x64xf32>
    %564 = vector.broadcast %402 : vector<1x64xf32> to vector<16x64xf32>
    %565 = arith.addf %563, %564 : vector<16x64xf32>
    %566 = vector.extract_strided_slice %565 {offsets = [0, 0], sizes = [16, 32], strides = [1, 1]} : vector<16x64xf32> to vector<16x32xf32>
    %567 = vector.extract_strided_slice %565 {offsets = [0, 32], sizes = [16, 32], strides = [1, 1]} : vector<16x64xf32> to vector<16x32xf32>
    %cst_120 = arith.constant 0.000000e+00 : f32
    %568 = vector.broadcast %cst_120 : f32 to vector<16x32xf32>
    %569 = arith.cmpf oge, %567, %568 : vector<16x32xf32>
    %cst_121 = arith.constant 0.00999999977 : f32
    %570 = vector.broadcast %cst_121 : f32 to vector<16x32xf32>
    %571 = arith.mulf %570, %567 : vector<16x32xf32>
    %572 = arith.select %569, %567, %571 : vector<16x32xi1>, vector<16x32xf32>
    %573 = arith.subf %396, %468 : vector<16x32xf32>
    %574 = arith.subf %573, %566 : vector<16x32xf32>
    %cst_122 = arith.constant dense<0.000000e+00> : vector<16x64xf32>
    %575 = tpu.matmul %574, %399, %cst_122 {dimension_numbers = #tpu.dot_dimension_numbers<[1], [0], [0], [1], [0, 0, 1, 1], [], []>} : vector<16x32xf32>, vector<32x64xf32>, vector<16x64xf32> -> vector<16x64xf32>
    %576 = vector.broadcast %403 : vector<1x64xf32> to vector<16x64xf32>
    %577 = arith.addf %575, %576 : vector<16x64xf32>
    %cst_123 = arith.constant 0.000000e+00 : f32
    %578 = vector.broadcast %cst_123 : f32 to vector<16x64xf32>
    %579 = arith.cmpf oge, %577, %578 : vector<16x64xf32>
    %cst_124 = arith.constant 0.00999999977 : f32
    %580 = vector.broadcast %cst_124 : f32 to vector<16x64xf32>
    %581 = arith.mulf %580, %577 : vector<16x64xf32>
    %582 = arith.select %579, %577, %581 : vector<16x64xi1>, vector<16x64xf32>
    %583 = vector.extract_strided_slice %582 {offsets = [0, 0], sizes = [16, 32], strides = [1, 1]} : vector<16x64xf32> to vector<16x32xf32>
    %584 = arith.addf %474, %572 : vector<16x32xf32>
    %585 = arith.addf %584, %583 : vector<16x32xf32>
    %cst_125 = arith.constant dense<0.000000e+00> : vector<1x16xf32>
    %586 = tpu.matmul %404, %585, %cst_125 {dimension_numbers = #tpu.dot_dimension_numbers<[1], [1], [0], [0], [0, 0, 1, 0], [], []>} : vector<1x32xf32>, vector<16x32xf32>, vector<1x16xf32> -> vector<1x16xf32>
    %587 = vector.broadcast %405 : vector<1x1xf32> to vector<1x16xf32>
    %588 = arith.addf %586, %587 : vector<1x16xf32>
    %c0_126 = arith.constant 0 : index
    %c0_127 = arith.constant 0 : index
    %589 = vector.load %arg4[%c0_126, %c0_127] : memref<1x16xf32, #tpu.memory_space<vmem>>, vector<1x16xf32>
    tpu.vector_store %arg4[%c0_126, %c0_127], %588 {strides = array<i32>} : memref<1x16xf32, #tpu.memory_space<vmem>>, vector<1x16xf32>,
    return
  }
}

</mosaic_0001>

<bundles_post_ra>
// kernel: tpu_custom_call.1
= control target key start
LH: loop header
LB: loop body
LE: loop exit
PB: predicated region body
PF: predicated region fallthrough
CT: control target
= control target key end

     0   :  { %vm64_vm0 = vcmask 64512   ;;  %v6441_v7 = vmov 0.0   ;;  %s7407_s0 = inlined_call_operand.vmem [shape: f32[128,8], index: 0, kind: input, shape index: {}]   ;;  %s7408_s1 = inlined_call_operand.vmem [shape: f32[112,96], index: 1, kind: input, shape index: {}]   ;;  %s7409_s2 = inlined_call_operand.vmem [shape: f32[104,64], index: 2, kind: input, shape index: {}]   ;;  %s7410_s3 = inlined_call_operand.vmem [shape: f32[16,16], index: 3, kind: input, shape index: {}]   ;;  %s7411_s4 = inlined_call_operand.hbm [shape: f32[1,16], index: 4, kind: output, shape index: {}]  }
   0x1   :  { %v19_v0 = vld [vmem:[%s7408_s1 + $0x8] sm:$0xff]  ;;  %v20_v1 = vld [vmem:[%s7408_s1 + $0x10] sm:$0xff]  ;;  %v18_v2 = vld [vmem:[%s7408_s1] sm:$0xff]  ;;  %5473 = vmatprep.mubr.f32.mxu1 %v6441_v7 }
   0x2   :  { %v6486_v3 = vpack.c.bf16 %v20_v1, %v19_v0  ;;  %5439 = vmatprep.subr.mxu0 %v18_v2  ;;  %v21_v4 = vld [vmem:[%s7408_s1 + $0x18] sm:$0xff]  ;;  %v22_v5 = vld [vmem:[%s7408_s1 + $0x20] sm:$0xff]  ;;  %v45_v9 = vld [vmem:[%s7407_s0 + $0x8] sm:$0xff] }
   0x3   :  { %v44_v6 = vld [vmem:[%s7407_s0] sm:$0xff]  ;;  %v6498_v8 = vpack.c.bf16 %v22_v5, %v21_v4  ;;  %5440 = vmatpush3.msra.mxu0 %v18_v2 }
   0x4   :  { %5441 = vmatprep.mubr.msk.f32.mxu0 %vm64_vm0, %v44_v6 }
   0x5   :  { %9 = vsyncpa [#allocation3], 0  ;;  %5868 = vmatprep.subr.bf16.mxu1 %v6486_v3  ;;  %5442 = vmatmul.mubr.msk.f32.vlgmr.msra.gmra.mrb[0].mxu0 %vm64_vm0, %v45_v9  ;;  %v32_v10 = vlaneseq  ;;  %v6517_v15 = vld [vmem:[%s7408_s1 + $0x68] sm:$0xff]  ;;  %s6442_s5 = smov 64   ;;  %v24_v44 = vld [vmem:[%s7408_s1 + $0x30] sm:$0xff]  ;;  %s6443_s14 = smov 96  }
   0x6   :  { %5870 = vmatpush3.bf16.msra.mxu1 %v6486_v3  ;;  %v23_v43 = vld [vmem:[%s7408_s1 + $0x28] sm:$0xff]  ;;  %v25_v45 = vld [vmem:[%s7408_s1 + $0x38] sm:$0xff]  ;;  %v26_v47 = vld [vmem:[%s7408_s1 + $0x40] sm:$0xff]  ;;  %vm258_vm1 = vcmask 261120   ;;  %vm3103_vm2 = vcmask 97280   ;;  %vm3161_vm3 = vcmask 130048  }
   0x7   :  { %5872 = vmatprep.subr.bf16.mxu1 %v6498_v8  ;;  %v6511_v11 = vshrl.u32 %v32_v10, 7  ;;  %v6548_v46 = vpack.c.bf16 %v24_v44, %v23_v43  ;;  %v6553_v48 = vpack.c.bf16 %v26_v47, %v25_v45  ;;  %v27_v51 = vld [vmem:[%s7408_s1 + $0x48] sm:$0xff]  ;;  %v28_v52 = vld [vmem:[%s7408_s1 + $0x50] sm:$0xff]  ;;  %v47_v1 = vld [vmem:[%s7407_s0 + $0x18] sm:$0xff]  ;;  %vm6446_vm4 = vmmov 0   ;;  %s6450_s11 = smov 32  }
   0x8   :  { %v6572_v53 = vpack.c.bf16 %v28_v52, %v27_v51  ;;  %v46_v63 = vld [vmem:[%s7407_s0 + $0x10] sm:$0xff]  ;;  %v29_v4 = vld [vmem:[%s7408_s1 + $0x58] sm:$0xff]  ;;  %v30_v5 = vld [vmem:[%s7408_s1 + $0x60] sm:$0xff]  ;;  %vm3788_vm6 = vcmask 1043456   ;;  %vm6449_vm7 = vmmov 1  }
   0x9   :  { %v34_v14 = vsub.s32 1, %v6511_v11  ;;  %v6529_v21 = vsub.s32 0, %v6511_v11  ;;  %5900 = vmatprep.subr.bf16.mxu0 %v6548_v46  ;;  %5444 = vmatprep.mubr.msk.f32.mxu0 %vm64_vm0, %v46_v63  ;;  %v6598_v6 = vpack.c.bf16 %v30_v5, %v29_v4  ;;  %vm7149_vm5 = vmpackc.low %vm258_vm1, %vm258_vm1 }
   0xa   :  { %5874 = vmatpush3.bf16.msra.mxu1 %v6498_v8  ;;  %5902 = vmatpush3.bf16.msra.mxu0 %v6548_v46  ;;  %vm6088_vm8 = vmpackc.low %vm3788_vm6, %vm6449_vm7 }
   0xb   :  { %v6522_v16 = vrot.slane %v6517_v15, %v34_v14  ;;  %v6533_v22 = vrot.slane %v6517_v15, %v6529_v21  ;;  %5876 = vmatprep.subr.bf16.mxu1 %v6548_v46  ;;  %5904 = vmatprep.subr.bf16.mxu0 %v6553_v48 }
   0xc   :  { %5445 = vmatmul.mubr.msk.f32.gmra.mrb[2].mxu0 %vm64_vm0, %v47_v1 }
   0xd   :  { %5474 = vmatmul.mubr.f32.vlgmr.msra.gmra.mrb[0].mxu1 %v6441_v7 }
   0xe   :  { %5878 = vmatpush3.bf16.msra.mxu1 %v6548_v46  ;;  %5906 = vmatpush3.bf16.msra.mxu0 %v6553_v48 }
   0xf   :  { %5880 = vmatprep.subr.bf16.mxu1 %v6553_v48  ;;  %5916 = vmatprep.subr.bf16.mxu0 %v6486_v3 }
  0x12   :  { %5882 = vmatpush3.bf16.msra.mxu1 %v6553_v48 }
  0x13   :  { %5884 = vmatprep.subr.bf16.mxu1 %v6572_v53 }
  0xd8   :  { %v5443_v12 = vpop.f32.mrb[0].mxu0 }
  0xd9   :  { %v179_v13 = vpop.f32.mrb[1].mxu0  ;;  %v185_v24 = vadd.f32 %v5443_v12, %v6533_v22 }
  0xda   :  { %v180_v23 = vadd.f32 %v179_v13, %v6533_v22 }
  0xdf   :  { %v5446_v12 = vpop.f32.mrb[2].mxu0 }
  0xe0   :  { %v5475_v17 = vpop.f32.mrb[0].mxu1  ;;  %v189_v13 = vpop.f32.mrb[3].mxu0 }
  0xe1   :  { %v328_v18 = vpop.f32.mrb[1].mxu1  ;;  %v352_v20 = vadd.f32 %v5475_v17, %v6522_v16  ;;  %v338_v26 = vadd.f32 %v5475_v17, %v185_v24 }
  0xe2   :  { %v351_v19 = vadd.f32 %v328_v18, %v6522_v16  ;;  %v337_v25 = vadd.f32 %v328_v18, %v180_v23 }
  0xe3   :  { %v5075_v28 = vmul.f32 -1.442695, %v338_v26 }
  0xe4   :  { %355 = vrot.lane.b32.xlu0 %v351_v19, %s6442_s5  ;;  %v5074_v27 = vmul.f32 -1.442695, %v337_v25 }
  0xe6   :  { %6173 = vpow2.f32 %v5074_v27 }
  0xe7   :  { %6175 = vpow2.f32 %v5075_v28 }
  0xe8   :  { %357 = vrot.lane.b32.xlu0 %v352_v20, %s6442_s5 }
  0xf0   :  { %v6174_v29 = vpop.eup %6173 }
  0xf1   :  { %v345_v30 = vadd.f32 1.0, %v6174_v29  ;;  %v6176_v31 = vpop.eup %6175 }
  0xf2   :  { %v346_v32 = vadd.f32 1.0, %v6176_v31  ;;  %v38_v31 = vsub.s32 2, %v6511_v11 }
  0xf3   :  { %6177 = vrcp.f32 %v345_v30 }
  0xf4   :  { %6179 = vrcp.f32 %v346_v32  ;;  %v195_v32 = vadd.f32 %v5446_v12, %v6533_v22 }
  0xfd   :  { %v6178_v33 = vpop.eup %6177 }
  0xfe   :  { %v6180_v36 = vpop.eup %6179  ;;  %v375_v54 = vsub.f32 1.0, %v6178_v33  ;;  %v387_v56 = vmul.f32 0.0, %v6178_v33 }
  0xff   :  { %v376_v59 = vsub.f32 1.0, %v6180_v36  ;;  %v388_v61 = vmul.f32 0.0, %v6180_v36 }
 0x156   :  { %v356_v34 = vpop.permute.xlu0 %355 }
 0x157   :  { %v361_v35 = vmul.f32 %v6178_v33, %v356_v34  ;;  %v190_v33 = vadd.f32 %v189_v13, %v6533_v22  ;;  %v6635_v34 = vrot.slane %v6517_v15, %v38_v31 }
 0x159   :  { %365 = vrot.lane.b32.xlu1 %v361_v35, %s6442_s5 }
 0x15a   :  { %v358_v37 = vpop.permute.xlu0 %357 }
 0x15b   :  { %v362_v38 = vmul.f32 %v6180_v36, %v358_v37 }
 0x15d   :  { %367 = vrot.lane.b32.xlu1 %v362_v38, %s6442_s5 }
 0x1cb   :  { %v366_v39 = vpop.permute.xlu1 %365 }
 0x1cc   :  { %v371_v40 = vadd.f32 %v366_v39, %v180_v23  ;;  %v42_v23 = vsub.s32 3, %v6511_v11 }
 0x1ce   :  { %6181 = vtanh.f32 %v371_v40  ;;  %v6619_v25 = vrot.slane %v6517_v15, %v42_v23 }
 0x1cf   :  { %v368_v41 = vpop.permute.xlu1 %367 }
 0x1d0   :  { %v372_v42 = vadd.f32 %v368_v41, %v185_v24 }
 0x1d2   :  { %6183 = vtanh.f32 %v372_v42 }
 0x1d8   :  { %v6182_v49 = vpop.eup %6181 }
 0x1d9   :  { %379 = vrot.lane.b32.xlu0 %v6182_v49, %s6443_s14 }
 0x1dc   :  { %v6184_v50 = vpop.eup %6183 }
 0x1dd   :  { %381 = vrot.lane.b32.xlu1 %v6184_v50, %s6443_s14 }
 0x24b   :  { %v380_v55 = vpop.permute.xlu0 %379 }
 0x24c   :  { %v385_v57 = vmul.f32 %v380_v55, %v375_v54 }
 0x24e   :  { %v6575_v58 = vadd.f32 %v387_v56, %v385_v57 }
 0x24f   :  { %v382_v60 = vpop.permute.xlu1 %381 }
 0x250   :  { %v386_v62 = vmul.f32 %v382_v60, %v376_v59  ;;  %393 = vrot.lane.b32.xlu0 %v6575_v58, %s6443_s14 }
 0x252   :  { %v6582_v0 = vadd.f32 %v388_v61, %v386_v62 }
 0x254   :  { %395 = vrot.lane.b32.xlu1 %v6582_v0, %s6443_s14 }
 0x2c2   :  { %v394_v2 = vpop.permute.xlu0 %393 }
 0x2c3   :  { %5484 = vmatprep.mubr.msk.f32.mxu1 %vm258_vm1, %v394_v2 }
 0x2c6   :  { %v396_v9 = vpop.permute.xlu1 %395 }
 0x2c7   :  { %5485 = vmatmul.mubr.msk.f32.vlgmr.msra.gmra.mrb[2].mxu1 %vm258_vm1, %v396_v9 }
 0x2c8   :  { %5886 = vmatpush3.bf16.msra.mxu1 %v6572_v53  ;;  %5495 = vmatprep.mubr.f32.mxu1 %v6441_v7 }
 0x2c9   :  { %5888 = vmatprep.subr.bf16.mxu1 %v6598_v6 }
 0x2cc   :  { %5890 = vmatpush3.bf16.msra.mxu1 %v6598_v6 }
 0x2cd   :  { %5892 = vmatprep.subr.bf16.mxu1 %v6486_v3 }
 0x2cf   :  { %5496 = vmatmul.mubr.f32.vlgmr.msra.gmra.mrb[4].mxu1 %v6441_v7 }
 0x2d0   :  { %5894 = vmatpush3.bf16.msra.mxu1 %v6486_v3  ;;  %5506 = vmatprep.mubr.msk.f32.mxu1 %vm258_vm1, %v394_v2 }
 0x2d1   :  { %5896 = vmatprep.subr.bf16.mxu1 %v6498_v8 }
 0x2d4   :  { %5898 = vmatpush3.bf16.msra.mxu1 %v6498_v8 }
 0x2d5   :  { %5908 = vmatprep.subr.bf16.mxu1 %v6572_v53 }
 0x2d7   :  { %5507 = vmatmul.mubr.msk.f32.vlgmr.msra.gmra.mrb[6].mxu1 %vm258_vm1, %v396_v9 }
 0x2d8   :  { %5910 = vmatpush3.bf16.msra.mxu1 %v6572_v53 }
 0x2d9   :  { %5912 = vmatprep.subr.bf16.mxu1 %v6598_v6 }
 0x2dc   :  { %5914 = vmatpush3.bf16.msra.mxu1 %v6598_v6 }
 0x2dd   :  { %5924 = vmatprep.subr.bf16.mxu1 %v6548_v46 }
 0x39a   :  { %v5486_v17 = vpop.f32.mrb[2].mxu1 }
 0x39b   :  { %v467_v18 = vpop.f32.mrb[3].mxu1  ;;  %v473_v37 = vadd.f32 %v5486_v17, %v6635_v34 }
 0x39c   :  { %v468_v38 = vadd.f32 %v467_v18, %v6635_v34 }
 0x3a2   :  { %v5497_v19 = vpop.f32.mrb[4].mxu1 }
 0x3a3   :  { %v542_v20 = vpop.f32.mrb[5].mxu1  ;;  %v566_v29 = vadd.f32 %v5497_v19, %v6619_v25  ;;  %v552_v39 = vadd.f32 %v5497_v19, %v473_v37 }
 0x3a4   :  { %v565_v30 = vadd.f32 %v542_v20, %v6619_v25  ;;  %v551_v41 = vadd.f32 %v542_v20, %v468_v38 }
 0x3a5   :  { %v5079_v43 = vmul.f32 -1.442695, %v552_v39  ;;  %v56_v39 = vld [vmem:[%s7407_s0 + $0x60] sm:$0xff] }
 0x3a6   :  { %v5078_v44 = vmul.f32 -1.442695, %v551_v41  ;;  %v58_v41 = vld [vmem:[%s7407_s0 + $0x70] sm:$0xff] }
 0x3aa   :  { %v5508_v24 = vpop.f32.mrb[6].mxu1 }
 0x3ab   :  { %v695_v26 = vadd.f32 %v5508_v24, %v6522_v16  ;;  %v671_v27 = vpop.f32.mrb[7].mxu1  ;;  %v681_v35 = vadd.f32 %v5508_v24, %v195_v32  ;;  %v48_v24 = vld [vmem:[%s7407_s0 + $0x20] sm:$0xff] }
 0x3ac   :  { %v694_v28 = vadd.f32 %v671_v27, %v6522_v16  ;;  %v680_v36 = vadd.f32 %v671_v27, %v190_v33  ;;  %v50_v27 = vld [vmem:[%s7407_s0 + $0x30] sm:$0xff]  ;;  %5447 = vmatprep.mubr.msk.f32.mxu0 %vm64_vm0, %v48_v24 }
 0x3ad   :  { %700 = vrot.lane.b32.xlu1 %v695_v26, %s6442_s5  ;;  %v5083_v40 = vmul.f32 -1.442695, %v681_v35  ;;  %v49_v26 = vld [vmem:[%s7407_s0 + $0x28] sm:$0xff] }
 0x3ae   :  { %698 = vrot.lane.b32.xlu0 %v694_v28, %s6442_s5  ;;  %v5082_v42 = vmul.f32 -1.442695, %v680_v36  ;;  %5448 = vmatmul.mubr.msk.f32.gmra.mrb[4].mxu0 %vm64_vm0, %v49_v26  ;;  %v53_v35 = vld [vmem:[%s7407_s0 + $0x48] sm:$0xff] }
 0x3af   :  { %6185 = vpow2.f32 %v5083_v40  ;;  %5450 = vmatprep.mubr.msk.f32.mxu0 %vm64_vm0, %v50_v27  ;;  %v57_v40 = vld [vmem:[%s7407_s0 + $0x68] sm:$0xff] }
 0x3b0   :  { %6187 = vpow2.f32 %v5082_v42  ;;  %v59_v42 = vld [vmem:[%s7407_s0 + $0x78] sm:$0xff] }
 0x3b1   :  { %571 = vrot.lane.b32.xlu1 %v566_v29, %s6442_s5  ;;  %6189 = vpow2.f32 %v5079_v43  ;;  %v51_v29 = vld [vmem:[%s7407_s0 + $0x38] sm:$0xff] }
 0x3b2   :  { %569 = vrot.lane.b32.xlu0 %v565_v30, %s6442_s5  ;;  %6191 = vpow2.f32 %v5078_v44  ;;  %5451 = vmatmul.mubr.msk.f32.gmra.mrb[6].mxu0 %vm64_vm0, %v51_v29 }
 0x3b9   :  { %v6186_v45 = vpop.eup %6185 }
 0x3ba   :  { %v6188_v47 = vpop.eup %6187  ;;  %v689_v15 = vadd.f32 1.0, %v6186_v45 }
 0x3bb   :  { %v6190_v49 = vpop.eup %6189  ;;  %v688_v50 = vadd.f32 1.0, %v6188_v47 }
 0x3bc   :  { %v6192_v51 = vpop.eup %6191  ;;  %v560_v52 = vadd.f32 1.0, %v6190_v49  ;;  %6193 = vrcp.f32 %v689_v15 }
 0x3bd   :  { %v559_v54 = vadd.f32 1.0, %v6192_v51  ;;  %6195 = vrcp.f32 %v688_v50 }
 0x3be   :  { %6197 = vrcp.f32 %v560_v52 }
 0x3bf   :  { %6199 = vrcp.f32 %v559_v54 }
 0x3c6   :  { %v6639_v55 = vpop.eup %6193 }
 0x3c7   :  { %v6641_v57 = vpop.eup %6195  ;;  %v719_v43 = vsub.f32 1.0, %v6639_v55  ;;  %v731_v47 = vmul.f32 %v6639_v55, %v6582_v0 }
 0x3c8   :  { %v6646_v62 = vpop.eup %6197  ;;  %v718_v45 = vsub.f32 1.0, %v6641_v57  ;;  %v730_v50 = vmul.f32 %v6641_v57, %v6575_v58 }
 0x3c9   :  { %v6649_v1 = vpop.eup %6199  ;;  %v590_v54 = vsub.f32 1.0, %v6646_v62 }
 0x41f   :  { %v701_v56 = vpop.permute.xlu1 %700 }
 0x420   :  { %v705_v59 = vmul.f32 %v6639_v55, %v701_v56  ;;  %v699_v60 = vpop.permute.xlu0 %698  ;;  %v601_v55 = vmul.f32 0.0, %v6649_v1 }
 0x421   :  { %v704_v61 = vmul.f32 %v6641_v57, %v699_v60  ;;  %v589_v60 = vsub.f32 1.0, %v6649_v1 }
 0x422   :  { %710 = vrot.lane.b32.xlu1 %v705_v59, %s6442_s5 }
 0x423   :  { %v572_v63 = vpop.permute.xlu1 %571  ;;  %708 = vrot.lane.b32.xlu0 %v704_v61, %s6442_s5  ;;  %v602_v61 = vmul.f32 0.0, %v6646_v62 }
 0x424   :  { %v576_v2 = vmul.f32 %v6646_v62, %v572_v63  ;;  %v570_v4 = vpop.permute.xlu0 %569 }
 0x425   :  { %v575_v5 = vmul.f32 %v6649_v1, %v570_v4 }
 0x426   :  { %581 = vrot.lane.b32.xlu1 %v576_v2, %s6442_s5 }
 0x427   :  { %579 = vrot.lane.b32.xlu0 %v575_v5, %s6442_s5 }
 0x481   :  { %v5449_v62 = vpop.f32.mrb[4].mxu0 }
 0x482   :  { %v199_v4 = vpop.f32.mrb[5].mxu0 }
 0x485   :  { %v6733_v5 = vpop.f32.mrb[6].mxu0 }
 0x494   :  { %v711_v9 = vpop.permute.xlu1 %710 }
 0x495   :  { %v715_v12 = vadd.f32 %v711_v9, %v195_v32  ;;  %v709_v13 = vpop.permute.xlu0 %708  ;;  %v52_v32 = vld [vmem:[%s7407_s0 + $0x40] sm:$0xff]  ;;  %v6735_v9 = vpop.f32.mrb[7].mxu0 }
 0x496   :  { %v714_v17 = vadd.f32 %v709_v13, %v190_v33  ;;  %5453 = vmatprep.mubr.msk.f32.mxu0 %vm64_vm0, %v52_v32 }
 0x497   :  { %6201 = vtanh.f32 %v715_v12  ;;  %5454 = vmatmul.mubr.msk.f32.gmra.mrb[8].mxu0 %vm64_vm0, %v53_v35 }
 0x498   :  { %6203 = vtanh.f32 %v714_v17  ;;  %v582_v18 = vpop.permute.xlu1 %581 }
 0x499   :  { %v586_v19 = vadd.f32 %v582_v18, %v473_v37  ;;  %v580_v20 = vpop.permute.xlu0 %579  ;;  %v54_v37 = vld [vmem:[%s7407_s0 + $0x50] sm:$0xff] }
 0x49a   :  { %v585_v23 = vadd.f32 %v580_v20, %v468_v38  ;;  %5456 = vmatprep.mubr.msk.f32.mxu0 %vm64_vm0, %v54_v37  ;;  %v55_v38 = vld [vmem:[%s7407_s0 + $0x58] sm:$0xff] }
 0x49b   :  { %6205 = vtanh.f32 %v586_v19  ;;  %5457 = vmatmul.mubr.msk.f32.gmra.mrb[10].mxu0 %vm64_vm0, %v55_v38 }
 0x49c   :  { %6207 = vtanh.f32 %v585_v23  ;;  %5459 = vmatprep.mubr.msk.f32.mxu0 %vm64_vm0, %v56_v39 }
 0x49f   :  { %5460 = vmatmul.mubr.msk.f32.gmra.mrb[12].mxu0 %vm64_vm0, %v57_v40 }
 0x4a0   :  { %5462 = vmatprep.mubr.msk.f32.mxu0 %vm64_vm0, %v58_v41  ;;  %v205_v41 = vadd.f32 %v5449_v62, %v6533_v22 }
 0x4a1   :  { %v6202_v28 = vpop.eup %6201 }
 0x4a2   :  { %v6204_v30 = vpop.eup %6203  ;;  %724 = vrot.lane.b32.xlu1 %v6202_v28, %s6443_s14 }
 0x4a3   :  { %722 = vrot.lane.b32.xlu0 %v6204_v30, %s6443_s14  ;;  %5463 = vmatmul.mubr.msk.f32.gmra.mrb[14].mxu0 %vm64_vm0, %v59_v42  ;;  %v200_v42 = vadd.f32 %v199_v4, %v6533_v22 }
 0x4a5   :  { %v6206_v33 = vpop.eup %6205 }
 0x4a6   :  { %v6208_v36 = vpop.eup %6207  ;;  %595 = vrot.lane.b32.xlu1 %v6206_v33, %s6443_s14 }
 0x4a7   :  { %593 = vrot.lane.b32.xlu0 %v6208_v36, %s6443_s14 }
 0x514   :  { %v725_v44 = vpop.permute.xlu1 %724 }
 0x515   :  { %v729_v15 = vmul.f32 %v725_v44, %v719_v43  ;;  %v723_v49 = vpop.permute.xlu0 %722 }
 0x516   :  { %v728_v51 = vmul.f32 %v723_v49, %v718_v45 }
 0x517   :  { %v6713_v52 = vadd.f32 %v731_v47, %v729_v15 }
 0x518   :  { %v6716_v56 = vadd.f32 %v730_v50, %v728_v51  ;;  %v596_v59 = vpop.permute.xlu1 %595 }
 0x519   :  { %v600_v63 = vmul.f32 %v596_v59, %v590_v54  ;;  %738 = vrot.lane.b32.xlu1 %v6713_v52, %s6443_s14  ;;  %v594_v0 = vpop.permute.xlu0 %593 }
 0x51a   :  { %v599_v58 = vmul.f32 %v594_v0, %v589_v60  ;;  %736 = vrot.lane.b32.xlu0 %v6716_v56, %s6443_s14 }
 0x51b   :  { %v6725_v57 = vadd.f32 %v602_v61, %v600_v63 }
 0x51c   :  { %v6727_v2 = vadd.f32 %v601_v55, %v599_v58 }
 0x51d   :  { %823 = vrot.lane.b32.xlu1 %v6725_v57, %s6443_s14 }
 0x51e   :  { %821 = vrot.lane.b32.xlu0 %v6727_v2, %s6443_s14 }
 0x56a   :  { %v6737_v1 = vpop.f32.mrb[8].mxu0 }
 0x56b   :  { %v6739_v12 = vpop.f32.mrb[9].mxu0 }
 0x56e   :  { %v6741_v13 = vpop.f32.mrb[10].mxu0 }
 0x56f   :  { %v6743_v17 = vpop.f32.mrb[11].mxu0 }
 0x572   :  { %v6745_v18 = vpop.f32.mrb[12].mxu0 }
 0x573   :  { %v6747_v19 = vpop.f32.mrb[13].mxu0 }
 0x576   :  { %v6749_v20 = vpop.f32.mrb[14].mxu0 }
 0x577   :  { %v6751_v23 = vpop.f32.mrb[15].mxu0 }
 0x58b   :  { %v739_v24 = vpop.permute.xlu1 %738 }
 0x58c   :  { %v737_v26 = vpop.permute.xlu0 %736 }
 0x58d   :  { %5517 = vmatprep.mubr.msk.f32.mxu0 %vm258_vm1, %v737_v26 }
 0x58e   :  { %5518 = vmatmul.mubr.msk.f32.vlgmr.msra.gmra.mrb[16].mxu0 %vm258_vm1, %v739_v24 }
 0x58f   :  { %5918 = vmatpush3.bf16.msra.mxu0 %v6486_v3  ;;  %5539 = vmatprep.mubr.msk.f32.mxu0 %vm258_vm1, %v737_v26  ;;  %v824_v28 = vpop.permute.xlu1 %823 }
 0x590   :  { %v822_v27 = vpop.permute.xlu0 %821  ;;  %5920 = vmatprep.subr.bf16.mxu0 %v6498_v8 }
 0x591   :  { %5528 = vmatprep.mubr.msk.f32.mxu1 %vm258_vm1, %v822_v27 }
 0x592   :  { %5529 = vmatmul.mubr.msk.f32.vlgmr.msra.gmra.mrb[8].mxu1 %vm258_vm1, %v824_v28 }
 0x593   :  { %5922 = vmatpush3.bf16.msra.mxu0 %v6498_v8  ;;  %5926 = vmatpush3.bf16.msra.mxu1 %v6548_v46 }
 0x594   :  { %5928 = vmatprep.subr.bf16.mxu1 %v6553_v48  ;;  %5932 = vmatprep.subr.bf16.mxu0 %v6572_v53 }
 0x596   :  { %5540 = vmatmul.mubr.msk.f32.vlgmr.msra.gmra.mrb[18].mxu0 %vm258_vm1, %v739_v24 }
 0x597   :  { %5930 = vmatpush3.bf16.msra.mxu1 %v6553_v48  ;;  %5934 = vmatpush3.bf16.msra.mxu0 %v6572_v53 }
 0x598   :  { %5940 = vmatprep.subr.bf16.mxu1 %v6486_v3  ;;  %5936 = vmatprep.subr.bf16.mxu0 %v6598_v6 }
 0x59b   :  { %5938 = vmatpush3.bf16.msra.mxu0 %v6598_v6 }
 0x59c   :  { %5948 = vmatprep.subr.bf16.mxu0 %v6548_v46 }
 0x661   :  { %v5519_v29 = vpop.f32.mrb[16].mxu0 }
 0x662   :  { %v810_v30 = vpop.f32.mrb[17].mxu0  ;;  %v816_v45 = vadd.f32 %v5519_v29, %v6635_v34 }
 0x663   :  { %v811_v47 = vadd.f32 %v810_v30, %v6635_v34 }
 0x665   :  { %v5530_v32 = vpop.f32.mrb[8].mxu1 }
 0x666   :  { %v895_v33 = vpop.f32.mrb[9].mxu1  ;;  %v919_v39 = vadd.f32 %v5530_v32, %v6619_v25  ;;  %v905_v15 = vadd.f32 %v5530_v32, %v816_v45 }
 0x667   :  { %v918_v40 = vadd.f32 %v895_v33, %v6619_v25  ;;  %v904_v50 = vadd.f32 %v895_v33, %v811_v47 }
 0x668   :  { %v5089_v54 = vmul.f32 -1.442695, %v905_v15 }
 0x669   :  { %v5541_v35 = vpop.f32.mrb[18].mxu0  ;;  %v5088_v59 = vmul.f32 -1.442695, %v904_v50 }
 0x66a   :  { %v1048_v36 = vadd.f32 %v5541_v35, %v6522_v16  ;;  %v1024_v37 = vpop.f32.mrb[19].mxu0  ;;  %v1034_v43 = vadd.f32 %v5541_v35, %v205_v41 }
 0x66b   :  { %v1047_v38 = vadd.f32 %v1024_v37, %v6522_v16  ;;  %v1033_v44 = vadd.f32 %v1024_v37, %v200_v42 }
 0x66c   :  { %1053 = vrot.lane.b32.xlu1 %v1048_v36, %s6442_s5  ;;  %v5093_v49 = vmul.f32 -1.442695, %v1034_v43 }
 0x66d   :  { %1051 = vrot.lane.b32.xlu0 %v1047_v38, %s6442_s5  ;;  %v5092_v51 = vmul.f32 -1.442695, %v1033_v44 }
 0x66e   :  { %6209 = vpow2.f32 %v5093_v49 }
 0x66f   :  { %6211 = vpow2.f32 %v5092_v51 }
 0x670   :  { %924 = vrot.lane.b32.xlu1 %v919_v39, %s6442_s5  ;;  %6213 = vpow2.f32 %v5089_v54 }
 0x671   :  { %922 = vrot.lane.b32.xlu0 %v918_v40, %s6442_s5  ;;  %6215 = vpow2.f32 %v5088_v59 }
 0x678   :  { %v6210_v60 = vpop.eup %6209 }
 0x679   :  { %v6212_v61 = vpop.eup %6211  ;;  %v1042_v63 = vadd.f32 1.0, %v6210_v60 }
 0x67a   :  { %v6214_v0 = vpop.eup %6213  ;;  %v1041_v55 = vadd.f32 1.0, %v6212_v61 }
 0x67b   :  { %v6216_v58 = vpop.eup %6215  ;;  %v913_v62 = vadd.f32 1.0, %v6214_v0  ;;  %6217 = vrcp.f32 %v1042_v63 }
 0x67c   :  { %v912_v4 = vadd.f32 1.0, %v6216_v58  ;;  %6219 = vrcp.f32 %v1041_v55 }
 0x67d   :  { %6221 = vrcp.f32 %v913_v62 }
 0x67e   :  { %6223 = vrcp.f32 %v912_v4 }
 0x685   :  { %v6218_v24 = vpop.eup %6217 }
 0x686   :  { %v6220_v27 = vpop.eup %6219 }
 0x687   :  { %v6222_v32 = vpop.eup %6221  ;;  %v1071_v63 = vsub.f32 1.0, %v6220_v27  ;;  %v1083_v55 = vmul.f32 %v6220_v27, %v6716_v56 }
 0x688   :  { %v6224_v35 = vpop.eup %6223  ;;  %v943_v4 = vsub.f32 1.0, %v6222_v32 }
 0x6de   :  { %v1054_v26 = vpop.permute.xlu1 %1053 }
 0x6df   :  { %v1058_v28 = vmul.f32 %v6218_v24, %v1054_v26  ;;  %v1052_v29 = vpop.permute.xlu0 %1051 }
 0x6e0   :  { %v1057_v30 = vmul.f32 %v6220_v27, %v1052_v29  ;;  %v942_v29 = vsub.f32 1.0, %v6224_v35 }
 0x6e1   :  { %1063 = vrot.lane.b32.xlu1 %v1058_v28, %s6442_s5 }
 0x6e2   :  { %v925_v33 = vpop.permute.xlu1 %924  ;;  %1061 = vrot.lane.b32.xlu0 %v1057_v30, %s6442_s5  ;;  %v955_v30 = vmul.f32 %v6222_v32, %v6725_v57 }
 0x6e3   :  { %v929_v36 = vmul.f32 %v6222_v32, %v925_v33  ;;  %v923_v37 = vpop.permute.xlu0 %922 }
 0x6e4   :  { %v928_v38 = vmul.f32 %v6224_v35, %v923_v37 }
 0x6e5   :  { %934 = vrot.lane.b32.xlu1 %v929_v36, %s6442_s5 }
 0x6e6   :  { %932 = vrot.lane.b32.xlu0 %v928_v38, %s6442_s5 }
 0x753   :  { %v1064_v39 = vpop.permute.xlu1 %1063 }
 0x754   :  { %v1068_v40 = vadd.f32 %v1064_v39, %v205_v41  ;;  %v1062_v43 = vpop.permute.xlu0 %1061  ;;  %v1072_v41 = vsub.f32 1.0, %v6218_v24 }
 0x755   :  { %v1067_v44 = vadd.f32 %v1062_v43, %v200_v42 }
 0x756   :  { %6225 = vtanh.f32 %v1068_v40 }
 0x757   :  { %6227 = vtanh.f32 %v1067_v44  ;;  %v935_v15 = vpop.permute.xlu1 %934 }
 0x758   :  { %v939_v49 = vadd.f32 %v935_v15, %v816_v45  ;;  %v933_v50 = vpop.permute.xlu0 %932  ;;  %v1084_v45 = vmul.f32 %v6218_v24, %v6713_v52  ;;  %v954_v52 = vmul.f32 %v6224_v35, %v6727_v2 }
 0x759   :  { %v938_v51 = vadd.f32 %v933_v50, %v811_v47 }
 0x75a   :  { %6229 = vtanh.f32 %v939_v49 }
 0x75b   :  { %6231 = vtanh.f32 %v938_v51 }
 0x760   :  { %v6226_v54 = vpop.eup %6225 }
 0x761   :  { %v6228_v59 = vpop.eup %6227  ;;  %1077 = vrot.lane.b32.xlu1 %v6226_v54, %s6443_s14 }
 0x762   :  { %1075 = vrot.lane.b32.xlu0 %v6228_v59, %s6443_s14 }
 0x764   :  { %v6230_v60 = vpop.eup %6229 }
 0x765   :  { %v6232_v61 = vpop.eup %6231  ;;  %948 = vrot.lane.b32.xlu1 %v6230_v60, %s6443_s14 }
 0x766   :  { %946 = vrot.lane.b32.xlu0 %v6232_v61, %s6443_s14 }
 0x7d3   :  { %v1078_v42 = vpop.permute.xlu1 %1077 }
 0x7d4   :  { %v1082_v47 = vmul.f32 %v1078_v42, %v1072_v41  ;;  %v1076_v0 = vpop.permute.xlu0 %1075  ;;  %v215_v41 = vadd.f32 %v6733_v5, %v6533_v22  ;;  %v210_v42 = vadd.f32 %v6735_v9, %v6533_v22 }
 0x7d5   :  { %v1081_v58 = vmul.f32 %v1076_v0, %v1071_v63 }
 0x7d6   :  { %v6793_v62 = vadd.f32 %v1084_v45, %v1082_v47 }
 0x7d7   :  { %v6795_v26 = vadd.f32 %v1083_v55, %v1081_v58  ;;  %v949_v28 = vpop.permute.xlu1 %948 }
 0x7d8   :  { %v953_v33 = vmul.f32 %v949_v28, %v943_v4  ;;  %1091 = vrot.lane.b32.xlu1 %v6793_v62, %s6443_s14  ;;  %v947_v36 = vpop.permute.xlu0 %946 }
 0x7d9   :  { %v952_v24 = vmul.f32 %v947_v36, %v942_v29  ;;  %1089 = vrot.lane.b32.xlu0 %v6795_v26, %s6443_s14 }
 0x7da   :  { %v6803_v56 = vadd.f32 %v955_v30, %v953_v33 }
 0x7db   :  { %v6805_v27 = vadd.f32 %v954_v52, %v952_v24 }
 0x7dc   :  { %1176 = vrot.lane.b32.xlu1 %v6803_v56, %s6443_s14 }
 0x7dd   :  { %1174 = vrot.lane.b32.xlu0 %v6805_v27, %s6443_s14 }
 0x84a   :  { %v1092_v57 = vpop.permute.xlu1 %1091 }
 0x84b   :  { %v1090_v32 = vpop.permute.xlu0 %1089 }
 0x84c   :  { %5550 = vmatprep.mubr.msk.f32.mxu1 %vm258_vm1, %v1090_v32 }
 0x84d   :  { %5551 = vmatmul.mubr.msk.f32.vlgmr.msra.gmra.mrb[10].mxu1 %vm258_vm1, %v1092_v57 }
 0x84e   :  { %5942 = vmatpush3.bf16.msra.mxu1 %v6486_v3  ;;  %5572 = vmatprep.mubr.msk.f32.mxu1 %vm258_vm1, %v1090_v32  ;;  %v1177_v35 = vpop.permute.xlu1 %1176 }
 0x84f   :  { %v1175_v2 = vpop.permute.xlu0 %1174  ;;  %5944 = vmatprep.subr.bf16.mxu1 %v6498_v8 }
 0x850   :  { %5561 = vmatprep.mubr.msk.f32.mxu0 %vm258_vm1, %v1175_v2 }
 0x851   :  { %5562 = vmatmul.mubr.msk.f32.vlgmr.msra.gmra.mrb[20].mxu0 %vm258_vm1, %v1177_v35 }
 0x852   :  { %5946 = vmatpush3.bf16.msra.mxu1 %v6498_v8  ;;  %5950 = vmatpush3.bf16.msra.mxu0 %v6548_v46 }
 0x853   :  { %5956 = vmatprep.subr.bf16.mxu1 %v6572_v53  ;;  %5952 = vmatprep.subr.bf16.mxu0 %v6553_v48 }
 0x855   :  { %5573 = vmatmul.mubr.msk.f32.vlgmr.msra.gmra.mrb[12].mxu1 %vm258_vm1, %v1092_v57 }
 0x856   :  { %5958 = vmatpush3.bf16.msra.mxu1 %v6572_v53  ;;  %5954 = vmatpush3.bf16.msra.mxu0 %v6553_v48 }
 0x857   :  { %5960 = vmatprep.subr.bf16.mxu1 %v6598_v6  ;;  %5964 = vmatprep.subr.bf16.mxu0 %v6486_v3 }
 0x85a   :  { %5962 = vmatpush3.bf16.msra.mxu1 %v6598_v6 }
 0x85b   :  { %5972 = vmatprep.subr.bf16.mxu1 %v6548_v46 }
 0x920   :  { %v5552_v37 = vpop.f32.mrb[10].mxu1 }
 0x921   :  { %v1163_v38 = vpop.f32.mrb[11].mxu1  ;;  %v1169_v54 = vadd.f32 %v5552_v37, %v6635_v34 }
 0x922   :  { %v1164_v59 = vadd.f32 %v1163_v38, %v6635_v34 }
 0x924   :  { %v5563_v39 = vpop.f32.mrb[20].mxu0 }
 0x925   :  { %v1272_v40 = vadd.f32 %v5563_v39, %v6619_v25  ;;  %v1248_v43 = vpop.f32.mrb[21].mxu0  ;;  %v1258_v60 = vadd.f32 %v5563_v39, %v1169_v54 }
 0x926   :  { %v1271_v44 = vadd.f32 %v1248_v43, %v6619_v25  ;;  %v1257_v61 = vadd.f32 %v1248_v43, %v1164_v59 }
 0x927   :  { %1277 = vrot.lane.b32.xlu1 %v1272_v40, %s6442_s5  ;;  %v5099_v63 = vmul.f32 -1.442695, %v1258_v60 }
 0x928   :  { %v5574_v15 = vpop.f32.mrb[12].mxu1  ;;  %1275 = vrot.lane.b32.xlu0 %v1271_v44, %s6442_s5  ;;  %v5098_v47 = vmul.f32 -1.442695, %v1257_v61 }
 0x929   :  { %v1401_v49 = vadd.f32 %v5574_v15, %v6522_v16  ;;  %v1377_v50 = vpop.f32.mrb[13].mxu1  ;;  %v1387_v45 = vadd.f32 %v5574_v15, %v215_v41  ;;  %6233 = vpow2.f32 %v5099_v63 }
 0x92a   :  { %v1400_v51 = vadd.f32 %v1377_v50, %v6522_v16  ;;  %v1386_v0 = vadd.f32 %v1377_v50, %v210_v42  ;;  %6235 = vpow2.f32 %v5098_v47 }
 0x92b   :  { %1406 = vrot.lane.b32.xlu1 %v1401_v49, %s6442_s5  ;;  %v5103_v55 = vmul.f32 -1.442695, %v1387_v45 }
 0x92c   :  { %1404 = vrot.lane.b32.xlu0 %v1400_v51, %s6442_s5  ;;  %v5102_v58 = vmul.f32 -1.442695, %v1386_v0 }
 0x92d   :  { %6237 = vpow2.f32 %v5103_v55 }
 0x92e   :  { %6239 = vpow2.f32 %v5102_v58 }
 0x933   :  { %v6234_v4 = vpop.eup %6233 }
 0x934   :  { %v6236_v28 = vpop.eup %6235  ;;  %v1266_v29 = vadd.f32 1.0, %v6234_v4 }
 0x935   :  { %v1265_v33 = vadd.f32 1.0, %v6236_v28 }
 0x936   :  { %6241 = vrcp.f32 %v1266_v29 }
 0x937   :  { %v6238_v30 = vpop.eup %6237  ;;  %6243 = vrcp.f32 %v1265_v33 }
 0x938   :  { %v6240_v36 = vpop.eup %6239  ;;  %v1395_v5 = vadd.f32 1.0, %v6238_v30 }
 0x939   :  { %v1394_v9 = vadd.f32 1.0, %v6240_v36 }
 0x93a   :  { %6245 = vrcp.f32 %v1395_v5 }
 0x93b   :  { %6247 = vrcp.f32 %v1394_v9 }
 0x940   :  { %v6242_v52 = vpop.eup %6241 }
 0x941   :  { %v6244_v57 = vpop.eup %6243 }
 0x942   :  { %v1295_v4 = vsub.f32 1.0, %v6244_v57  ;;  %v1307_v29 = vmul.f32 %v6244_v57, %v6805_v27 }
 0x944   :  { %v6246_v37 = vpop.eup %6245 }
 0x945   :  { %v6248_v39 = vpop.eup %6247  ;;  %v1425_v36 = vsub.f32 1.0, %v6246_v37 }
 0x999   :  { %v1278_v24 = vpop.permute.xlu1 %1277 }
 0x99a   :  { %v1282_v32 = vmul.f32 %v6242_v52, %v1278_v24  ;;  %v1276_v2 = vpop.permute.xlu0 %1275  ;;  %v1424_v24 = vsub.f32 1.0, %v6248_v39 }
 0x99b   :  { %v1281_v35 = vmul.f32 %v6244_v57, %v1276_v2 }
 0x99c   :  { %1287 = vrot.lane.b32.xlu1 %v1282_v32, %s6442_s5  ;;  %v1437_v32 = vmul.f32 %v6246_v37, %v6793_v62 }
 0x99d   :  { %v1407_v38 = vpop.permute.xlu1 %1406  ;;  %1285 = vrot.lane.b32.xlu0 %v1281_v35, %s6442_s5 }
 0x99e   :  { %v1411_v40 = vmul.f32 %v6246_v37, %v1407_v38  ;;  %v1405_v43 = vpop.permute.xlu0 %1404 }
 0x99f   :  { %v1410_v44 = vmul.f32 %v6248_v39, %v1405_v43 }
 0x9a0   :  { %1416 = vrot.lane.b32.xlu1 %v1411_v40, %s6442_s5 }
 0x9a1   :  { %1414 = vrot.lane.b32.xlu0 %v1410_v44, %s6442_s5 }
 0xa0e   :  { %v1288_v15 = vpop.permute.xlu1 %1287 }
 0xa0f   :  { %v1292_v49 = vadd.f32 %v1288_v15, %v1169_v54  ;;  %v1286_v50 = vpop.permute.xlu0 %1285  ;;  %v1296_v54 = vsub.f32 1.0, %v6242_v52 }
 0xa10   :  { %v1291_v51 = vadd.f32 %v1286_v50, %v1164_v59 }
 0xa11   :  { %6249 = vtanh.f32 %v1292_v49 }
 0xa12   :  { %6251 = vtanh.f32 %v1291_v51  ;;  %v1417_v60 = vpop.permute.xlu1 %1416 }
 0xa13   :  { %v1421_v61 = vadd.f32 %v1417_v60, %v215_v41  ;;  %v1415_v63 = vpop.permute.xlu0 %1414  ;;  %v1308_v41 = vmul.f32 %v6242_v52, %v6803_v56  ;;  %v1436_v56 = vmul.f32 %v6248_v39, %v6795_v26 }
 0xa14   :  { %v1420_v45 = vadd.f32 %v1415_v63, %v210_v42 }
 0xa15   :  { %6253 = vtanh.f32 %v1421_v61 }
 0xa16   :  { %6255 = vtanh.f32 %v1420_v45 }
 0xa1b   :  { %v6250_v47 = vpop.eup %6249 }
 0xa1c   :  { %v6252_v0 = vpop.eup %6251  ;;  %1301 = vrot.lane.b32.xlu1 %v6250_v47, %s6443_s14 }
 0xa1d   :  { %1299 = vrot.lane.b32.xlu0 %v6252_v0, %s6443_s14 }
 0xa1f   :  { %v6254_v55 = vpop.eup %6253 }
 0xa20   :  { %v6256_v58 = vpop.eup %6255  ;;  %1430 = vrot.lane.b32.xlu1 %v6254_v55, %s6443_s14 }
 0xa21   :  { %1428 = vrot.lane.b32.xlu0 %v6256_v58, %s6443_s14 }
 0xa8e   :  { %v1302_v59 = vpop.permute.xlu1 %1301 }
 0xa8f   :  { %v1306_v42 = vmul.f32 %v1302_v59, %v1296_v54  ;;  %v1300_v28 = vpop.permute.xlu0 %1299  ;;  %v225_v54 = vadd.f32 %v6737_v1, %v6533_v22  ;;  %v220_v59 = vadd.f32 %v6739_v12, %v6533_v22 }
 0xa90   :  { %v1305_v30 = vmul.f32 %v1300_v28, %v1295_v4 }
 0xa91   :  { %v6853_v33 = vadd.f32 %v1308_v41, %v1306_v42 }
 0xa92   :  { %v6855_v5 = vadd.f32 %v1307_v29, %v1305_v30  ;;  %v1431_v9 = vpop.permute.xlu1 %1430 }
 0xa93   :  { %v1435_v2 = vmul.f32 %v1431_v9, %v1425_v36  ;;  %1529 = vrot.lane.b32.xlu1 %v6853_v33, %s6443_s14  ;;  %v1429_v35 = vpop.permute.xlu0 %1428 }
 0xa94   :  { %v1434_v52 = vmul.f32 %v1429_v35, %v1424_v24  ;;  %1527 = vrot.lane.b32.xlu0 %v6855_v5, %s6443_s14 }
 0xa95   :  { %v6863_v27 = vadd.f32 %v1437_v32, %v1435_v2 }
 0xa96   :  { %v6865_v57 = vadd.f32 %v1436_v56, %v1434_v52 }
 0xa97   :  { %1444 = vrot.lane.b32.xlu1 %v6863_v27, %s6443_s14 }
 0xa98   :  { %1442 = vrot.lane.b32.xlu0 %v6865_v57, %s6443_s14 }
 0xb05   :  { %v1530_v62 = vpop.permute.xlu1 %1529 }
 0xb06   :  { %v1528_v37 = vpop.permute.xlu0 %1527 }
 0xb07   :  { %5594 = vmatprep.mubr.msk.f32.mxu1 %vm258_vm1, %v1528_v37 }
 0xb08   :  { %5595 = vmatmul.mubr.msk.f32.vlgmr.msra.gmra.mrb[14].mxu1 %vm258_vm1, %v1530_v62 }
 0xb09   :  { %5974 = vmatpush3.bf16.msra.mxu1 %v6548_v46  ;;  %v1445_v38 = vpop.permute.xlu1 %1444 }
 0xb0a   :  { %v1443_v26 = vpop.permute.xlu0 %1442  ;;  %5976 = vmatprep.subr.bf16.mxu1 %v6553_v48 }
 0xb0b   :  { %5583 = vmatprep.mubr.msk.f32.mxu0 %vm258_vm1, %v1443_v26 }
 0xb0c   :  { %5584 = vmatmul.mubr.msk.f32.vlgmr.msra.gmra.mrb[22].mxu0 %vm258_vm1, %v1445_v38 }
 0xb0d   :  { %5966 = vmatpush3.bf16.msra.mxu0 %v6486_v3  ;;  %5605 = vmatprep.mubr.msk.f32.mxu0 %vm258_vm1, %v1443_v26 }
 0xb0e   :  { %5968 = vmatprep.subr.bf16.mxu0 %v6498_v8  ;;  %5978 = vmatpush3.bf16.msra.mxu1 %v6553_v48 }
 0xb0f   :  { %5988 = vmatprep.subr.bf16.mxu1 %v6486_v3 }
 0xb11   :  { %5970 = vmatpush3.bf16.msra.mxu0 %v6498_v8 }
 0xb12   :  { %5980 = vmatprep.subr.bf16.mxu0 %v6572_v53 }
 0xb14   :  { %5606 = vmatmul.mubr.msk.f32.vlgmr.msra.gmra.mrb[24].mxu0 %vm258_vm1, %v1445_v38 }
 0xb15   :  { %5982 = vmatpush3.bf16.msra.mxu0 %v6572_v53 }
 0xb16   :  { %5984 = vmatprep.subr.bf16.mxu0 %v6598_v6 }
 0xb19   :  { %5986 = vmatpush3.bf16.msra.mxu0 %v6598_v6 }
 0xb1a   :  { %5996 = vmatprep.subr.bf16.mxu0 %v6548_v46 }
 0xbdb   :  { %v5596_v39 = vpop.f32.mrb[14].mxu1 }
 0xbdc   :  { %v1625_v40 = vadd.f32 %v5596_v39, %v6619_v25  ;;  %v1601_v43 = vpop.f32.mrb[15].mxu1 }
 0xbdd   :  { %v1624_v44 = vadd.f32 %v1601_v43, %v6619_v25 }
 0xbde   :  { %1630 = vrot.lane.b32.xlu1 %v1625_v40, %s6442_s5 }
 0xbdf   :  { %1628 = vrot.lane.b32.xlu0 %v1624_v44, %s6442_s5  ;;  %v5585_v15 = vpop.f32.mrb[22].mxu0 }
 0xbe0   :  { %v1516_v49 = vpop.f32.mrb[23].mxu0  ;;  %v1522_v63 = vadd.f32 %v5585_v15, %v6635_v34 }
 0xbe1   :  { %v1517_v45 = vadd.f32 %v1516_v49, %v6635_v34 }
 0xbe2   :  { %v1611_v47 = vadd.f32 %v5596_v39, %v1522_v63 }
 0xbe3   :  { %v1610_v0 = vadd.f32 %v1601_v43, %v1517_v45 }
 0xbe4   :  { %v5109_v55 = vmul.f32 -1.442695, %v1611_v47 }
 0xbe5   :  { %v5108_v58 = vmul.f32 -1.442695, %v1610_v0 }
 0xbe6   :  { %6257 = vpow2.f32 %v5109_v55 }
 0xbe7   :  { %v5607_v50 = vpop.f32.mrb[24].mxu0  ;;  %6259 = vpow2.f32 %v5108_v58 }
 0xbe8   :  { %v1754_v51 = vadd.f32 %v5607_v50, %v6522_v16  ;;  %v1730_v60 = vpop.f32.mrb[25].mxu0  ;;  %v1740_v4 = vadd.f32 %v5607_v50, %v225_v54 }
 0xbe9   :  { %v1753_v61 = vadd.f32 %v1730_v60, %v6522_v16  ;;  %v1739_v41 = vadd.f32 %v1730_v60, %v220_v59 }
 0xbea   :  { %1759 = vrot.lane.b32.xlu1 %v1754_v51, %s6442_s5  ;;  %v5113_v42 = vmul.f32 -1.442695, %v1740_v4 }
 0xbeb   :  { %1757 = vrot.lane.b32.xlu0 %v1753_v61, %s6442_s5  ;;  %v5112_v28 = vmul.f32 -1.442695, %v1739_v41 }
 0xbec   :  { %6261 = vpow2.f32 %v5113_v42 }
 0xbed   :  { %6263 = vpow2.f32 %v5112_v28 }
 0xbf0   :  { %v6258_v29 = vpop.eup %6257 }
 0xbf1   :  { %v6260_v30 = vpop.eup %6259  ;;  %v1619_v36 = vadd.f32 1.0, %v6258_v29 }
 0xbf2   :  { %v1618_v9 = vadd.f32 1.0, %v6260_v30 }
 0xbf3   :  { %6265 = vrcp.f32 %v1619_v36 }
 0xbf4   :  { %6267 = vrcp.f32 %v1618_v9 }
 0xbf6   :  { %v6262_v24 = vpop.eup %6261 }
 0xbf7   :  { %v6264_v32 = vpop.eup %6263  ;;  %v1748_v2 = vadd.f32 1.0, %v6262_v24 }
 0xbf8   :  { %v1747_v35 = vadd.f32 1.0, %v6264_v32 }
 0xbf9   :  { %6269 = vrcp.f32 %v1748_v2 }
 0xbfa   :  { %6271 = vrcp.f32 %v1747_v35 }
 0xbfd   :  { %v6266_v1 = vpop.eup %6265 }
 0xbfe   :  { %v6268_v52 = vpop.eup %6267 }
 0xbff   :  { %v1648_v42 = vsub.f32 1.0, %v6268_v52 }
 0xc03   :  { %v6270_v26 = vpop.eup %6269 }
 0xc04   :  { %v6272_v39 = vpop.eup %6271  ;;  %v1778_v24 = vsub.f32 1.0, %v6270_v26 }
 0xc05   :  { %v1777_v2 = vsub.f32 1.0, %v6272_v39 }
 0xc50   :  { %v1631_v56 = vpop.permute.xlu1 %1630 }
 0xc51   :  { %v1635_v12 = vmul.f32 %v6266_v1, %v1631_v56  ;;  %v1629_v62 = vpop.permute.xlu0 %1628 }
 0xc52   :  { %v1634_v37 = vmul.f32 %v6268_v52, %v1629_v62 }
 0xc53   :  { %1640 = vrot.lane.b32.xlu1 %v1635_v12, %s6442_s5 }
 0xc54   :  { %1638 = vrot.lane.b32.xlu0 %v1634_v37, %s6442_s5 }
 0xc5c   :  { %v1760_v38 = vpop.permute.xlu1 %1759 }
 0xc5d   :  { %v1764_v40 = vmul.f32 %v6270_v26, %v1760_v38  ;;  %v1758_v43 = vpop.permute.xlu0 %1757 }
 0xc5e   :  { %v1763_v44 = vmul.f32 %v6272_v39, %v1758_v43 }
 0xc5f   :  { %1769 = vrot.lane.b32.xlu1 %v1764_v40, %s6442_s5 }
 0xc60   :  { %1767 = vrot.lane.b32.xlu0 %v1763_v44, %s6442_s5 }
 0xcc5   :  { %v1641_v15 = vpop.permute.xlu1 %1640 }
 0xcc6   :  { %v1645_v49 = vadd.f32 %v1641_v15, %v1522_v63  ;;  %v1639_v50 = vpop.permute.xlu0 %1638  ;;  %v1649_v63 = vsub.f32 1.0, %v6266_v1 }
 0xcc7   :  { %v1644_v51 = vadd.f32 %v1639_v50, %v1517_v45 }
 0xcc8   :  { %6273 = vtanh.f32 %v1645_v49 }
 0xcc9   :  { %6275 = vtanh.f32 %v1644_v51 }
 0xcd1   :  { %v1770_v60 = vpop.permute.xlu1 %1769 }
 0xcd2   :  { %v6274_v61 = vpop.eup %6273  ;;  %v1774_v47 = vadd.f32 %v1770_v60, %v225_v54  ;;  %v1768_v0 = vpop.permute.xlu0 %1767  ;;  %v1661_v54 = vmul.f32 %v6266_v1, %v6853_v33  ;;  %v1790_v33 = vmul.f32 %v6270_v26, %v6863_v27 }
 0xcd3   :  { %v6276_v55 = vpop.eup %6275  ;;  %v1773_v58 = vadd.f32 %v1768_v0, %v220_v59  ;;  %1654 = vrot.lane.b32.xlu1 %v6274_v61, %s6443_s14  ;;  %v1660_v59 = vmul.f32 %v6268_v52, %v6855_v5  ;;  %v1789_v5 = vmul.f32 %v6272_v39, %v6865_v57 }
 0xcd4   :  { %6277 = vtanh.f32 %v1774_v47  ;;  %1652 = vrot.lane.b32.xlu0 %v6276_v55, %s6443_s14 }
 0xcd5   :  { %6279 = vtanh.f32 %v1773_v58 }
 0xcde   :  { %v6278_v4 = vpop.eup %6277 }
 0xcdf   :  { %v6280_v41 = vpop.eup %6279  ;;  %1783 = vrot.lane.b32.xlu1 %v6278_v4, %s6443_s14 }
 0xce0   :  { %1781 = vrot.lane.b32.xlu0 %v6280_v41, %s6443_s14  ;;  %v235_v41 = vadd.f32 %v6741_v13, %v6533_v22 }
 0xd45   :  { %v1655_v45 = vpop.permute.xlu1 %1654 }
 0xd46   :  { %v1659_v28 = vmul.f32 %v1655_v45, %v1649_v63  ;;  %v1653_v29 = vpop.permute.xlu0 %1652  ;;  %v230_v45 = vadd.f32 %v6743_v17, %v6533_v22 }
 0xd47   :  { %v1658_v30 = vmul.f32 %v1653_v29, %v1648_v42 }
 0xd48   :  { %v6913_v36 = vadd.f32 %v1661_v54, %v1659_v28 }
 0xd49   :  { %v6915_v9 = vadd.f32 %v1660_v59, %v1658_v30 }
 0xd4a   :  { %1882 = vrot.lane.b32.xlu1 %v6913_v36, %s6443_s14 }
 0xd4b   :  { %1880 = vrot.lane.b32.xlu0 %v6915_v9, %s6443_s14 }
 0xd51   :  { %v1784_v32 = vpop.permute.xlu1 %1783 }
 0xd52   :  { %v1788_v35 = vmul.f32 %v1784_v32, %v1778_v24  ;;  %v1782_v1 = vpop.permute.xlu0 %1781 }
 0xd53   :  { %v1787_v56 = vmul.f32 %v1782_v1, %v1777_v2 }
 0xd54   :  { %v6923_v52 = vadd.f32 %v1790_v33, %v1788_v35 }
 0xd55   :  { %v6925_v12 = vadd.f32 %v1789_v5, %v1787_v56 }
 0xd56   :  { %1797 = vrot.lane.b32.xlu1 %v6923_v52, %s6443_s14 }
 0xd57   :  { %1795 = vrot.lane.b32.xlu0 %v6925_v12, %s6443_s14 }
 0xdbc   :  { %v1883_v37 = vpop.permute.xlu1 %1882 }
 0xdbd   :  { %v1881_v62 = vpop.permute.xlu0 %1880 }
 0xdbe   :  { %5627 = vmatprep.mubr.msk.f32.mxu0 %vm258_vm1, %v1881_v62 }
 0xdbf   :  { %5628 = vmatmul.mubr.msk.f32.vlgmr.msra.gmra.mrb[26].mxu0 %vm258_vm1, %v1883_v37 }
 0xdc0   :  { %5998 = vmatpush3.bf16.msra.mxu0 %v6548_v46 }
 0xdc1   :  { %6000 = vmatprep.subr.bf16.mxu0 %v6553_v48 }
 0xdc4   :  { %6002 = vmatpush3.bf16.msra.mxu0 %v6553_v48 }
 0xdc5   :  { %6012 = vmatprep.subr.bf16.mxu0 %v6486_v3 }
 0xdc8   :  { %v1798_v57 = vpop.permute.xlu1 %1797 }
 0xdc9   :  { %v1796_v27 = vpop.permute.xlu0 %1795 }
 0xdca   :  { %5616 = vmatprep.mubr.msk.f32.mxu1 %vm258_vm1, %v1796_v27 }
 0xdcb   :  { %5617 = vmatmul.mubr.msk.f32.vlgmr.msra.gmra.mrb[16].mxu1 %vm258_vm1, %v1798_v57 }
 0xdcc   :  { %5990 = vmatpush3.bf16.msra.mxu1 %v6486_v3  ;;  %5638 = vmatprep.mubr.msk.f32.mxu1 %vm258_vm1, %v1796_v27 }
 0xdcd   :  { %5992 = vmatprep.subr.bf16.mxu1 %v6498_v8 }
 0xdd0   :  { %5994 = vmatpush3.bf16.msra.mxu1 %v6498_v8 }
 0xdd1   :  { %6004 = vmatprep.subr.bf16.mxu1 %v6572_v53 }
 0xdd3   :  { %5639 = vmatmul.mubr.msk.f32.vlgmr.msra.gmra.mrb[18].mxu1 %vm258_vm1, %v1798_v57 }
 0xdd4   :  { %6006 = vmatpush3.bf16.msra.mxu1 %v6572_v53 }
 0xdd5   :  { %6008 = vmatprep.subr.bf16.mxu1 %v6598_v6 }
 0xdd8   :  { %6010 = vmatpush3.bf16.msra.mxu1 %v6598_v6 }
 0xdd9   :  { %6020 = vmatprep.subr.bf16.mxu1 %v6548_v46 }
 0xe92   :  { %v5629_v26 = vpop.f32.mrb[26].mxu0 }
 0xe93   :  { %v1978_v38 = vadd.f32 %v5629_v26, %v6619_v25  ;;  %v1954_v39 = vpop.f32.mrb[27].mxu0 }
 0xe94   :  { %v1977_v40 = vadd.f32 %v1954_v39, %v6619_v25 }
 0xe95   :  { %1983 = vrot.lane.b32.xlu1 %v1978_v38, %s6442_s5 }
 0xe96   :  { %1981 = vrot.lane.b32.xlu0 %v1977_v40, %s6442_s5 }
 0xe9e   :  { %v5618_v43 = vpop.f32.mrb[16].mxu1 }
 0xe9f   :  { %v1869_v44 = vpop.f32.mrb[17].mxu1  ;;  %v1875_v60 = vadd.f32 %v5618_v43, %v6635_v34 }
 0xea0   :  { %v1870_v61 = vadd.f32 %v1869_v44, %v6635_v34 }
 0xea1   :  { %v1964_v47 = vadd.f32 %v5629_v26, %v1875_v60 }
 0xea2   :  { %v1963_v0 = vadd.f32 %v1954_v39, %v1870_v61 }
 0xea3   :  { %v5119_v55 = vmul.f32 -1.442695, %v1964_v47 }
 0xea4   :  { %v5118_v58 = vmul.f32 -1.442695, %v1963_v0 }
 0xea5   :  { %6281 = vpow2.f32 %v5119_v55 }
 0xea6   :  { %v5640_v15 = vpop.f32.mrb[18].mxu1  ;;  %6283 = vpow2.f32 %v5118_v58 }
 0xea7   :  { %v2107_v49 = vadd.f32 %v5640_v15, %v6522_v16  ;;  %v2083_v50 = vpop.f32.mrb[19].mxu1  ;;  %v2093_v42 = vadd.f32 %v5640_v15, %v235_v41 }
 0xea8   :  { %v2106_v51 = vadd.f32 %v2083_v50, %v6522_v16  ;;  %v2092_v28 = vadd.f32 %v2083_v50, %v230_v45 }
 0xea9   :  { %2112 = vrot.lane.b32.xlu1 %v2107_v49, %s6442_s5  ;;  %v5123_v59 = vmul.f32 -1.442695, %v2093_v42 }
 0xeaa   :  { %2110 = vrot.lane.b32.xlu0 %v2106_v51, %s6442_s5  ;;  %v5122_v30 = vmul.f32 -1.442695, %v2092_v28 }
 0xeaf   :  { %v6282_v4 = vpop.eup %6281 }
 0xeb0   :  { %v6284_v63 = vpop.eup %6283  ;;  %v1972_v54 = vadd.f32 1.0, %v6282_v4 }
 0xeb1   :  { %v1971_v29 = vadd.f32 1.0, %v6284_v63 }
 0xeb2   :  { %6285 = vrcp.f32 %v1972_v54 }
 0xeb3   :  { %6287 = vrcp.f32 %v1971_v29 }
 0xeb4   :  { %6289 = vpow2.f32 %v5123_v59 }
 0xeb5   :  { %6291 = vpow2.f32 %v5122_v30 }
 0xebc   :  { %v6286_v24 = vpop.eup %6285 }
 0xebd   :  { %v6288_v2 = vpop.eup %6287  ;;  %v2014_v63 = vmul.f32 %v6286_v24, %v6913_v36 }
 0xebe   :  { %v6290_v1 = vpop.eup %6289  ;;  %v2001_v4 = vsub.f32 1.0, %v6288_v2  ;;  %v2013_v28 = vmul.f32 %v6288_v2, %v6915_v9 }
 0xebf   :  { %v6292_v17 = vpop.eup %6291  ;;  %v2101_v5 = vadd.f32 1.0, %v6290_v1 }
 0xec0   :  { %v2100_v56 = vadd.f32 1.0, %v6292_v17 }
 0xec1   :  { %6293 = vrcp.f32 %v2101_v5 }
 0xec2   :  { %6295 = vrcp.f32 %v2100_v56 }
 0xecb   :  { %v6294_v62 = vpop.eup %6293 }
 0xecc   :  { %v6296_v27 = vpop.eup %6295  ;;  %v2131_v59 = vsub.f32 1.0, %v6294_v62  ;;  %v2143_v36 = vmul.f32 %v6294_v62, %v6923_v52 }
 0xecd   :  { %v2142_v9 = vmul.f32 %v6296_v27, %v6925_v12 }
 0xf07   :  { %v1984_v32 = vpop.permute.xlu1 %1983 }
 0xf08   :  { %v1988_v33 = vmul.f32 %v6286_v24, %v1984_v32  ;;  %v1982_v35 = vpop.permute.xlu0 %1981  ;;  %v2130_v32 = vsub.f32 1.0, %v6296_v27 }
 0xf09   :  { %v1987_v13 = vmul.f32 %v6288_v2, %v1982_v35 }
 0xf0a   :  { %1993 = vrot.lane.b32.xlu1 %v1988_v33, %s6442_s5 }
 0xf0b   :  { %1991 = vrot.lane.b32.xlu0 %v1987_v13, %s6442_s5 }
 0xf1b   :  { %v2113_v37 = vpop.permute.xlu1 %2112 }
 0xf1c   :  { %v2117_v57 = vmul.f32 %v6294_v62, %v2113_v37  ;;  %v2111_v26 = vpop.permute.xlu0 %2110 }
 0xf1d   :  { %v2116_v38 = vmul.f32 %v6296_v27, %v2111_v26 }
 0xf1e   :  { %2122 = vrot.lane.b32.xlu1 %v2117_v57, %s6442_s5 }
 0xf1f   :  { %2120 = vrot.lane.b32.xlu0 %v2116_v38, %s6442_s5 }
 0xf7c   :  { %v1994_v39 = vpop.permute.xlu1 %1993 }
 0xf7d   :  { %v1998_v40 = vadd.f32 %v1994_v39, %v1875_v60  ;;  %v1992_v43 = vpop.permute.xlu0 %1991  ;;  %v2002_v60 = vsub.f32 1.0, %v6286_v24 }
 0xf7e   :  { %v1997_v44 = vadd.f32 %v1992_v43, %v1870_v61 }
 0xf7f   :  { %6297 = vtanh.f32 %v1998_v40 }
 0xf80   :  { %6299 = vtanh.f32 %v1997_v44 }
 0xf89   :  { %v6298_v15 = vpop.eup %6297 }
 0xf8a   :  { %v6300_v49 = vpop.eup %6299  ;;  %2007 = vrot.lane.b32.xlu1 %v6298_v15, %s6443_s14 }
 0xf8b   :  { %2005 = vrot.lane.b32.xlu0 %v6300_v49, %s6443_s14 }
 0xf90   :  { %v2123_v50 = vpop.permute.xlu1 %2122 }
 0xf91   :  { %v2127_v51 = vadd.f32 %v2123_v50, %v235_v41  ;;  %v2121_v47 = vpop.permute.xlu0 %2120 }
 0xf92   :  { %v2126_v0 = vadd.f32 %v2121_v47, %v230_v45 }
 0xf93   :  { %6301 = vtanh.f32 %v2127_v51 }
 0xf94   :  { %6303 = vtanh.f32 %v2126_v0 }
 0xf9d   :  { %v6302_v55 = vpop.eup %6301 }
 0xf9e   :  { %v6304_v58 = vpop.eup %6303  ;;  %2136 = vrot.lane.b32.xlu1 %v6302_v55, %s6443_s14 }
 0xf9f   :  { %2134 = vrot.lane.b32.xlu0 %v6304_v58, %s6443_s14 }
 0xffc   :  { %v2008_v61 = vpop.permute.xlu1 %2007 }
 0xffd   :  { %v2012_v42 = vmul.f32 %v2008_v61, %v2002_v60  ;;  %v2006_v54 = vpop.permute.xlu0 %2005  ;;  %v245_v60 = vadd.f32 %v6745_v18, %v6533_v22  ;;  %v240_v61 = vadd.f32 %v6747_v19, %v6533_v22 }
 0xffe   :  { %v2011_v41 = vmul.f32 %v2006_v54, %v2001_v4 }
 0xfff   :  { %v6973_v29 = vadd.f32 %v2014_v63, %v2012_v42 }
0x1000   :  { %v6975_v45 = vadd.f32 %v2013_v28, %v2011_v41 }
0x1001   :  { %2235 = vrot.lane.b32.xlu1 %v6973_v29, %s6443_s14 }
0x1002   :  { %2233 = vrot.lane.b32.xlu0 %v6975_v45, %s6443_s14 }
0x1010   :  { %v2137_v30 = vpop.permute.xlu1 %2136 }
0x1011   :  { %v2141_v24 = vmul.f32 %v2137_v30, %v2131_v59  ;;  %v2135_v33 = vpop.permute.xlu0 %2134 }
0x1012   :  { %v2140_v2 = vmul.f32 %v2135_v33, %v2130_v32 }
0x1013   :  { %v6983_v35 = vadd.f32 %v2143_v36, %v2141_v24 }
0x1014   :  { %v6985_v13 = vadd.f32 %v2142_v9, %v2140_v2 }
0x1015   :  { %2150 = vrot.lane.b32.xlu1 %v6983_v35, %s6443_s14 }
0x1016   :  { %2148 = vrot.lane.b32.xlu0 %v6985_v13, %s6443_s14 }
0x1073   :  { %v2236_v17 = vpop.permute.xlu1 %2235 }
0x1074   :  { %v2234_v1 = vpop.permute.xlu0 %2233 }
0x1075   :  { %5660 = vmatprep.mubr.msk.f32.mxu1 %vm258_vm1, %v2234_v1 }
0x1076   :  { %5661 = vmatmul.mubr.msk.f32.vlgmr.msra.gmra.mrb[20].mxu1 %vm258_vm1, %v2236_v17 }
0x1077   :  { %6022 = vmatpush3.bf16.msra.mxu1 %v6548_v46 }
0x1078   :  { %6024 = vmatprep.subr.bf16.mxu1 %v6553_v48 }
0x107b   :  { %6026 = vmatpush3.bf16.msra.mxu1 %v6553_v48 }
0x107c   :  { %6036 = vmatprep.subr.bf16.mxu1 %v6486_v3 }
0x1087   :  { %v2151_v12 = vpop.permute.xlu1 %2150 }
0x1088   :  { %v2149_v52 = vpop.permute.xlu0 %2148 }
0x1089   :  { %5649 = vmatprep.mubr.msk.f32.mxu0 %vm258_vm1, %v2149_v52 }
0x108a   :  { %5650 = vmatmul.mubr.msk.f32.vlgmr.msra.gmra.mrb[28].mxu0 %vm258_vm1, %v2151_v12 }
0x108b   :  { %6014 = vmatpush3.bf16.msra.mxu0 %v6486_v3  ;;  %5671 = vmatprep.mubr.msk.f32.mxu0 %vm258_vm1, %v2149_v52 }
0x108c   :  { %6016 = vmatprep.subr.bf16.mxu0 %v6498_v8 }
0x108f   :  { %6018 = vmatpush3.bf16.msra.mxu0 %v6498_v8 }
0x1090   :  { %6028 = vmatprep.subr.bf16.mxu0 %v6572_v53 }
0x1092   :  { %5672 = vmatmul.mubr.msk.f32.vlgmr.msra.gmra.mrb[30].mxu0 %vm258_vm1, %v2151_v12 }
0x1093   :  { %6030 = vmatpush3.bf16.msra.mxu0 %v6572_v53 }
0x1094   :  { %6032 = vmatprep.subr.bf16.mxu0 %v6598_v6 }
0x1097   :  { %6034 = vmatpush3.bf16.msra.mxu0 %v6598_v6 }
0x1098   :  { %6044 = vmatprep.subr.bf16.mxu0 %v6548_v46 }
0x1149   :  { %v5662_v5 = vpop.f32.mrb[20].mxu1 }
0x114a   :  { %v2331_v56 = vadd.f32 %v5662_v5, %v6619_v25  ;;  %v2307_v62 = vpop.f32.mrb[21].mxu1 }
0x114b   :  { %v2330_v37 = vadd.f32 %v2307_v62, %v6619_v25 }
0x114c   :  { %2336 = vrot.lane.b32.xlu1 %v2331_v56, %s6442_s5 }
0x114d   :  { %2334 = vrot.lane.b32.xlu0 %v2330_v37, %s6442_s5 }
0x115d   :  { %v5651_v27 = vpop.f32.mrb[28].mxu0 }
0x115e   :  { %v2222_v57 = vpop.f32.mrb[29].mxu0  ;;  %v2228_v43 = vadd.f32 %v5651_v27, %v6635_v34 }
0x115f   :  { %v2223_v44 = vadd.f32 %v2222_v57, %v6635_v34 }
0x1160   :  { %v2317_v15 = vadd.f32 %v5662_v5, %v2228_v43 }
0x1161   :  { %v2316_v49 = vadd.f32 %v2307_v62, %v2223_v44 }
0x1162   :  { %v5129_v50 = vmul.f32 -1.442695, %v2317_v15 }
0x1163   :  { %v5128_v51 = vmul.f32 -1.442695, %v2316_v49 }
0x1164   :  { %6305 = vpow2.f32 %v5129_v50 }
0x1165   :  { %v5673_v26 = vpop.f32.mrb[30].mxu0  ;;  %6307 = vpow2.f32 %v5128_v51 }
0x1166   :  { %v2460_v38 = vadd.f32 %v5673_v26, %v6522_v16  ;;  %v2436_v39 = vpop.f32.mrb[31].mxu0  ;;  %v2446_v4 = vadd.f32 %v5673_v26, %v245_v60 }
0x1167   :  { %v2459_v40 = vadd.f32 %v2436_v39, %v6522_v16  ;;  %v2445_v63 = vadd.f32 %v2436_v39, %v240_v61 }
0x1168   :  { %2465 = vrot.lane.b32.xlu1 %v2460_v38, %s6442_s5  ;;  %v5133_v42 = vmul.f32 -1.442695, %v2446_v4 }
0x1169   :  { %2463 = vrot.lane.b32.xlu0 %v2459_v40, %s6442_s5  ;;  %v5132_v54 = vmul.f32 -1.442695, %v2445_v63 }
0x116e   :  { %v6306_v47 = vpop.eup %6305 }
0x116f   :  { %v6308_v0 = vpop.eup %6307  ;;  %v2325_v55 = vadd.f32 1.0, %v6306_v47 }
0x1170   :  { %v2324_v58 = vadd.f32 1.0, %v6308_v0 }
0x1171   :  { %6309 = vrcp.f32 %v2325_v55 }
0x1172   :  { %6311 = vrcp.f32 %v2324_v58 }
0x1173   :  { %6313 = vpow2.f32 %v5133_v42 }
0x1174   :  { %6315 = vpow2.f32 %v5132_v54 }
0x117b   :  { %v6310_v28 = vpop.eup %6309 }
0x117c   :  { %v6312_v59 = vpop.eup %6311  ;;  %v2367_v51 = vmul.f32 %v6310_v28, %v6973_v29 }
0x117d   :  { %v6314_v18 = vpop.eup %6313  ;;  %v2354_v50 = vsub.f32 1.0, %v6312_v59  ;;  %v2366_v55 = vmul.f32 %v6312_v59, %v6975_v45 }
0x117e   :  { %v6316_v24 = vpop.eup %6315  ;;  %v2454_v33 = vadd.f32 1.0, %v6314_v18 }
0x117f   :  { %v2453_v19 = vadd.f32 1.0, %v6316_v24 }
0x1180   :  { %6317 = vrcp.f32 %v2454_v33 }
0x1181   :  { %6319 = vrcp.f32 %v2453_v19 }
0x118a   :  { %v6318_v9 = vpop.eup %6317 }
0x118b   :  { %v6320_v1 = vpop.eup %6319  ;;  %v2484_v4 = vsub.f32 1.0, %v6318_v9  ;;  %v2496_v29 = vmul.f32 %v6318_v9, %v6983_v35 }
0x118c   :  { %v2483_v42 = vsub.f32 1.0, %v6320_v1  ;;  %v2495_v45 = vmul.f32 %v6320_v1, %v6985_v13 }
0x11be   :  { %v2337_v41 = vpop.permute.xlu1 %2336 }
0x11bf   :  { %v2341_v30 = vmul.f32 %v6310_v28, %v2337_v41  ;;  %v2335_v32 = vpop.permute.xlu0 %2334 }
0x11c0   :  { %v2340_v36 = vmul.f32 %v6312_v59, %v2335_v32 }
0x11c1   :  { %2346 = vrot.lane.b32.xlu1 %v2341_v30, %s6442_s5 }
0x11c2   :  { %2344 = vrot.lane.b32.xlu0 %v2340_v36, %s6442_s5 }
0x11da   :  { %v2466_v2 = vpop.permute.xlu1 %2465 }
0x11db   :  { %v2470_v17 = vmul.f32 %v6318_v9, %v2466_v2  ;;  %v2464_v52 = vpop.permute.xlu0 %2463 }
0x11dc   :  { %v2469_v12 = vmul.f32 %v6320_v1, %v2464_v52 }
0x11dd   :  { %2475 = vrot.lane.b32.xlu1 %v2470_v17, %s6442_s5 }
0x11de   :  { %2473 = vrot.lane.b32.xlu0 %v2469_v12, %s6442_s5 }
0x1233   :  { %v2347_v5 = vpop.permute.xlu1 %2346 }
0x1234   :  { %v2351_v56 = vadd.f32 %v2347_v5, %v2228_v43  ;;  %v2345_v62 = vpop.permute.xlu0 %2344  ;;  %v2355_v43 = vsub.f32 1.0, %v6310_v28 }
0x1235   :  { %v2350_v37 = vadd.f32 %v2345_v62, %v2223_v44 }
0x1236   :  { %6321 = vtanh.f32 %v2351_v56 }
0x1237   :  { %6323 = vtanh.f32 %v2350_v37 }
0x1240   :  { %v6322_v27 = vpop.eup %6321 }
0x1241   :  { %v6324_v57 = vpop.eup %6323  ;;  %2360 = vrot.lane.b32.xlu1 %v6322_v27, %s6443_s14 }
0x1242   :  { %2358 = vrot.lane.b32.xlu0 %v6324_v57, %s6443_s14  ;;  %v250_v57 = vadd.f32 %v6751_v23, %v6533_v22 }
0x124f   :  { %v2476_v26 = vpop.permute.xlu1 %2475 }
0x1250   :  { %v2480_v38 = vadd.f32 %v2476_v26, %v245_v60  ;;  %v2474_v39 = vpop.permute.xlu0 %2473 }
0x1251   :  { %v2479_v40 = vadd.f32 %v2474_v39, %v240_v61 }
0x1252   :  { %6325 = vtanh.f32 %v2480_v38 }
0x1253   :  { %6327 = vtanh.f32 %v2479_v40 }
0x125c   :  { %v6326_v15 = vpop.eup %6325 }
0x125d   :  { %v6328_v49 = vpop.eup %6327  ;;  %2489 = vrot.lane.b32.xlu1 %v6326_v15, %s6443_s14 }
0x125e   :  { %2487 = vrot.lane.b32.xlu0 %v6328_v49, %s6443_s14 }
0x12b3   :  { %v2361_v44 = vpop.permute.xlu1 %2360 }
0x12b4   :  { %v2365_v47 = vmul.f32 %v2361_v44, %v2355_v43  ;;  %v2359_v0 = vpop.permute.xlu0 %2358 }
0x12b5   :  { %v2364_v58 = vmul.f32 %v2359_v0, %v2354_v50 }
0x12b6   :  { %v7033_v60 = vadd.f32 %v2367_v51, %v2365_v47 }
0x12b7   :  { %v7035_v61 = vadd.f32 %v2366_v55, %v2364_v58 }
0x12b8   :  { %2588 = vrot.lane.b32.xlu1 %v7033_v60, %s6443_s14 }
0x12b9   :  { %2586 = vrot.lane.b32.xlu0 %v7035_v61, %s6443_s14 }
0x12cf   :  { %v2490_v63 = vpop.permute.xlu1 %2489 }
0x12d0   :  { %v2494_v54 = vmul.f32 %v2490_v63, %v2484_v4  ;;  %v2488_v28 = vpop.permute.xlu0 %2487 }
0x12d1   :  { %v2493_v41 = vmul.f32 %v2488_v28, %v2483_v42 }
0x12d2   :  { %v7043_v59 = vadd.f32 %v2496_v29, %v2494_v54 }
0x12d3   :  { %v7045_v30 = vadd.f32 %v2495_v45, %v2493_v41 }
0x12d4   :  { %2503 = vrot.lane.b32.xlu1 %v7043_v59, %s6443_s14 }
0x12d5   :  { %2501 = vrot.lane.b32.xlu0 %v7045_v30, %s6443_s14 }
0x132a   :  { %v2589_v36 = vpop.permute.xlu1 %2588 }
0x132b   :  { %v2587_v32 = vpop.permute.xlu0 %2586 }
0x132c   :  { %5693 = vmatprep.mubr.msk.f32.mxu0 %vm258_vm1, %v2587_v32 }
0x132d   :  { %5694 = vmatmul.mubr.msk.f32.vlgmr.msra.gmra.mrb[32].mxu0 %vm258_vm1, %v2589_v36 }
0x132e   :  { %6046 = vmatpush3.bf16.msra.mxu0 %v6548_v46 }
0x132f   :  { %6048 = vmatprep.subr.bf16.mxu0 %v6553_v48 }
0x1332   :  { %6050 = vmatpush3.bf16.msra.mxu0 %v6553_v48 }
0x1346   :  { %v2504_v13 = vpop.permute.xlu1 %2503 }
0x1347   :  { %v2502_v35 = vpop.permute.xlu0 %2501 }
0x1348   :  { %5682 = vmatprep.mubr.msk.f32.mxu1 %vm258_vm1, %v2502_v35 }
0x1349   :  { %5683 = vmatmul.mubr.msk.f32.vlgmr.msra.gmra.mrb[22].mxu1 %vm258_vm1, %v2504_v13 }
0x134a   :  { %6038 = vmatpush3.bf16.msra.mxu1 %v6486_v3  ;;  %5704 = vmatprep.mubr.msk.f32.mxu1 %vm258_vm1, %v2502_v35 }
0x134b   :  { %6040 = vmatprep.subr.bf16.mxu1 %v6498_v8 }
0x134e   :  { %6042 = vmatpush3.bf16.msra.mxu1 %v6498_v8 }
0x134f   :  { %6052 = vmatprep.subr.bf16.mxu1 %v6572_v53 }
0x1351   :  { %5705 = vmatmul.mubr.msk.f32.vlgmr.msra.gmra.mrb[24].mxu1 %vm258_vm1, %v2504_v13 }
0x1352   :  { %6054 = vmatpush3.bf16.msra.mxu1 %v6572_v53 }
0x1353   :  { %6056 = vmatprep.subr.bf16.mxu1 %v6598_v6 }
0x1356   :  { %6058 = vmatpush3.bf16.msra.mxu1 %v6598_v6 }
0x1400   :  { %v5695_v46 = vpop.f32.mrb[32].mxu0 }
0x1401   :  { %v2684_v48 = vadd.f32 %v5695_v46, %v6619_v25  ;;  %v2660_v3 = vpop.f32.mrb[33].mxu0 }
0x1402   :  { %v2683_v18 = vadd.f32 %v2660_v3, %v6619_v25 }
0x1403   :  { %2689 = vrot.lane.b32.xlu1 %v2684_v48, %s6442_s5 }
0x1404   :  { %2687 = vrot.lane.b32.xlu0 %v2683_v18, %s6442_s5 }
0x141c   :  { %v5684_v8 = vpop.f32.mrb[22].mxu1 }
0x141d   :  { %v2575_v24 = vpop.f32.mrb[23].mxu1  ;;  %v2581_v6 = vadd.f32 %v5684_v8, %v6635_v34 }
0x141e   :  { %v2576_v2 = vadd.f32 %v2575_v24, %v6635_v34 }
0x141f   :  { %v2670_v1 = vadd.f32 %v5695_v46, %v2581_v6 }
0x1420   :  { %v2669_v17 = vadd.f32 %v2660_v3, %v2576_v2 }
0x1421   :  { %v5139_v52 = vmul.f32 -1.442695, %v2670_v1 }
0x1422   :  { %v5138_v12 = vmul.f32 -1.442695, %v2669_v17 }
0x1423   :  { %6329 = vpow2.f32 %v5139_v52 }
0x1424   :  { %v5706_v33 = vpop.f32.mrb[24].mxu1  ;;  %6331 = vpow2.f32 %v5138_v12 }
0x1425   :  { %v2813_v19 = vadd.f32 %v5706_v33, %v6522_v16  ;;  %v2789_v53 = vpop.f32.mrb[25].mxu1 }
0x1426   :  { %v2812_v9 = vadd.f32 %v2789_v53, %v6522_v16  ;;  %v255_v16 = vadd.f32 %v6749_v20, %v6533_v22  ;;  %v2798_v49 = vadd.f32 %v2789_v53, %v250_v57 }
0x1427   :  { %2818 = vrot.lane.b32.xlu1 %v2813_v19, %s6442_s5 }
0x1428   :  { %2816 = vrot.lane.b32.xlu0 %v2812_v9, %s6442_s5  ;;  %v2799_v39 = vadd.f32 %v5706_v33, %v255_v16  ;;  %v5142_v50 = vmul.f32 -1.442695, %v2798_v49 }
0x142a   :  { %v5143_v44 = vmul.f32 -1.442695, %v2799_v39 }
0x142d   :  { %v6330_v5 = vpop.eup %6329 }
0x142e   :  { %v6332_v56 = vpop.eup %6331  ;;  %v2678_v62 = vadd.f32 1.0, %v6330_v5 }
0x142f   :  { %v2677_v37 = vadd.f32 1.0, %v6332_v56 }
0x1430   :  { %6333 = vrcp.f32 %v2678_v62 }
0x1431   :  { %6335 = vrcp.f32 %v2677_v37 }
0x1432   :  { %6337 = vpow2.f32 %v5143_v44 }
0x1433   :  { %6339 = vpow2.f32 %v5142_v50 }
0x143a   :  { %v6334_v27 = vpop.eup %6333 }
0x143b   :  { %v6336_v38 = vpop.eup %6335  ;;  %v2708_v3 = vsub.f32 1.0, %v6334_v27  ;;  %v2720_v24 = vmul.f32 %v6334_v27, %v7033_v60 }
0x143c   :  { %v6338_v20 = vpop.eup %6337  ;;  %v2707_v8 = vsub.f32 1.0, %v6336_v38  ;;  %v2719_v53 = vmul.f32 %v6336_v38, %v7035_v61 }
0x143d   :  { %v6340_v51 = vpop.eup %6339  ;;  %v2807_v47 = vadd.f32 1.0, %v6338_v20 }
0x143e   :  { %v2806_v0 = vadd.f32 1.0, %v6340_v51 }
0x143f   :  { %6341 = vrcp.f32 %v2807_v47 }
0x1440   :  { %6343 = vrcp.f32 %v2806_v0 }
0x1449   :  { %v6342_v22 = vpop.eup %6341 }
0x144a   :  { %v6344_v55 = vpop.eup %6343  ;;  %v2837_v1 = vsub.f32 1.0, %v6342_v22  ;;  %v2849_v60 = vmul.f32 %v6342_v22, %v7043_v59  ;;  %v6444_v59 = vmov 12  }
0x144b   :  { %v2836_v52 = vsub.f32 1.0, %v6344_v55  ;;  %v2848_v61 = vmul.f32 %v6344_v55, %v7045_v30  ;;  %6165 = vset.pattern.permute.xlu1 %v6444_v59  ;;  %6164 = vset.pattern.permute.xlu0 %v6444_v59 }
0x1475   :  { %v2690_v26 = vpop.permute.xlu1 %2689 }
0x1476   :  { %v2694_v40 = vmul.f32 %v6334_v27, %v2690_v26  ;;  %v2688_v15 = vpop.permute.xlu0 %2687 }
0x1477   :  { %v2693_v43 = vmul.f32 %v6336_v38, %v2688_v15 }
0x1478   :  { %2699 = vrot.lane.b32.xlu1 %v2694_v40, %s6442_s5 }
0x1479   :  { %2697 = vrot.lane.b32.xlu0 %v2693_v43, %s6442_s5 }
0x1499   :  { %v2819_v23 = vpop.permute.xlu1 %2818 }
0x149a   :  { %v2823_v58 = vmul.f32 %v6342_v22, %v2819_v23  ;;  %v2817_v4 = vpop.permute.xlu0 %2816 }
0x149b   :  { %v2822_v63 = vmul.f32 %v6344_v55, %v2817_v4 }
0x149c   :  { %2828 = vrot.lane.b32.xlu1 %v2823_v58, %s6442_s5 }
0x149d   :  { %2826 = vrot.lane.b32.xlu0 %v2822_v63, %s6442_s5 }
0x14ea   :  { %v2700_v42 = vpop.permute.xlu1 %2699 }
0x14eb   :  { %v2704_v29 = vadd.f32 %v2700_v42, %v2581_v6  ;;  %v2698_v54 = vpop.permute.xlu0 %2697 }
0x14ec   :  { %v2703_v28 = vadd.f32 %v2698_v54, %v2576_v2  ;;  %v3089_v54 = vld [vmem:[%s7410_s3] sm:$0xff] }
0x14ed   :  { %6345 = vtanh.f32 %v2704_v29 }
0x14ee   :  { %6347 = vtanh.f32 %v2703_v28 }
0x14f7   :  { %v6346_v45 = vpop.eup %6345 }
0x14f8   :  { %v6348_v41 = vpop.eup %6347  ;;  %2713 = vrot.lane.b32.xlu1 %v6346_v45, %s6443_s14 }
0x14f9   :  { %2711 = vrot.lane.b32.xlu0 %v6348_v41, %s6443_s14 }
0x150e   :  { %v2829_v32 = vpop.permute.xlu1 %2828 }
0x150f   :  { %v2833_v36 = vadd.f32 %v2829_v32, %v255_v16  ;;  %v2827_v35 = vpop.permute.xlu0 %2826 }
0x1510   :  { %v2832_v13 = vadd.f32 %v2827_v35, %v250_v57 }
0x1511   :  { %6349 = vtanh.f32 %v2833_v36 }
0x1512   :  { %6351 = vtanh.f32 %v2832_v13 }
0x151b   :  { %v6350_v46 = vpop.eup %6349 }
0x151c   :  { %v6352_v48 = vpop.eup %6351  ;;  %2842 = vrot.lane.b32.xlu1 %v6350_v46, %s6443_s14 }
0x151d   :  { %2840 = vrot.lane.b32.xlu0 %v6352_v48, %s6443_s14 }
0x156a   :  { %v2714_v18 = vpop.permute.xlu1 %2713 }
0x156b   :  { %v2718_v33 = vmul.f32 %v2714_v18, %v2708_v3  ;;  %v2712_v19 = vpop.permute.xlu0 %2711 }
0x156c   :  { %v2717_v9 = vmul.f32 %v2712_v19, %v2707_v8 }
0x156d   :  { %v7091_v6 = vadd.f32 %v2720_v24, %v2718_v33 }
0x156e   :  { %v7093_v2 = vadd.f32 %v2719_v53, %v2717_v9 }
0x156f   :  { %2941 = vrot.lane.b32.xlu1 %v7091_v6, %s6443_s14 }
0x1570   :  { %2939 = vrot.lane.b32.xlu0 %v7093_v2, %s6443_s14 }
0x158e   :  { %v2843_v17 = vpop.permute.xlu1 %2842 }
0x158f   :  { %v2847_v12 = vmul.f32 %v2843_v17, %v2837_v1  ;;  %v2841_v5 = vpop.permute.xlu0 %2840 }
0x1590   :  { %v2846_v56 = vmul.f32 %v2841_v5, %v2836_v52 }
0x1591   :  { %v2851_v62 = vadd.f32 %v2849_v60, %v2847_v12 }
0x1592   :  { %v2850_v37 = vadd.f32 %v2848_v61, %v2846_v56 }
0x1593   :  { %2856 = vrot.lane.b32.xlu1 %v2851_v62, %s6443_s14 }
0x1594   :  { %2854 = vrot.lane.b32.xlu0 %v2850_v37, %s6443_s14 }
0x15e1   :  { %v2942_v27 = vpop.permute.xlu1 %2941 }
0x15e2   :  { %v2940_v16 = vpop.permute.xlu0 %2939 }
0x15e3   :  { %5726 = vmatprep.mubr.msk.f32.mxu1 %vm258_vm1, %v2940_v16 }
0x15e4   :  { %5727 = vmatmul.mubr.msk.f32.vlgmr.msra.gmra.mrb[26].mxu1 %vm258_vm1, %v2942_v27 }
0x1605   :  { %v2857_v26 = vpop.permute.xlu1 %2856 }
0x1606   :  { %v2855_v57 = vpop.permute.xlu0 %2854 }
0x1607   :  { %5715 = vmatprep.mubr.msk.f32.mxu0 %vm258_vm1, %v2855_v57 }
0x1608   :  { %5716 = vmatmul.mubr.msk.f32.vlgmr.msra.gmra.mrb[34].mxu0 %vm258_vm1, %v2857_v26 }
0x1609   :  { %5740 = vmatprep.mubr.msk.f32.mxu0 %vm6446_vm4, %v6441_v7 }
0x16b7   :  { %v5728_v30 = vpop.f32.mrb[26].mxu1 }
0x16b8   :  { %v3037_v38 = vadd.f32 %v5728_v30, %v6619_v25  ;;  %v3013_v39 = vpop.f32.mrb[27].mxu1 }
0x16b9   :  { %v3036_v40 = vadd.f32 %v3013_v39, %v6619_v25 }
0x16ba   :  { %3042 = vrot.lane.b32.xlu1 %v3037_v38, %s6442_s5 }
0x16bb   :  { %3040 = vrot.lane.b32.xlu0 %v3036_v40, %s6442_s5 }
0x16db   :  { %v5717_v15 = vpop.f32.mrb[34].mxu0 }
0x16dc   :  { %v2928_v49 = vpop.f32.mrb[35].mxu0  ;;  %v2934_v43 = vadd.f32 %v5717_v15, %v6635_v34 }
0x16dd   :  { %v2929_v44 = vadd.f32 %v2928_v49, %v6635_v34  ;;  %v3090_v34 = vld [vmem:[%s7410_s3 + $0x8] sm:$0xff] }
0x16de   :  { %v3023_v50 = vadd.f32 %v5728_v30, %v2934_v43 }
0x16df   :  { %v3022_v20 = vadd.f32 %v3013_v39, %v2929_v44 }
0x16e0   :  { %v5149_v51 = vmul.f32 -1.442695, %v3023_v50 }
0x16e1   :  { %v5148_v47 = vmul.f32 -1.442695, %v3022_v20  ;;  %v6445_v20 = vmov 0.0|0.0  }
0x16e2   :  { %6353 = vpow2.f32 %v5149_v51  ;;  %6063 = vmatprep.subr.bf16.mxu0 %v6445_v20 }
0x16e3   :  { %6355 = vpow2.f32 %v5148_v47 }
0x16ec   :  { %v6354_v0 = vpop.eup %6353 }
0x16ed   :  { %v6356_v22 = vpop.eup %6355  ;;  %v3031_v23 = vadd.f32 1.0, %v6354_v0 }
0x16ee   :  { %v3030_v25 = vadd.f32 1.0, %v6356_v22 }
0x16ef   :  { %6357 = vrcp.f32 %v3031_v23  ;;  %v6447_v23 = vmov 1.0  }
0x16f0   :  { %6359 = vrcp.f32 %v3030_v25 }
0x16f9   :  { %v6358_v55 = vpop.eup %6357 }
0x16fa   :  { %v6360_v4 = vpop.eup %6359  ;;  %v3061_v33 = vsub.f32 1.0, %v6358_v55  ;;  %v3073_v9 = vmul.f32 %v6358_v55, %v7091_v6 }
0x16fb   :  { %v3060_v53 = vsub.f32 1.0, %v6360_v4  ;;  %v3072_v60 = vmul.f32 %v6360_v4, %v7093_v2 }
0x172c   :  { %v3043_v58 = vpop.permute.xlu1 %3042 }
0x172d   :  { %v3047_v63 = vmul.f32 %v6358_v55, %v3043_v58  ;;  %v3041_v42 = vpop.permute.xlu0 %3040 }
0x172e   :  { %v3046_v29 = vmul.f32 %v6360_v4, %v3041_v42 }
0x172f   :  { %3052 = vrot.lane.b32.xlu1 %v3047_v63, %s6442_s5 }
0x1730   :  { %3050 = vrot.lane.b32.xlu0 %v3046_v29, %s6442_s5 }
0x1733   :  { %3098 = vperm.xlu1 %6165, %v3090_v34  }
0x1734   :  { %3093 = vperm.xlu0 %6164, %v3089_v54  }
0x17a1   :  { %v3053_v28 = vpop.permute.xlu1 %3052 }
0x17a2   :  { %v3057_v45 = vadd.f32 %v3053_v28, %v2934_v43  ;;  %v3051_v41 = vpop.permute.xlu0 %3050 }
0x17a3   :  { %v3056_v32 = vadd.f32 %v3051_v41, %v2929_v44 }
0x17a4   :  { %6361 = vtanh.f32 %v3057_v45 }
0x17a5   :  { %6363 = vtanh.f32 %v3056_v32 }
0x17ae   :  { %v6362_v36 = vpop.eup %6361 }
0x17af   :  { %v6364_v35 = vpop.eup %6363  ;;  %3066 = vrot.lane.b32.xlu0 %v6362_v36, %s6443_s14 }
0x17b0   :  { %3064 = vrot.lane.b32.xlu1 %v6364_v35, %s6443_s14 }
0x17b2   :  { %v3099_v13 = vpop.permute.xlu1 %3098 }
0x17b3   :  { %v3094_v46 = vpop.permute.xlu0 %3093  ;;  %v3102_v48 = vmul.f32 %v3099_v13, %v3090_v34 }
0x17b4   :  { %v3101_v3 = vmul.f32 %v3094_v46, %v3089_v54 }
0x17b5   :  { %v3105_v18 = vsel %vm3103_vm2, %v3102_v48, 0.0 }
0x17b6   :  { %v3104_v8 = vsel %vm3103_vm2, %v3101_v3, 0.0 }
0x17b7   :  { %v3106_v24 = vadd.f32 %v3105_v18, %v3104_v8 }
0x17b9   :  { %v3107_v52 = vrot.slane %v3106_v24, 4 }
0x17bb   :  { %v3108_v56 = vadd.f32 %v3107_v52, %v3106_v24 }
0x17bd   :  { %v3109_v62 = vrot.slane %v3108_v56, 2 }
0x17bf   :  { %v3110_v37 = vadd.f32 %v3109_v62, %v3108_v56 }
0x17c1   :  { %v3111_v6 = vrot.slane %v3110_v37, 1 }
0x17c3   :  { %v3112_v16 = vadd.f32 %v3111_v6, %v3110_v37 }
0x17c5   :  { %v3113_v27 = vmul.f32 %v3112_v16, %v3089_v54  ;;  %v3114_v57 = vmul.f32 %v3112_v16, %v3090_v34 }
0x17c7   :  { %v3115_v26 = vadd.f32 1.0, %v3113_v27  ;;  %v3116_v2 = vadd.f32 1.0, %v3114_v57 }
0x17c9   :  { %6365 = vrcp.f32 %v3115_v26  ;;  %v6448_v26 = vmov 0  }
0x17ca   :  { %6367 = vrcp.f32 %v3116_v2 }
0x17d3   :  { %v6366_v59 = vpop.eup %6365 }
0x17d4   :  { %v3118_v30 = vmul.f32 %v6366_v59, %v3101_v3  ;;  %v6368_v38 = vpop.eup %6367 }
0x17d5   :  { %v3120_v39 = vmul.f32 %v6368_v38, %v3102_v48 }
0x1821   :  { %v3067_v19 = vpop.permute.xlu0 %3066 }
0x1822   :  { %v3071_v1 = vmul.f32 %v3067_v19, %v3061_v33  ;;  %v3065_v17 = vpop.permute.xlu1 %3064 }
0x1823   :  { %v3070_v12 = vmul.f32 %v3065_v17, %v3060_v53 }
0x1824   :  { %v7127_v5 = vadd.f32 %v3073_v9, %v3071_v1 }
0x1825   :  { %v7129_v61 = vadd.f32 %v3072_v60, %v3070_v12 }
0x1826   :  { %3157 = vrot.lane.b32.xlu0 %v7127_v5, %s6443_s14  ;;  %v3624_v40 = vmul.f32 %v7127_v5, %v7127_v5 }
0x1827   :  { %3155 = vrot.lane.b32.xlu1 %v7129_v61, %s6443_s14  ;;  %v3623_v60 = vmul.f32 %v7129_v61, %v7129_v61 }
0x1850   :  { %3121 = vxpose.xlu1.b32.start [1/2] (short) (narrow) %v3118_v30, 16 }
0x1854   :  { %3122 = vxpose.xlu1.b32.end [2/2] (short) (narrow) %v3120_v39, 16 }
0x1872   :  { %3629 = vrot.lane.b32.xlu1 %v3624_v40, %s6443_s14 }
0x1873   :  { %6171 = vset.pattern.permute.xlu1 %v6448_v26 }
0x1898   :  { %v7138_v15 = vpop.permute.xlu0 %3157 }
0x1899   :  { %v3156_v49 = vpop.permute.xlu1 %3155 }
0x189a   :  { %v6059_v43 = vpack.c.bf16 %v7138_v15, %v3156_v49 }
0x189c   :  { %6060 = vmatprep.subr.bf16.mxu1 %v6059_v43 }
0x189d   :  { %6062 = vmatpush3.bf16.msra.mxu1 %v6059_v43 }
0x18d0   :  { %v3137_v44 = vpop.trf.xlu1 }
0x18d1   :  { %5733 = vmatprep.mubr.msk.f32.mxu1 %vm3161_vm3, %v3137_v44 }
0x18d4   :  { %v3138_v50 = vpop.trf.xlu1 }
0x18d5   :  { %5734 = vmatmul.mubr.msk.f32.vlgmr.msra.gmra.mrb[28].mxu1 %vm3161_vm3, %v3138_v50 }
0x18d6   :  { %5747 = vmatprep.mubr.msk.f32.mxu1 %vm258_vm1, %v3156_v49 }
0x18e4   :  { %v3630_v12 = vpop.permute.xlu1 %3629 }
0x18e5   :  { %v3636_v56 = vsel %vm258_vm1, %v3630_v12, 0.0 }
0x19a8   :  { %v5735_v51 = vpop.f32.mrb[28].mxu1 }
0x19a9   :  { %v3234_v47 = vpop.f32.mrb[29].mxu1 }
0x19aa   :  { %v6064_v22 = vpack.c.bf16 %v5735_v51, %v3234_v47 }
0x19ac   :  { %6066 = vmatpush3.bf16.xpose.msk.msra.mxu0 %vm7149_vm5, %v6064_v22  ;;  %6069 = vmatprep.subr.msk.bf16.mxu1 %vm7149_vm5, %v6064_v22 }
0x19ad   :  { %6072 = vmatpush3.bf16.xpose.msk.msra.mxu1 %vm7149_vm5, %v6064_v22  ;;  %6074 = vmatprep.subr.bf16.mxu0 %v6059_v43 }
0x19b3   :  { %5741 = vmatmul.mubr.msk.f32.vlgmr.msra.gmra.mrb[36].mxu0 %vm258_vm1, %v6447_v23 }
0x19b4   :  { %5748 = vmatmul.mubr.msk.f32.vlgmr.msra.gmra.mrb[30].mxu1 %vm258_vm1, %v7138_v15  ;;  %6076 = vmatpush3.bf16.msra.mxu0 %v6059_v43 }
0x19b5   :  { %5761 = vmatprep.mubr.msk.f32.mxu1 %vm258_vm1, %v3156_v49  ;;  %6083 = vmatprep.subr.bf16.mxu0 %v6445_v20 }
0x1a86   :  { %v3318_v27 = vpop.f32.mrb[36].mxu0 }
0x1a87   :  { %v5749_v25 = vpop.f32.mrb[30].mxu1  ;;  %v5742_v57 = vpop.f32.mrb[37].mxu0  ;;  %vm3322_vm15 = vcmp.ne.f32.partialorder %v3318_v27, 0.0 }
0x1a88   :  { %v3403_v55 = vsel %vm3103_vm2, %v5749_v25, -inf  ;;  %v3393_v58 = vpop.f32.mrb[31].mxu1 }
0x1a89   :  { %v3402_v4 = vsel %vm3103_vm2, %v3393_v58, -inf }
0x1a8a   :  { %v3404_v63 = vmax.f32 %v3402_v4, %v3403_v55 }
0x1a8c   :  { %v3405_v42 = vrot.slane %v3404_v63, 4 }
0x1a8e   :  { %v3406_v29 = vmax.f32 %v3404_v63, %v3405_v42 }
0x1a90   :  { %v3407_v34 = vrot.slane %v3406_v29, 2 }
0x1a92   :  { %v3408_v54 = vmax.f32 %v3406_v29, %v3407_v34 }
0x1a94   :  { %v3409_v28 = vrot.slane %v3408_v54, 1 }
0x1a96   :  { %v3410_v45 = vmax.f32 %v3408_v54, %v3409_v28 }
0x1a98   :  { %v3411_v41 = vsub.f32 %v3393_v58, %v3410_v45  ;;  %v3412_v32 = vsub.f32 %v5749_v25, %v3410_v45 }
0x1a9a   :  { %v3413_v36 = vmul.f32 1.442695, %v3411_v41  ;;  %v3415_v35 = vmul.f32 1.442695, %v3412_v32 }
0x1a9c   :  { %6369 = vpow2.f32 %v3413_v36 }
0x1a9d   :  { %6371 = vpow2.f32 %v3415_v35 }
0x1aa6   :  { %v6370_v13 = vpop.eup %6369 }
0x1aa7   :  { %v6372_v46 = vpop.eup %6371  ;;  %v3417_v48 = vsel %vm3103_vm2, %v6370_v13, 0.0 }
0x1aa8   :  { %v3418_v3 = vsel %vm3103_vm2, %v6372_v46, 0.0 }
0x1aa9   :  { %v3419_v18 = vadd.f32 %v3418_v3, %v3417_v48 }
0x1aab   :  { %v3420_v8 = vrot.slane %v3419_v18, 4 }
0x1aad   :  { %v3421_v24 = vadd.f32 %v3420_v8, %v3419_v18 }
0x1aaf   :  { %v3422_v33 = vrot.slane %v3421_v24, 2 }
0x1ab1   :  { %v3423_v19 = vadd.f32 %v3422_v33, %v3421_v24 }
0x1ab3   :  { %v3424_v53 = vrot.slane %v3423_v19, 1 }
0x1ab5   :  { %v3425_v9 = vadd.f32 %v3424_v53, %v3423_v19 }
0x1ab7   :  { %6373 = vrcp.f32 %v3425_v9 }
0x1ac1   :  { %v6374_v1 = vpop.eup %6373 }
0x1ac2   :  { %v3427_v17 = vmul.f32 %v6374_v1, %v6370_v13  ;;  %v3428_v52 = vmul.f32 %v6374_v1, %v6372_v46  ;;  %v3752_v46 = vsel %vm3322_vm15, 1, %v6448_v26 }
0x1ac3   :  { %v3756_v3 = vrot.slane %v3752_v46, %v6529_v21 }
0x1ac4   :  { %3429 = vxpose.xlu0.b32.start [1/2] (short) (narrow) %v3427_v17, 16 }
0x1ac5   :  { %vm3757_vm6 = vcmp.eq.s32.totalorder %v3756_v3, 1 }
0x1ac8   :  { %3430 = vxpose.xlu0.b32.end [2/2] (short) (narrow) %v3428_v52, 16 }
0x1af1   :  { %3627 = vrot.lane.b32.xlu0 %v3623_v60, %s6443_s14 }
0x1b10   :  { %3637 = vadd.xlane.f32.xlu0 %v3636_v56 }
0x1b44   :  { %v3445_v62 = vpop.trf.xlu0 }
0x1b45   :  { %5754 = vmatprep.mubr.msk.f32.mxu0 %vm3161_vm3, %v3445_v62 }
0x1b48   :  { %v3446_v37 = vpop.trf.xlu0 }
0x1b49   :  { %5755 = vmatmul.mubr.msk.f32.vlgmr.msra.gmra.mrb[38].mxu0 %vm3161_vm3, %v3446_v37 }
0x1b4a   :  { %5768 = vmatprep.mubr.msk.f32.mxu0 %vm6446_vm4, %v6441_v7 }
0x1b63   :  { %v3628_v6 = vpop.permute.xlu0 %3627 }
0x1b64   :  { %v3633_v16 = vsel %vm258_vm1, %v3628_v6, 0.0 }
0x1b65   :  { %3634 = vadd.xlane.f32.xlu1 %v3633_v16 }
0x1b9d   :  { %v3638_v49 = vpop.xlane.xlu0 %3637 }
0x1b9e   :  { %6375 = vrsqrt.f32 %v3638_v49  ;;  %vm3648_vm9 = vcmp.eq.f32.partialorder %v3638_v49, inf  ;;  %v3651_v54 = vand.u32 2147483648, %v3638_v49  ;;  %vm3650_vm13 = vcmp.eq.f32.partialorder %v3638_v49, 0.0 }
0x1ba8   :  { %v6376_v22 = vpop.eup %6375 }
0x1ba9   :  { %v3647_v55 = vmul.f32 %v6376_v22, %v3638_v49 }
0x1bab   :  { %v3649_v42 = vsel %vm3648_vm9, %v3638_v49, %v3647_v55  ;;  %v7218_v55 = vld [vmem:[%s7409_s2 + $0x60] sm:$0xff] }
0x1bac   :  { %v3652_v32 = vsel %vm3650_vm13, %v3651_v54, %v3649_v42 }
0x1bf2   :  { %v3635_v43 = vpop.xlane.xlu1 %3634 }
0x1bf3   :  { %6377 = vrsqrt.f32 %v3635_v43  ;;  %vm3641_vm10 = vcmp.eq.f32.partialorder %v3635_v43, inf  ;;  %v3644_v28 = vand.u32 2147483648, %v3635_v43  ;;  %vm3643_vm14 = vcmp.eq.f32.partialorder %v3635_v43, 0.0 }
0x1bfd   :  { %v6378_v25 = vpop.eup %6377 }
0x1bfe   :  { %v3640_v58 = vmul.f32 %v6378_v25, %v3635_v43 }
0x1c00   :  { %v3642_v29 = vsel %vm3641_vm10, %v3635_v43, %v3640_v58  ;;  %v3869_v58 = vrot.slane %v7218_v55, %v6529_v21 }
0x1c01   :  { %v3645_v36 = vsel %vm3643_vm14, %v3644_v28, %v3642_v29 }
0x1c1c   :  { %v5756_v2 = vpop.f32.mrb[38].mxu0 }
0x1c1d   :  { %v3654_v59 = vmul.f32 %v5756_v2, %v5756_v2  ;;  %v3533_v30 = vpop.f32.mrb[39].mxu0 }
0x1c1e   :  { %v6077_v38 = vpack.c.bf16 %v5756_v2, %v3533_v30  ;;  %v3653_v39 = vmul.f32 %v3533_v30, %v3533_v30  ;;  %v3076_v2 = vld [vmem:[%s7409_s2] sm:$0xff]  ;;  %v3078_v30 = vld [vmem:[%s7409_s2 + $0x10] sm:$0xff] }
0x1c20   :  { %v6084_v40 = vpack.c.bf16 %v3654_v59, %v3653_v39  ;;  %6079 = vmatprep.subr.msk.bf16.mxu1 %vm7149_vm5, %v6077_v38  ;;  %v3077_v59 = vld [vmem:[%s7409_s2 + $0x8] sm:$0xff]  ;;  %v3079_v39 = vld [vmem:[%s7409_s2 + $0x18] sm:$0xff] }
0x1c21   :  { %6082 = vmatpush3.bf16.xpose.msk.msra.mxu1 %vm7149_vm5, %v6077_v38 }
0x1c22   :  { %6086 = vmatpush3.bf16.xpose.msk.msra.mxu0 %vm7149_vm5, %v6084_v40  ;;  %6089 = vmatprep.subr.msk.bf16.mxu1 %vm6088_vm8, %v6077_v38  ;;  %v6097_v40 = vpack.c.bf16 %v3079_v39, %v3078_v30  ;;  %v4179_v39 = vadd.s32 8, %v6511_v11 }
0x1c28   :  { %5762 = vmatmul.mubr.msk.f32.vlgmr.msra.gmra.mrb[32].mxu1 %vm258_vm1, %v7138_v15 }
0x1c29   :  { %5769 = vmatmul.mubr.msk.f32.vlgmr.msra.gmra.mrb[40].mxu0 %vm258_vm1, %v6447_v23  ;;  %6092 = vmatpush3.bf16.msk.msra.mxu1 %vm6088_vm8, %v6077_v38  ;;  %v6093_v38 = vpack.c.bf16 %v3077_v59, %v3076_v2 }
0x1c2b   :  { %6094 = vmatprep.subr.bf16.mxu0 %v6093_v38 }
0x1c2c   :  { %6096 = vmatpush3.bf16.msra.mxu0 %v6093_v38 }
0x1c2d   :  { %6098 = vmatprep.subr.bf16.mxu0 %v6097_v40 }
0x1c30   :  { %6100 = vmatpush3.bf16.msra.mxu0 %v6097_v40  ;;  %v7273_v40 = vand.u32 127, %v32_v10 }
0x1c31   :  { %6107 = vmatprep.subr.bf16.mxu0 %v6445_v20 }
0x1c32   :  { %vm4183_vm13 = vcmp.eq.s32.totalorder %v4179_v39, %v7273_v40  ;;  %vm4182_vm14 = vcmp.eq.s32.totalorder %v6511_v11, %v7273_v40 }
0x1cfb   :  { %v5763_v44 = vpop.f32.mrb[32].mxu1 }
0x1cfc   :  { %v3614_v50 = vpop.f32.mrb[33].mxu1  ;;  %v3727_v51 = vpop.f32.mrb[40].mxu0 }
0x1cfd   :  { %6379 = vrsqrt.f32 %v3727_v51  ;;  %v5770_v47 = vpop.f32.mrb[41].mxu0  ;;  %vm3733_vm11 = vcmp.eq.f32.partialorder %v3727_v51, inf  ;;  %v3736_v15 = vand.u32 2147483648, %v3727_v51  ;;  %vm3735_vm12 = vcmp.eq.f32.partialorder %v3727_v51, 0.0 }
0x1d07   :  { %v6380_v4 = vpop.eup %6379 }
0x1d08   :  { %v3732_v63 = vmul.f32 %v6380_v4, %v3727_v51 }
0x1d0a   :  { %v3734_v34 = vsel %vm3733_vm11, %v3727_v51, %v3732_v63 }
0x1d0b   :  { %v3737_v45 = vsel %vm3735_vm12, %v3736_v15, %v3734_v34 }
0x1d0c   :  { %v3741_v41 = vrot.slane %v3737_v45, %v6529_v21 }
0x1d0e   :  { %v3742_v35 = vmul.f32 %v3741_v41, %v3645_v36  ;;  %v3743_v13 = vmul.f32 %v3741_v41, %v3652_v32 }
0x1d10   :  { %6381 = vrcp.f32 %v3743_v13 }
0x1d11   :  { %6383 = vrcp.f32 %v3742_v35 }
0x1d1a   :  { %v6382_v48 = vpop.eup %6381 }
0x1d1b   :  { %v6384_v18 = vpop.eup %6383  ;;  %v3747_v8 = vmul.f32 %v6382_v48, %v5763_v44 }
0x1d1c   :  { %v3745_v24 = vmul.f32 %v6384_v18, %v3614_v50 }
0x1d1d   :  { %vm3749_vm0 = vcmp.ne.f32.partialorder %v3747_v8, %v3747_v8 }
0x1d1e   :  { %v3751_v33 = vsel %vm3749_vm0, 0.0, %v3747_v8  ;;  %vm3748_vm7 = vcmp.ne.f32.partialorder %v3745_v24, %v3745_v24 }
0x1d1f   :  { %v3759_v19 = vsel %vm3757_vm6, %v3751_v33, -1e+30  ;;  %v3750_v53 = vsel %vm3748_vm7, 0.0, %v3745_v24 }
0x1d20   :  { %v3763_v9 = vsel %vm3103_vm2, %v3759_v19, -inf  ;;  %v3758_v1 = vsel %vm3757_vm6, %v3750_v53, -1e+30 }
0x1d21   :  { %3764 = vmax.xlane.f32.xlu1 %v3763_v9  ;;  %v3760_v17 = vsel %vm3103_vm2, %v3758_v1, -inf }
0x1d22   :  { %3761 = vmax.xlane.f32.xlu0 %v3760_v17 }
0x1dae   :  { %v3765_v52 = vpop.xlane.xlu1 %3764 }
0x1daf   :  { %v3762_v60 = vpop.xlane.xlu0 %3761  ;;  %v3767_v12 = vsub.f32 %v3759_v19, %v3765_v52 }
0x1db0   :  { %v3766_v56 = vsub.f32 %v3758_v1, %v3762_v60 }
0x1db1   :  { %v3770_v62 = vmul.f32 1.442695, %v3767_v12 }
0x1db2   :  { %v3768_v37 = vmul.f32 1.442695, %v3766_v56 }
0x1db3   :  { %6385 = vpow2.f32 %v3770_v62 }
0x1db4   :  { %6387 = vpow2.f32 %v3768_v37 }
0x1dbd   :  { %v6386_v6 = vpop.eup %6385 }
0x1dbe   :  { %v6388_v16 = vpop.eup %6387  ;;  %v3775_v27 = vsel %vm3103_vm2, %v6386_v6, 0.0 }
0x1dbf   :  { %v3772_v57 = vsel %vm3103_vm2, %v6388_v16, 0.0  ;;  %3776 = vadd.xlane.f32.xlu1 %v3775_v27 }
0x1dc0   :  { %3773 = vadd.xlane.f32.xlu0 %v3772_v57 }
0x1e4c   :  { %v3777_v49 = vpop.xlane.xlu1 %3776 }
0x1e4d   :  { %v3774_v43 = vpop.xlane.xlu0 %3773  ;;  %6389 = vrcp.f32 %v3777_v49  ;;  %v7279_v49 = vsel %vm4183_vm13, 1.0, %v6441_v7 }
0x1e4e   :  { %6391 = vrcp.f32 %v3774_v43  ;;  %v7282_v43 = vsel %vm4182_vm14, 1.0, %v6441_v7 }
0x1e4f   :  { %v4199_v10 = vsub.f32 1.0, %v7282_v43 }
0x1e57   :  { %v6390_v44 = vpop.eup %6389 }
0x1e58   :  { %v6392_v50 = vpop.eup %6391  ;;  %v3781_v51 = vmul.f32 %v6390_v44, %v6386_v6 }
0x1e59   :  { %v3780_v47 = vmul.f32 %v6392_v50, %v6388_v16 }
0x1e5b   :  { %5775 = vmatprep.mubr.msk.f32.mxu1 %vm3103_vm2, %v3780_v47  ;;  %v4200_v47 = vsub.f32 1.0, %v7279_v49 }
0x1e5c   :  { %5776 = vmatmul.mubr.msk.f32.vlgmr.msra.gmra.mrb[34].mxu1 %vm3103_vm2, %v3781_v51 }
0x1f2f   :  { %v5777_v22 = vpop.f32.mrb[34].mxu1 }
0x1f30   :  { %v3857_v25 = vpop.f32.mrb[35].mxu1 }
0x1f31   :  { %5786 = vmatprep.mubr.msk.f32.mxu0 %vm258_vm1, %v3857_v25 }
0x1f32   :  { %5787 = vmatmul.mubr.msk.f32.vlgmr.msra.gmra.mrb[42].mxu0 %vm258_vm1, %v5777_v22 }
0x1f33   :  { %5800 = vmatprep.mubr.msk.f32.mxu0 %vm6446_vm4, %v6441_v7 }
0x2005   :  { %v5788_v4 = vpop.f32.mrb[42].mxu0 }
0x2006   :  { %v7222_v63 = vadd.f32 %v5788_v4, %v3869_v58  ;;  %v3942_v15 = vpop.f32.mrb[43].mxu0 }
0x2007   :  { %v7224_v42 = vadd.f32 %v3942_v15, %v3869_v58 }
0x2008   :  { %3961 = vrot.lane.b32.xlu1 %v7222_v63, %s6450_s11 }
0x2009   :  { %3959 = vrot.lane.b32.xlu0 %v7224_v42, %s6450_s11 }
0x207a   :  { %v3962_v29 = vpop.permute.xlu1 %3961 }
0x207b   :  { %v7231_v34 = vsub.f32 %v7127_v5, %v3962_v29  ;;  %v3960_v54 = vpop.permute.xlu0 %3959 }
0x207c   :  { %v7234_v28 = vsub.f32 %v7129_v61, %v3960_v54 }
0x207d   :  { %v4053_v45 = vmul.f32 %v7231_v34, %v7231_v34 }
0x207e   :  { %v4052_v41 = vmul.f32 %v7234_v28, %v7234_v28 }
0x207f   :  { %4058 = vrot.lane.b32.xlu0 %v4053_v45, %s6443_s14 }
0x2080   :  { %4056 = vrot.lane.b32.xlu1 %v4052_v41, %s6443_s14 }
0x2083   :  { %3971 = vrot.lane.b32.xlu0 %v7231_v34, %s6443_s14 }
0x2084   :  { %3969 = vrot.lane.b32.xlu1 %v7234_v28, %s6443_s14 }
0x20f1   :  { %v4059_v5 = vpop.permute.xlu0 %4058 }
0x20f2   :  { %v4057_v32 = vpop.permute.xlu1 %4056  ;;  %v4065_v61 = vsel %vm258_vm1, %v4059_v5, 0.0 }
0x20f3   :  { %v6108_v36 = vpack.c.bf16 %v4059_v5, %v4057_v32  ;;  %4066 = vadd.xlane.f32.xlu0 %v4065_v61  ;;  %v4062_v35 = vsel %vm258_vm1, %v4057_v32, 0.0 }
0x20f4   :  { %4063 = vadd.xlane.f32.xlu1 %v4062_v35 }
0x20f5   :  { %6110 = vmatpush3.bf16.xpose.msk.msra.mxu0 %vm7149_vm5, %v6108_v36  ;;  %v7250_v13 = vpop.permute.xlu0 %3971 }
0x20f6   :  { %v3970_v46 = vpop.permute.xlu1 %3969 }
0x20f7   :  { %v6101_v48 = vpack.c.bf16 %v7250_v13, %v3970_v46  ;;  %5793 = vmatprep.mubr.msk.f32.mxu1 %vm258_vm1, %v3970_v46 }
0x20f9   :  { %6103 = vmatprep.subr.msk.bf16.mxu1 %vm7149_vm5, %v6101_v48 }
0x20fa   :  { %6106 = vmatpush3.bf16.xpose.msk.msra.mxu1 %vm7149_vm5, %v6101_v48 }
0x20fb   :  { %6112 = vmatprep.subr.bf16.mxu1 %v6101_v48 }
0x20fc   :  { %5801 = vmatmul.mubr.msk.f32.vlgmr.msra.gmra.mrb[44].mxu0 %vm258_vm1, %v6447_v23 }
0x20fd   :  { %5821 = vmatprep.mubr.msk.f32.mxu0 %vm258_vm1, %v3970_v46 }
0x2101   :  { %5794 = vmatmul.mubr.msk.f32.vlgmr.msra.gmra.mrb[36].mxu1 %vm258_vm1, %v7250_v13 }
0x2102   :  { %6114 = vmatpush3.bf16.msra.mxu1 %v6101_v48 }
0x2103   :  { %6115 = vmatprep.subr.bf16.mxu1 %v6445_v20 }
0x2180   :  { %v4067_v3 = vpop.xlane.xlu0 %4066 }
0x2181   :  { %v4064_v18 = vpop.xlane.xlu1 %4063  ;;  %6393 = vrsqrt.f32 %v4067_v3  ;;  %vm4077_vm2 = vcmp.eq.f32.partialorder %v4067_v3, inf  ;;  %v4080_v6 = vand.u32 2147483648, %v4067_v3  ;;  %vm4079_vm11 = vcmp.eq.f32.partialorder %v4067_v3, 0.0 }
0x2182   :  { %6395 = vrsqrt.f32 %v4064_v18  ;;  %vm4070_vm8 = vcmp.eq.f32.partialorder %v4064_v18, inf  ;;  %v4073_v16 = vand.u32 2147483648, %v4064_v18  ;;  %vm4072_vm12 = vcmp.eq.f32.partialorder %v4064_v18, 0.0 }
0x218b   :  { %v6394_v19 = vpop.eup %6393 }
0x218c   :  { %v6396_v9 = vpop.eup %6395  ;;  %v4076_v1 = vmul.f32 %v6394_v19, %v4067_v3 }
0x218d   :  { %v4069_v17 = vmul.f32 %v6396_v9, %v4064_v18 }
0x218e   :  { %v4078_v56 = vsel %vm4077_vm2, %v4067_v3, %v4076_v1 }
0x218f   :  { %v4071_v62 = vsel %vm4070_vm8, %v4064_v18, %v4069_v17  ;;  %v7265_v2 = vsel %vm4079_vm11, %v4080_v6, %v4078_v56 }
0x2190   :  { %v7267_v59 = vsel %vm4072_vm12, %v4073_v16, %v4071_v62 }
0x21cf   :  { %v4152_v8 = vpop.f32.mrb[44].mxu0 }
0x21d0   :  { %6397 = vrsqrt.f32 %v4152_v8  ;;  %v5802_v24 = vpop.f32.mrb[45].mxu0  ;;  %vm4158_vm9 = vcmp.eq.f32.partialorder %v4152_v8, inf  ;;  %v4161_v12 = vand.u32 2147483648, %v4152_v8  ;;  %vm4160_vm10 = vcmp.eq.f32.partialorder %v4152_v8, 0.0 }
0x21d4   :  { %v5795_v33 = vpop.f32.mrb[36].mxu1 }
0x21d5   :  { %v4043_v53 = vpop.f32.mrb[37].mxu1 }
0x21da   :  { %v6398_v52 = vpop.eup %6397 }
0x21db   :  { %v4157_v60 = vmul.f32 %v6398_v52, %v4152_v8 }
0x21dd   :  { %v4159_v37 = vsel %vm4158_vm9, %v4152_v8, %v4157_v60 }
0x21de   :  { %v4162_v27 = vsel %vm4160_vm10, %v4161_v12, %v4159_v37 }
0x21df   :  { %v4166_v57 = vrot.slane %v4162_v27, %v6529_v21 }
0x21e1   :  { %v4168_v30 = vmul.f32 %v4166_v57, %v7265_v2  ;;  %v4167_v38 = vmul.f32 %v4166_v57, %v7267_v59 }
0x21e3   :  { %6399 = vrcp.f32 %v4168_v30 }
0x21e4   :  { %6401 = vrcp.f32 %v4167_v38 }
0x21ed   :  { %v6400_v44 = vpop.eup %6399 }
0x21ee   :  { %v6402_v50 = vpop.eup %6401  ;;  %v4172_v51 = vmul.f32 %v6400_v44, %v5795_v33 }
0x21ef   :  { %v4170_v22 = vmul.f32 %v6402_v50, %v4043_v53 }
0x21f0   :  { %vm4174_vm15 = vcmp.ne.f32.partialorder %v4172_v51, %v4172_v51 }
0x21f1   :  { %v4176_v25 = vsel %vm4174_vm15, 0.0, %v4172_v51  ;;  %vm4173_vm0 = vcmp.ne.f32.partialorder %v4170_v22, %v4170_v22 }
0x21f2   :  { %v4189_v58 = vmul.f32 %v7279_v49, %v4176_v25  ;;  %v4202_v4 = vmul.f32 %v4200_v47, %v4176_v25  ;;  %v4175_v15 = vsel %vm4173_vm0, 0.0, %v4170_v22 }
0x21f3   :  { %v4188_v29 = vmul.f32 %v7282_v43, %v4175_v15  ;;  %v4201_v54 = vmul.f32 %v4199_v10, %v4175_v15 }
0x21f4   :  { %v4191_v45 = vsel %vm3161_vm3, %v4189_v58, 0.0  ;;  %v4206_v41 = vsel %vm3161_vm3, %v4202_v4, -inf }
0x21f5   :  { %v4190_v5 = vsel %vm3161_vm3, %v4188_v29, 0.0  ;;  %v4203_v32 = vsel %vm3161_vm3, %v4201_v54, -inf  ;;  %4207 = vmax.xlane.f32.xlu1 %v4206_v41 }
0x21f6   :  { %v4192_v61 = vadd.f32 %v4191_v45, %v4190_v5  ;;  %4204 = vmax.xlane.f32.xlu0 %v4203_v32 }
0x21f8   :  { %v4193_v50 = vrot.slane %v4192_v61, 4 }
0x21fa   :  { %v4194_v25 = vadd.f32 %v4193_v50, %v4192_v61 }
0x21fc   :  { %v4195_v29 = vrot.slane %v4194_v25, 2 }
0x21fe   :  { %v4196_v41 = vadd.f32 %v4195_v29, %v4194_v25 }
0x2282   :  { %v4208_v36 = vpop.xlane.xlu1 %4207 }
0x2283   :  { %vm4210_vm6 = vcmp.eq.f32.partialorder %v4202_v4, %v4208_v36  ;;  %v4205_v35 = vpop.xlane.xlu0 %4204 }
0x2284   :  { %v4212_v46 = vsel %vm4210_vm6, %v7273_v40, 16  ;;  %vm4209_vm7 = vcmp.eq.f32.partialorder %v4201_v54, %v4205_v35 }
0x2285   :  { %v4228_v48 = vsel %vm3161_vm3, %v4212_v46, 2147483647  ;;  %v4211_v3 = vsel %vm4209_vm7, %v7273_v40, 16  ;;  %v4197_v46 = vrot.slane %v4196_v41, 1  ;;  %vm3951_vm7 = vcmp.ge.f32.partialorder %v7224_v42, 0.0 }
0x2286   :  { %v4213_v18 = vsel %vm3161_vm3, %v4211_v3, 2147483647  ;;  %v4230_v8 = vshra.s32 %v4228_v48, 16  ;;  %v4229_v53 = vand.u32 65535, %v4228_v48 }
0x2287   :  { %v4215_v24 = vshra.s32 %v4213_v18, 16  ;;  %v4214_v9 = vand.u32 65535, %v4213_v18 }
0x2288   :  { %v4232_v33 = vcvt.s32.f32 %v4230_v8  ;;  %v4231_v17 = vcvt.s32.f32 %v4229_v53 }
0x2289   :  { %v4217_v19 = vcvt.s32.f32 %v4215_v24  ;;  %v4216_v60 = vcvt.s32.f32 %v4214_v9 }
0x228a   :  { %4233 = vmin.xlane.f32.xlu1 %v4232_v33 }
0x228b   :  { %4218 = vmin.xlane.f32.xlu0 %v4217_v19 }
0x2317   :  { %v4234_v1 = vpop.xlane.xlu1 %4233 }
0x2318   :  { %vm4235_vm2 = vcmp.eq.f32.partialorder %v4232_v33, %v4234_v1  ;;  %v4219_v52 = vpop.xlane.xlu0 %4218  ;;  %v4240_v62 = vcvt.f32.s32 %v4234_v1 }
0x2319   :  { %vm4220_vm8 = vcmp.eq.f32.partialorder %v4217_v19, %v4219_v52  ;;  %v4236_v12 = vsel %vm4235_vm2, %v4231_v17, inf  ;;  %v4225_v37 = vcvt.f32.s32 %v4219_v52 }
0x231a   :  { %4237 = vmin.xlane.f32.xlu1 %v4236_v12  ;;  %v4221_v56 = vsel %vm4220_vm8, %v4216_v60, inf  ;;  %v4241_v16 = vshll.u32 %v4240_v62, 16 }
0x231b   :  { %4222 = vmin.xlane.f32.xlu0 %v4221_v56  ;;  %v4226_v30 = vshll.u32 %v4225_v37, 16 }
0x23a7   :  { %v4238_v6 = vpop.xlane.xlu1 %4237 }
0x23a8   :  { %v4239_v27 = vcvt.f32.s32 %v4238_v6  ;;  %v4223_v57 = vpop.xlane.xlu0 %4222 }
0x23a9   :  { %v4224_v38 = vcvt.f32.s32 %v4223_v57 }
0x23aa   :  { %v4242_v39 = vadd.s32 %v4241_v16, %v4239_v27 }
0x23ab   :  { %v4227_v44 = vadd.s32 %v4226_v30, %v4224_v38 }
0x23ac   :  { %vm4244_vm9 = vcmp.eq.s32.totalorder %v7273_v40, %v4242_v39 }
0x23ad   :  { %v5183_v51 = vsel %vm4244_vm9, 1.0, %v6441_v7  ;;  %vm4243_vm10 = vcmp.eq.s32.totalorder %v7273_v40, %v4227_v44  ;;  %v4198_v40 = vadd.f32 %v4197_v46, %v4196_v41 }
0x23ae   :  { %v4250_v47 = vmul.f32 %v5183_v51, %v4208_v36  ;;  %v5182_v22 = vsel %vm4243_vm10, 1.0, %v6441_v7  ;;  %vm5042_vm10 = vcmask 122880  }
0x23af   :  { %v4249_v10 = vmul.f32 %v5182_v22, %v4205_v35 }
0x23b0   :  { %v4252_v58 = vsel %vm3161_vm3, %v4250_v47, 0.0 }
0x23b1   :  { %v4251_v4 = vsel %vm3161_vm3, %v4249_v10, 0.0 }
0x23b2   :  { %v4253_v15 = vadd.f32 %v4252_v58, %v4251_v4 }
0x23b4   :  { %v4254_v54 = vrot.slane %v4253_v15, 4 }
0x23b6   :  { %v4255_v45 = vadd.f32 %v4254_v54, %v4253_v15 }
0x23b8   :  { %v4256_v5 = vrot.slane %v4255_v45, 2 }
0x23ba   :  { %v4257_v32 = vadd.f32 %v4256_v5, %v4255_v45 }
0x23bc   :  { %v4258_v48 = vrot.slane %v4257_v32, 1 }
0x23be   :  { %v4259_v3 = vadd.f32 %v4258_v48, %v4257_v32  ;;  %v3080_v48 = vld [vmem:[%s7409_s2 + $0x20] sm:$0xff] }
0x23c0   :  { %vm4260_vm11 = vcmp.ne.f32.partialorder %v4259_v3, 0.0  ;;  %v3081_v3 = vld [vmem:[%s7409_s2 + $0x28] sm:$0xff] }
0x23c1   :  { %v5184_v36 = vsel %vm4260_vm11, 1.0, %v6441_v7 }
0x23c2   :  { %v4263_v35 = vmul.f32 %v5184_v36, %v4198_v40  ;;  %v6133_v40 = vpack.c.bf16 %v3081_v3, %v3080_v48 }
0x23c4   :  { %v4264_v61 = vmul.f32 %v7282_v43, %v4263_v35  ;;  %v4265_v8 = vmul.f32 %v7279_v49, %v4263_v35 }
0x23c6   :  { %v4266_v18 = vadd.f32 %v4264_v61, %v4249_v10  ;;  %v4267_v24 = vadd.f32 %v4265_v8, %v4250_v47  ;;  %v3082_v8 = vld [vmem:[%s7409_s2 + $0x30] sm:$0xff] }
0x23c8   :  { %4268 = vxpose.xlu0.b32.start [1/2] (short) (narrow) %v4266_v18, 16 }
0x23cc   :  { %4269 = vxpose.xlu0.b32.end [2/2] (short) (narrow) %v4267_v24, 16  ;;  %v3083_v24 = vld [vmem:[%s7409_s2 + $0x38] sm:$0xff] }
0x23f5   :  { %6172 = vset.pattern.permute.xlu0 %v6448_v26 }
0x2448   :  { %v4284_v33 = vpop.trf.xlu0 }
0x2449   :  { %5807 = vmatprep.mubr.msk.f32.mxu1 %vm3161_vm3, %v4284_v33 }
0x244c   :  { %v4285_v19 = vpop.trf.xlu0 }
0x244d   :  { %5808 = vmatmul.mubr.msk.f32.vlgmr.msra.gmra.mrb[38].mxu1 %vm3161_vm3, %v4285_v19 }
0x244e   :  { %5814 = vmatprep.mubr.msk.f32.mxu1 %vm6446_vm4, %v6441_v7 }
0x2520   :  { %v5809_v53 = vpop.f32.mrb[38].mxu1 }
0x2521   :  { %v4536_v9 = vmul.f32 %v5809_v53, %v5809_v53  ;;  %v4374_v43 = vpop.f32.mrb[39].mxu1 }
0x2522   :  { %v6116_v1 = vpack.c.bf16 %v5809_v53, %v4374_v43  ;;  %v4535_v17 = vmul.f32 %v4374_v43, %v4374_v43  ;;  %v6137_v53 = vpack.c.bf16 %v3083_v24, %v3082_v8 }
0x2524   :  { %v6126_v49 = vpack.c.bf16 %v4536_v9, %v4535_v17  ;;  %6118 = vmatpush3.bf16.xpose.msk.msra.mxu1 %vm7149_vm5, %v6116_v1  ;;  %6121 = vmatprep.subr.msk.bf16.mxu0 %vm7149_vm5, %v6116_v1  ;;  %v3084_v17 = vld [vmem:[%s7409_s2 + $0x40] sm:$0xff] }
0x2525   :  { %6124 = vmatpush3.bf16.xpose.msk.msra.mxu0 %vm7149_vm5, %v6116_v1  ;;  %6125 = vmatprep.subr.bf16.mxu1 %v6445_v20 }
0x2526   :  { %6130 = vmatprep.subr.bf16.mxu0 %v6116_v1 }
0x252b   :  { %5815 = vmatmul.mubr.msk.f32.vlgmr.msra.gmra.mrb[40].mxu1 %vm258_vm1, %v6447_v23 }
0x252c   :  { %5822 = vmatmul.mubr.msk.f32.vlgmr.msra.gmra.mrb[46].mxu0 %vm258_vm1, %v7250_v13  ;;  %6128 = vmatpush3.bf16.xpose.msk.msra.mxu1 %vm7149_vm5, %v6126_v49 }
0x252d   :  { %6132 = vmatpush3.bf16.msra.mxu0 %v6116_v1  ;;  %5828 = vmatprep.mubr.msk.f32.mxu1 %vm6446_vm4, %v6441_v7  ;;  %v4748_v1 = vrot.slane %v7218_v55, %v34_v14  ;;  %v3953_v14 = vmul.f32 0.01, %v7224_v42 }
0x252e   :  { %6134 = vmatprep.subr.bf16.mxu0 %v6133_v40 }
0x2533   :  { %5829 = vmatmul.mubr.msk.f32.vlgmr.msra.gmra.mrb[42].mxu1 %vm258_vm1, %v6447_v23 }
0x25fe   :  { %v4455_v52 = vpop.f32.mrb[40].mxu1 }
0x25ff   :  { %v5816_v60 = vpop.f32.mrb[41].mxu1  ;;  %v5823_v12 = vpop.f32.mrb[46].mxu0  ;;  %vm4459_vm14 = vcmp.ne.f32.partialorder %v4455_v52, 0.0 }
0x2600   :  { %v4526_v56 = vpop.f32.mrb[47].mxu0  ;;  %v4634_v39 = vsel %vm4459_vm14, 1, %v6448_v26 }
0x2601   :  { %v4638_v50 = vrot.slane %v4634_v39, %v6529_v21 }
0x2603   :  { %vm4639_vm0 = vcmp.eq.s32.totalorder %v4638_v50, 1 }
0x2606   :  { %v4609_v62 = vpop.f32.mrb[42].mxu1 }
0x2607   :  { %6403 = vrsqrt.f32 %v4609_v62  ;;  %v5830_v37 = vpop.f32.mrb[43].mxu1  ;;  %vm4615_vm12 = vcmp.eq.f32.partialorder %v4609_v62, inf  ;;  %v4618_v13 = vand.u32 2147483648, %v4609_v62  ;;  %vm4617_vm13 = vcmp.eq.f32.partialorder %v4609_v62, 0.0 }
0x2611   :  { %v6404_v6 = vpop.eup %6403 }
0x2612   :  { %v4614_v16 = vmul.f32 %v6404_v6, %v4609_v62 }
0x2614   :  { %v4616_v27 = vsel %vm4615_vm12, %v4609_v62, %v4614_v16 }
0x2615   :  { %v4619_v57 = vsel %vm4617_vm13, %v4618_v13, %v4616_v27 }
0x2616   :  { %v4623_v30 = vrot.slane %v4619_v57, %v6529_v21  ;;  %v3955_v57 = vsel %vm3951_vm7, %v7224_v42, %v3953_v14 }
0x2618   :  { %v4624_v38 = vmul.f32 %v4623_v30, %v7267_v59  ;;  %v4625_v23 = vmul.f32 %v4623_v30, %v7265_v2 }
0x261a   :  { %6405 = vrcp.f32 %v4624_v38  ;;  %v3086_v38 = vld [vmem:[%s7409_s2 + $0x50] sm:$0xff] }
0x261b   :  { %6407 = vrcp.f32 %v4625_v23  ;;  %v3087_v23 = vld [vmem:[%s7409_s2 + $0x58] sm:$0xff] }
0x261c   :  { %v6145_v39 = vpack.c.bf16 %v3087_v23, %v3086_v38 }
0x2624   :  { %v6406_v44 = vpop.eup %6405 }
0x2625   :  { %v6408_v51 = vpop.eup %6407  ;;  %v4627_v47 = vmul.f32 %v6406_v44, %v4526_v56 }
0x2626   :  { %v4629_v22 = vmul.f32 %v6408_v51, %v5823_v12 }
0x2627   :  { %vm4630_vm15 = vcmp.ne.f32.partialorder %v4627_v47, %v4627_v47 }
0x2628   :  { %v4632_v10 = vsel %vm4630_vm15, 0.0, %v4627_v47  ;;  %vm4631_vm6 = vcmp.ne.f32.partialorder %v4629_v22, %v4629_v22 }
0x2629   :  { %v4640_v25 = vsel %vm4639_vm0, %v4632_v10, -1e+30  ;;  %v4633_v58 = vsel %vm4631_vm6, 0.0, %v4629_v22  ;;  %v4849_v22 = vrot.slane %v7218_v55, %v38_v31 }
0x262a   :  { %v4642_v59 = vsel %vm3161_vm3, %v4640_v25, -inf  ;;  %v4641_v2 = vsel %vm4639_vm0, %v4633_v58, -1e+30 }
0x262b   :  { %4643 = vmax.xlane.f32.xlu1 %v4642_v59  ;;  %v4645_v4 = vsel %vm3161_vm3, %v4641_v2, -inf }
0x262f   :  { %4646 = vmax.xlane.f32.xlu1 %v4645_v4 }
0x26b8   :  { %v4644_v26 = vpop.xlane.xlu1 %4643 }
0x26b9   :  { %v4648_v15 = vsub.f32 %v4640_v25, %v4644_v26 }
0x26bb   :  { %v4650_v29 = vmul.f32 1.442695, %v4648_v15 }
0x26bc   :  { %v4647_v21 = vpop.xlane.xlu1 %4646 }
0x26bd   :  { %6409 = vpow2.f32 %v4650_v29  ;;  %v4649_v54 = vsub.f32 %v4641_v2, %v4647_v21 }
0x26bf   :  { %v4652_v45 = vmul.f32 1.442695, %v4649_v54 }
0x26c1   :  { %6411 = vpow2.f32 %v4652_v45 }
0x26c7   :  { %v6410_v41 = vpop.eup %6409 }
0x26c8   :  { %v4654_v5 = vsel %vm3161_vm3, %v6410_v41, 0.0 }
0x26c9   :  { %4655 = vadd.xlane.f32.xlu1 %v4654_v5  ;;  %v4957_v5 = vrot.slane %v7218_v55, 3 }
0x26cb   :  { %v6412_v32 = vpop.eup %6411 }
0x26cc   :  { %v4657_v46 = vsel %vm3161_vm3, %v6412_v32, 0.0 }
0x26cd   :  { %4658 = vadd.xlane.f32.xlu1 %v4657_v46 }
0x2756   :  { %v4656_v36 = vpop.xlane.xlu1 %4655 }
0x2757   :  { %6413 = vrcp.f32 %v4656_v36 }
0x275a   :  { %v4659_v35 = vpop.xlane.xlu1 %4658 }
0x275b   :  { %6415 = vrcp.f32 %v4659_v35 }
0x2761   :  { %v6414_v61 = vpop.eup %6413 }
0x2762   :  { %v4662_v18 = vmul.f32 %v6414_v61, %v6410_v41 }
0x2764   :  { %5835 = vmatprep.mubr.msk.f32.mxu0 %vm3161_vm3, %v4662_v18 }
0x2765   :  { %v6416_v33 = vpop.eup %6415 }
0x2766   :  { %v4663_v19 = vmul.f32 %v6416_v33, %v6412_v32 }
0x2768   :  { %5836 = vmatmul.mubr.msk.f32.vlgmr.msra.gmra.mrb[48].mxu0 %vm3161_vm3, %v4663_v19  ;;  %vm3952_vm3 = vcmp.ge.f32.partialorder %v7222_v63, 0.0 }
0x2769   :  { %6136 = vmatpush3.bf16.msra.mxu0 %v6133_v40 }
0x276a   :  { %6138 = vmatprep.subr.bf16.mxu0 %v6137_v53 }
0x276d   :  { %6140 = vmatpush3.bf16.msra.mxu0 %v6137_v53 }
0x276e   :  { %6149 = vmatprep.subr.bf16.mxu0 %v6445_v20  ;;  %v3085_v20 = vld [vmem:[%s7409_s2 + $0x48] sm:$0xff]  ;;  %s6451_s2 = smov [#allocation2]  }
0x276f   :  { %v6141_v49 = vpack.c.bf16 %v3085_v20, %v3084_v17  ;;  %s5050_s27 = sshll.u32 %s6451_s2, 4  ;;  %s5051_s27 = int_to_ptr.vmem [resolvable:$true] %s5050_s27 }
0x2770   :  { %s6421_s3 = scalar_lea.vmem %s5051_s27, 32  ;;  %p6422_p1 = scmp.lt.s32.totalorder %s5051_s27, %s5051_s27 }
0x2771   :  { %6142 = vmatprep.subr.bf16.mxu1 %v6141_v49 }
0x2772   :  { %6144 = vmatpush3.bf16.msra.mxu1 %v6141_v49 }
0x2773   :  { %6146 = vmatprep.subr.bf16.mxu1 %v6145_v39 }
0x2776   :  { %6148 = vmatpush3.bf16.msra.mxu1 %v6145_v39 }
0x283b   :  { %v5837_v9 = vpop.f32.mrb[48].mxu0 }
0x283c   :  { %v4736_v43 = vpop.f32.mrb[49].mxu0 }
0x283d   :  { %5846 = vmatprep.mubr.msk.f32.mxu0 %vm258_vm1, %v4736_v43 }
0x283e   :  { %5847 = vmatmul.mubr.msk.f32.vlgmr.msra.gmra.mrb[50].mxu0 %vm258_vm1, %v5837_v9 }
0x283f   :  { %5864 = vmatprep.mubr.msk.f32.mxu0 %vm6446_vm4, %v6441_v7  ;;  %v3954_v7 = vmul.f32 0.01, %v7222_v63 }
0x2841   :  { %v3956_v6 = vsel %vm3952_vm3, %v7222_v63, %v3954_v7 }
0x2911   :  { %v5848_v52 = vpop.f32.mrb[50].mxu0 }
0x2912   :  { %v4827_v60 = vadd.f32 %v5848_v52, %v4748_v1  ;;  %v4821_v12 = vpop.f32.mrb[51].mxu0 }
0x2913   :  { %v4822_v56 = vadd.f32 %v4821_v12, %v4748_v1 }
0x2914   :  { %vm4831_vm4 = vcmp.ge.f32.partialorder %v4827_v60, 0.0  ;;  %v4833_v62 = vmul.f32 0.01, %v4827_v60 }
0x2915   :  { %4838 = vrot.lane.b32.xlu1 %v4822_v56, %s6450_s11  ;;  %vm4830_vm2 = vcmp.ge.f32.partialorder %v4822_v56, 0.0  ;;  %v4832_v37 = vmul.f32 0.01, %v4822_v56 }
0x2916   :  { %v4835_v16 = vsel %vm4831_vm4, %v4827_v60, %v4833_v62 }
0x2917   :  { %v4942_v13 = vadd.f32 %v4835_v16, %v3956_v6  ;;  %v4834_v27 = vsel %vm4830_vm2, %v4822_v56, %v4832_v37 }
0x2918   :  { %v4941_v30 = vadd.f32 %v4834_v27, %v3955_v57 }
0x2919   :  { %4840 = vrot.lane.b32.xlu1 %v4827_v60, %s6450_s11 }
0x2987   :  { %v4839_v63 = vpop.permute.xlu1 %4838 }
0x2988   :  { %v4844_v44 = vsub.f32 %v7234_v28, %v4839_v63 }
0x298a   :  { %4852 = vrot.lane.b32.xlu1 %v4844_v44, %s6443_s14 }
0x298b   :  { %v4841_v42 = vpop.permute.xlu1 %4840 }
0x298c   :  { %v4845_v50 = vsub.f32 %v7231_v34, %v4841_v42 }
0x298e   :  { %4854 = vrot.lane.b32.xlu1 %v4845_v50, %s6443_s14 }
0x29fc   :  { %v4853_v51 = vpop.permute.xlu1 %4852 }
0x29fd   :  { %5857 = vmatprep.mubr.msk.f32.mxu1 %vm258_vm1, %v4853_v51 }
0x2a00   :  { %v4855_v47 = vpop.permute.xlu1 %4854 }
0x2a01   :  { %5858 = vmatmul.mubr.msk.f32.vlgmr.msra.gmra.mrb[44].mxu1 %vm258_vm1, %v4855_v47 }
0x2ad4   :  { %v5859_v10 = vpop.f32.mrb[44].mxu1 }
0x2ad5   :  { %v4932_v25 = vadd.f32 %v5859_v10, %v4849_v22  ;;  %v4926_v28 = vpop.f32.mrb[45].mxu1 }
0x2ad6   :  { %v4927_v58 = vadd.f32 %v4926_v28, %v4849_v22 }
0x2ad7   :  { %vm4936_vm8 = vcmp.ge.f32.partialorder %v4932_v25, 0.0  ;;  %v4938_v59 = vmul.f32 0.01, %v4932_v25 }
0x2ad8   :  { %vm4935_vm9 = vcmp.ge.f32.partialorder %v4927_v58, 0.0  ;;  %v4937_v34 = vmul.f32 0.01, %v4927_v58 }
0x2ad9   :  { %v4940_v2 = vsel %vm4936_vm8, %v4932_v25, %v4938_v59 }
0x2ada   :  { %4947 = vrot.lane.b32.xlu0 %v4940_v2, %s6450_s11  ;;  %v4939_v4 = vsel %vm4935_vm9, %v4927_v58, %v4937_v34 }
0x2adb   :  { %4945 = vrot.lane.b32.xlu1 %v4939_v4, %s6450_s11 }
0x2b4c   :  { %v4948_v26 = vpop.permute.xlu0 %4947 }
0x2b4d   :  { %v4952_v15 = vadd.f32 %v4948_v26, %v4942_v13  ;;  %v4946_v29 = vpop.permute.xlu1 %4945 }
0x2b4e   :  { %v4951_v11 = vadd.f32 %v4946_v29, %v4941_v30 }
0x2b50   :  { %v6166_v21 = vpack.i.bf16 %v4952_v15, %v4951_v11 }
0x2b52   :  { %6167 = vrot.lane.b32.xlu1 %v6166_v21, %s6443_s14  ;;  %s6417_s14 = scalar_lea.vmem %s5051_s27, 16 }
0x2b53   :  { %p6418_p0 = scmp.ne.s32.totalorder %s5051_s27, %s6417_s14  ;;  %p6423_p2 = scmp.lt.s32.totalorder %s6421_s3, %s6417_s14 }
0x2b55   :  { %p6424_p3 = por %p6423_p2, %p6422_p1 }
0x2b56   :  { %4955 = vperm.xlu1 %6171, %v7218_v55  }
0x2b57   :  { %p6425_p4 = pnand %p6424_p3, %p6418_p0 }
0x2bc4   :  { %v6168_v31 = vpop.permute.xlu1 %6167 }
0x2bc5   :  { %v6170_v54 = vunpack.i.h.bf16 %v6168_v31  ;;  %v6169_v45 = vunpack.i.l.bf16 %v6168_v31 }
0x2bc7   :  { %v6150_v41 = vpack.c.bf16 %v6170_v54, %v6169_v45 }
0x2bc9   :  { %6152 = vmatpush3.bf16.xpose.msk.msra.mxu0 %vm7149_vm5, %v6150_v41 }
0x2bd0   :  { %5865 = vmatmul.mubr.msk.f32.vlgmr.msra.gmra.mrb[52].mxu0 %vm258_vm1, %v4957_v5 }
0x2bd5   :  { %v4956_v32 = vpop.permute.xlu1 %4955 }
0x2bd6   :  { %v4964_v46 = vrot.slane %v4956_v32, 4 }
0x2ca3   :  { %v5038_v48 = vpop.f32.mrb[52].mxu0 }
0x2ca4   :  { %v5039_v3 = vadd.f32 %v5038_v48, %v4964_v46  ;;  %v5866_v40 = vpop.f32.mrb[53].mxu0 }
0x2ca6   :  { %5043 = vst.msk [vmem:[#allocation2] sm:$0x1] %vm5042_vm10, %v5039_v3 }
0x2ca7   :  { %6428 = shalt.err (!%p6425_p4)
}
0x2ca8   :  { %s6429_s29 = scalar_lea.hbm %s7411_s4, 16 }
0x2ca9   :  { %p6430_p5 = scmp.ne.s32.totalorder %s7411_s4, %s6429_s29  ;;  %p6433_p6 = scmp.lt.u32.totalorder %s6429_s29, %s7411_s4 }
0x2cab   :  { %p6435_p7 = pnand %p6433_p6, %p6430_p5 }
0x2cad   :  { %6438 = shalt.err (!%p6435_p7)
}
0x2cae   :  { %5053 = dma.vmem_to_hbm [thread:$0]  %s5051_s27, 16, %s7411_s4, [#allocation3]  }
0x2caf   :  { %6439 = dma.done.wait [#allocation3], 16  }
0x2cb0   :  { %6440 = vsyncadd [#allocation3], 4294967280 }
0x2cb1   :  { %5057 = vsyncpa [#allocation3], 1 }

</bundles_post_ra>
